<compile_context>
chip_gen: v7x
topology: tpu7x:2x2x1
jax: 0.10.0
libtpu: 0.0.40
codegen_flags: <defaults>
</compile_context>

<pallas_src>
import jax
import jax.numpy as jnp
from jax.experimental import pallas as pl
from jax.experimental.pallas import tpu as pltpu

_BN_EPS = 1e-5
_LANE = 128


def _round_up(x, m):
    return (x + m - 1) // m * m


def _pad_to(x, shape):
    return jnp.pad(x, [(0, t - s) for s, t in zip(x.shape, shape)])


def _pick_row_tile(rows, target=512):
    """Largest multiple-of-8 divisor of `rows` that is <= target (else rows)."""
    if rows <= target:
        return rows
    for t in range(target - target % 8, 7, -8):
        if rows % t == 0:
            return t
    return rows


def _vmem_limit_bytes():
    """Use most of physical VMEM, with headroom (v7x has only 64 MiB/core)."""
    try:
        cap = pltpu.get_tpu_info().vmem_capacity_bytes
        return max(32 * 1024 * 1024, min(int(cap) * 3 // 4, 100 * 1024 * 1024))
    except Exception:
        return 48 * 1024 * 1024


# ---------------------------------------------------------------------------
# Kernels
# ---------------------------------------------------------------------------
def _conv1x1_stats_kernel(x_ref, w_ref, y_ref, stats_ref):
    """y = x @ w (bf16 MXU, f32 acc); emit per-step per-channel sum / sumsq."""
    y = jnp.dot(x_ref[0], w_ref[...], preferred_element_type=jnp.float32)
    y_ref[0] = y.astype(y_ref.dtype)
    stats_ref[0, 0, 0:1, :] = jnp.sum(y, axis=0, keepdims=True)
    stats_ref[0, 0, 1:2, :] = jnp.sum(y * y, axis=0, keepdims=True)


def _bn_relu_conv1x1_stats_kernel(y_in_ref, scale_ref, shift_ref, w_ref,
                                  y_out_ref, stats_ref):
    """a = relu(y_in*scale + shift); y_out = a @ w; emit stats of y_out."""
    a = jnp.maximum(
        y_in_ref[0].astype(jnp.float32) * scale_ref[...] + shift_ref[...], 0.0)
    y = jnp.dot(a.astype(jnp.bfloat16), w_ref[...],
                preferred_element_type=jnp.float32)
    y_out_ref[0] = y.astype(y_out_ref.dtype)
    stats_ref[0, 0, 0:1, :] = jnp.sum(y, axis=0, keepdims=True)
    stats_ref[0, 0, 1:2, :] = jnp.sum(y * y, axis=0, keepdims=True)


def _bn_add_relu_kernel(y_ref, scale_ref, shift_ref, res_ref, o_ref):
    """o = relu(y*scale + shift + residual) in f32."""
    o_ref[0] = jnp.maximum(
        y_ref[0].astype(jnp.float32) * scale_ref[...] + shift_ref[...]
        + res_ref[0].astype(jnp.float32), 0.0)


def _make_conv3x3_kernel(h, w, cin):
    """bn1-apply + relu + 3x3 conv (pad=1, stride=1) + stats, one image/step.

    The 3x3 conv is 9 shifted matmuls over a flat (H*W, C) activation.  Three
    height-padded bf16 copies are kept in VMEM (one per horizontal tap dx); the
    border column that would wrap to the neighbouring image row is pre-masked
    to zero, so every tap is a plain contiguous slice and its start offset
    (w8 + (dy-1)*w) is sublane-aligned whenever W is a multiple of 8.
    """
    hw = h * w
    w8 = _round_up(w, 8)
    p_off = tuple(w8 + 1 - dx for dx in range(3))   # activation start per dx
    n_rows = _round_up(w8 + w + hw, 8)              # padded-buffer rows

    def kernel(y1_ref, scale_ref, shift_ref, m0_ref, m2_ref, w2_ref,
               y2_ref, stats_ref, pad_ref, acc_ref):
        # bn1 apply + relu in f32; single down-cast to bf16 for the MXU.
        act = jnp.maximum(
            y1_ref[0].astype(jnp.float32) * scale_ref[...] + shift_ref[...],
            0.0).astype(jnp.bfloat16)

        # Build the three height-padded copies (zero only the small head/tail
        # pad regions each step - parallel/megacore safe, no full re-zero).
        for dx in range(3):
            p = p_off[dx]
            if dx == 0:
                a = act * m0_ref[...]     # zero column w-1 (left-tap wrap)
            elif dx == 2:
                a = act * m2_ref[...]     # zero column 0   (right-tap wrap)
            else:
                a = act
            pad_ref[dx, pl.ds(0, p), :] = jnp.zeros((p, cin), jnp.bfloat16)
            pad_ref[dx, pl.ds(p, hw), :] = a
            tail = n_rows - p - hw
            if tail > 0:
                pad_ref[dx, pl.ds(p + hw, tail), :] = jnp.zeros(
                    (tail, cin), jnp.bfloat16)

        # 3x3 conv = 9 shifted (hw, cin) x (cin, cout) matmuls, accumulated in
        # an f32 VMEM scratch (no giant SSA accumulator to spill).
        for k in range(9):
            dy, dx = divmod(k, 3)
            start = w8 + (dy - 1) * w          # aligned when w % 8 == 0
            tap = pad_ref[dx, pl.ds(start, hw), :]
            t = jnp.dot(tap, w2_ref[k], preferred_element_type=jnp.float32)
            if k == 0:
                acc_ref[...] = t
            else:
                acc_ref[...] += t

        y = acc_ref[...]
        y2_ref[0] = y.astype(y2_ref.dtype)
        stats_ref[0, 0:1, :] = jnp.sum(y, axis=0, keepdims=True)
        stats_ref[0, 1:2, :] = jnp.sum(y * y, axis=0, keepdims=True)

    return kernel, n_rows


# ---------------------------------------------------------------------------
# Host-side glue
# ---------------------------------------------------------------------------
def _scale_shift(stats, gamma_p, beta_p, count):
    mean = stats[0:1, :] / count
    var = jnp.maximum(stats[1:2, :] / count - mean * mean, 0.0)
    scale = gamma_p * jax.lax.rsqrt(var + _BN_EPS)
    shift = beta_p - mean * scale
    return scale, shift


def bottleneck_forward(x_nchw, params):
    """x: (N, inplanes, H, W) f32 -> (N, 4*planes, H, W) f32."""
    (w1, g1, b1, w2, g2, b2, w3, g3, b3) = params
    n, cin, h, w = x_nchw.shape
    planes = w1.shape[1]
    cout = 4 * planes
    assert cin == cout, "identity residual requires inplanes == 4*planes"
    hw = h * w
    m = n * hw                                   # rows contributing to stats

    kp = _round_up(cin, _LANE)                   # padded conv1 input channels
    c1p = _round_up(planes, _LANE)               # padded conv1/conv2 outputs
    c3p = _round_up(cout, _LANE)                 # padded conv3 output channels
    assert kp == c3p

    rt = _pick_row_tile(hw)                      # row tile for 1x1 / eltwise
    nt = hw // rt

    # ---- layout: NCHW -> (N, H*W, C) rows, channels padded, bf16 ------------
    x_rows = jnp.transpose(x_nchw, (0, 2, 3, 1)).reshape(n, hw, cin)
    x_bf = _pad_to(x_rows, (n, hw, kp)).astype(jnp.bfloat16)   # conv1 in + residual

    w1p = _pad_to(w1, (kp, c1p)).astype(jnp.bfloat16)
    w2p = _pad_to(w2.reshape(9, planes, planes), (9, c1p, c1p)).astype(jnp.bfloat16)
    w3p = _pad_to(w3, (c1p, c3p)).astype(jnp.bfloat16)
    g1p, b1p = _pad_to(g1, (1, c1p)), _pad_to(b1, (1, c1p))
    g2p, b2p = _pad_to(g2, (1, c1p)), _pad_to(b2, (1, c1p))
    g3p, b3p = _pad_to(g3, (1, c3p)), _pad_to(b3, (1, c3p))

    # Column-border masks for the 3x3 conv (zero the column that would wrap to
    # the neighbouring image row when the flat activation is shifted by +-1).
    col = jnp.arange(hw, dtype=jnp.int32) % w
    mask_dx0 = (col != (w - 1)).astype(jnp.bfloat16).reshape(hw, 1)
    mask_dx2 = (col != 0).astype(jnp.bfloat16).reshape(hw, 1)

    vmem = _vmem_limit_bytes()
    par1 = pltpu.CompilerParams(dimension_semantics=("parallel",),
                                vmem_limit_bytes=vmem)
    par2 = pltpu.CompilerParams(dimension_semantics=("parallel", "parallel"),
                                vmem_limit_bytes=vmem)

    def row_spec(c):
        return pl.BlockSpec((1, rt, c), lambda i, j: (i, j, 0))

    def bcast2(a, b):
        return pl.BlockSpec((a, b), lambda i, j: (0, 0))

    # ---- stage A: conv1 (1x1) + bn1 partial stats ----------------------------
    y1, s1 = pl.pallas_call(
        _conv1x1_stats_kernel,
        grid=(n, nt),
        in_specs=[row_spec(kp), bcast2(kp, c1p)],
        out_specs=[row_spec(c1p),
                   pl.BlockSpec((1, 1, 2, c1p), lambda i, j: (i, j, 0, 0))],
        out_shape=[jax.ShapeDtypeStruct((n, hw, c1p), jnp.bfloat16),
                   jax.ShapeDtypeStruct((n, nt, 2, c1p), jnp.float32)],
        compiler_params=par2,
        cost_estimate=pl.CostEstimate(
            flops=2 * m * kp * c1p, transcendentals=0,
            bytes_accessed=2 * m * kp + 2 * m * c1p + 2 * kp * c1p),
    )(x_bf, w1p)
    scale1, shift1 = _scale_shift(jnp.sum(s1, axis=(0, 1)), g1p, b1p, float(m))

    # ---- stage B: bn1 apply + relu + conv2 (3x3) + bn2 partial stats ---------
    conv3x3_kernel, pad_rows = _make_conv3x3_kernel(h, w, c1p)
    y2, s2 = pl.pallas_call(
        conv3x3_kernel,
        grid=(n,),
        in_specs=[pl.BlockSpec((1, hw, c1p), lambda i: (i, 0, 0)),
                  pl.BlockSpec((1, c1p), lambda i: (0, 0)),
                  pl.BlockSpec((1, c1p), lambda i: (0, 0)),
                  pl.BlockSpec((hw, 1), lambda i: (0, 0)),
                  pl.BlockSpec((hw, 1), lambda i: (0, 0)),
                  pl.BlockSpec((9, c1p, c1p), lambda i: (0, 0, 0))],
        out_specs=[pl.BlockSpec((1, hw, c1p), lambda i: (i, 0, 0)),
                   pl.BlockSpec((1, 2, c1p), lambda i: (i, 0, 0))],
        out_shape=[jax.ShapeDtypeStruct((n, hw, c1p), jnp.bfloat16),
                   jax.ShapeDtypeStruct((n, 2, c1p), jnp.float32)],
        scratch_shapes=[pltpu.VMEM((3, pad_rows, c1p), jnp.bfloat16),
                        pltpu.VMEM((hw, c1p), jnp.float32)],
        compiler_params=par1,
        cost_estimate=pl.CostEstimate(
            flops=2 * 9 * m * c1p * c1p, transcendentals=0,
            bytes_accessed=4 * m * c1p + 2 * 9 * c1p * c1p),
    )(y1, scale1, shift1, mask_dx0, mask_dx2, w2p)
    scale2, shift2 = _scale_shift(jnp.sum(s2, axis=0), g2p, b2p, float(m))

    # ---- stage C: bn2 apply + relu + conv3 (1x1) + bn3 partial stats ---------
    y3, s3 = pl.pallas_call(
        _bn_relu_conv1x1_stats_kernel,
        grid=(n, nt),
        in_specs=[row_spec(c1p), bcast2(1, c1p), bcast2(1, c1p),
                  bcast2(c1p, c3p)],
        out_specs=[row_spec(c3p),
                   pl.BlockSpec((1, 1, 2, c3p), lambda i, j: (i, j, 0, 0))],
        out_shape=[jax.ShapeDtypeStruct((n, hw, c3p), jnp.bfloat16),
                   jax.ShapeDtypeStruct((n, nt, 2, c3p), jnp.float32)],
        compiler_params=par2,
        cost_estimate=pl.CostEstimate(
            flops=2 * m * c1p * c3p, transcendentals=0,
            bytes_accessed=2 * m * c1p + 2 * m * c3p + 2 * c1p * c3p),
    )(y2, scale2, shift2, w3p)
    scale3, shift3 = _scale_shift(jnp.sum(s3, axis=(0, 1)), g3p, b3p, float(m))

    # ---- stage D: bn3 apply + residual add + relu ----------------------------
    out = pl.pallas_call(
        _bn_add_relu_kernel,
        grid=(n, nt),
        in_specs=[row_spec(c3p), bcast2(1, c3p), bcast2(1, c3p), row_spec(c3p)],
        out_specs=row_spec(c3p),
        out_shape=jax.ShapeDtypeStruct((n, hw, c3p), jnp.float32),
        compiler_params=par2,
    )(y3, scale3, shift3, x_bf)

    out = out[:, :, :cout].reshape(n, h, w, cout)
    return jnp.transpose(out, (0, 3, 1, 2))


# ---------------------------------------------------------------------------
# Pure-JAX reference (bf16 matmul inputs, f32 accumulation, training-mode
# BatchNorm with biased batch statistics; intermediates kept in f32).
# ---------------------------------------------------------------------------
def bottleneck_reference(x_nchw, params):
    (w1, g1, b1, w2, g2, b2, w3, g3, b3) = params
    bf = jnp.bfloat16

    def bn(y, g, b):
        mean = jnp.mean(y, axis=(0, 1, 2), keepdims=True)
        var = jnp.mean((y - mean) ** 2, axis=(0, 1, 2), keepdims=True)
        return (y - mean) * jax.lax.rsqrt(var + _BN_EPS) * g.reshape(1, 1, 1, -1) \
            + b.reshape(1, 1, 1, -1)

    x = jnp.transpose(x_nchw, (0, 2, 3, 1))                       # NHWC f32
    y1 = jnp.einsum("nhwc,co->nhwo", x.astype(bf), w1.astype(bf),
                    preferred_element_type=jnp.float32)
    a1 = jax.nn.relu(bn(y1, g1, b1))
    y2 = jax.lax.conv_general_dilated(
        a1.astype(bf), w2.astype(bf), window_strides=(1, 1), padding="SAME",
        dimension_numbers=("NHWC", "HWIO", "NHWC"),
        preferred_element_type=jnp.float32)
    a2 = jax.nn.relu(bn(y2, g2, b2))
    y3 = jnp.einsum("nhwc,co->nhwo", a2.astype(bf), w3.astype(bf),
                    preferred_element_type=jnp.float32)
    out = jax.nn.relu(bn(y3, g3, b3) + x)
    return jnp.transpose(out, (0, 3, 1, 2))


# ---------------------------------------------------------------------------
# Parameter construction (shapes match the nn.Module; matmul-friendly layouts)
#   w1: (inplanes, planes)        <- PyTorch (planes, inplanes, 1, 1)
#   w2: (3, 3, planes, planes)    <- PyTorch (planes, planes, 3, 3) in HWIO
#   w3: (planes, 4*planes)        <- PyTorch (4*planes, planes, 1, 1)
# ---------------------------------------------------------------------------
def make_params(key, inplanes, planes):
    k1, k2, k3 = jax.random.split(key, 3)
    w1 = 0.1 * jax.random.normal(k1, (inplanes, planes), jnp.float32)
    w2 = 0.1 * jax.random.normal(k2, (3, 3, planes, planes), jnp.float32)
    w3 = 0.1 * jax.random.normal(k3, (planes, 4 * planes), jnp.float32)
    g1 = jnp.ones((1, planes), jnp.float32)
    b1 = jnp.zeros((1, planes), jnp.float32)
    g2 = jnp.ones((1, planes), jnp.float32)
    b2 = jnp.zeros((1, planes), jnp.float32)
    g3 = jnp.ones((1, 4 * planes), jnp.float32)
    b3 = jnp.zeros((1, 4 * planes), jnp.float32)
    return (w1, g1, b1, w2, g2, b2, w3, g3, b3)


if __name__ == "__main__":
    # Identity residual (downsample=None) requires inplanes == 4*planes.
    N, H, W = 2, 16, 16
    planes = 8
    inplanes = 4 * planes            # 32

    key = jax.random.PRNGKey(0)
    kx, kparam = jax.random.split(key)
    x = jax.random.normal(kx, (N, inplanes, H, W), jnp.float32)   # NCHW
    params = make_params(kparam, inplanes, planes)

    fwd = jax.jit(bottleneck_forward)
    out = jax.block_until_ready(fwd(x, params))
    ref = jax.block_until_ready(bottleneck_reference(x, params))

    assert out.shape == (N, 4 * planes, H, W), out.shape
    # bf16 inter-stage activations + bf16 residual vs. an f32-intermediate
    # reference -> allow a slightly looser (still bug-catching) tolerance.
    err = float(jnp.max(jnp.abs(out - ref)))
    assert err < 5e-2, f"max abs err = {err}"
    print("KERNEL_OK")
</pallas_src>

<mosaic_0001>
module attributes {stable_mosaic.version = 11 : i64} {
  func.func @_conv1x1_stats_kernel(%arg0: i32, %arg1: i32, %arg2: memref<1x256x128xbf16, #tpu.memory_space<vmem>>, %arg3: memref<128x128xbf16, #tpu.memory_space<vmem>>, %arg4: memref<1x256x128xbf16, #tpu.memory_space<vmem>>, %arg5: memref<1x1x2x128xf32, #tpu.memory_space<vmem>>) attributes {dimension_semantics = [#tpu.dimension_semantics<parallel>, #tpu.dimension_semantics<parallel>], iteration_bounds = array<i64: 2, 1>, scalar_prefetch = 0 : i64, scratch_operands = 0 : i64, tpu.core_type = #tpu.core_type<tc>, window_params = [{transform_indices = @transform_0, window_bounds = array<i64: 1, 256, 128>}, {pipeline_mode = #tpu.pipeline_mode<synchronous>, transform_indices = @transform_1, window_bounds = array<i64: 128, 128>}, {transform_indices = @transform_2, window_bounds = array<i64: 1, 256, 128>}, {transform_indices = @transform_3, window_bounds = array<i64: 1, 1, 2, 128>}]} {
    %c0 = arith.constant 0 : index
    %c0_0 = arith.constant 0 : index
    %c0_1 = arith.constant 0 : index
    %0 = vector.load %arg2[%c0, %c0_0, %c0_1] : memref<1x256x128xbf16, #tpu.memory_space<vmem>>, vector<1x256x128xbf16>
    %1 = vector.shape_cast %0 : vector<1x256x128xbf16> to vector<256x128xbf16>
    %c0_2 = arith.constant 0 : index
    %c0_3 = arith.constant 0 : index
    %2 = vector.load %arg3[%c0_2, %c0_3] : memref<128x128xbf16, #tpu.memory_space<vmem>>, vector<128x128xbf16>
    %cst = arith.constant dense<0.000000e+00> : vector<256x128xf32>
    %3 = tpu.matmul %1, %2, %cst {dimension_numbers = #tpu.dot_dimension_numbers<[1], [0], [0], [1], [0, 0, 1, 1], [], []>} : vector<256x128xbf16>, vector<128x128xbf16>, vector<256x128xf32> -> vector<256x128xf32>
    %4 = arith.truncf %3 : vector<256x128xf32> to vector<256x128xbf16>
    %c0_4 = arith.constant 0 : index
    %c0_5 = arith.constant 0 : index
    %c0_6 = arith.constant 0 : index
    %5 = vector.load %arg4[%c0_4, %c0_5, %c0_6] : memref<1x256x128xbf16, #tpu.memory_space<vmem>>, vector<1x256x128xbf16>
    %6 = vector.shape_cast %5 : vector<1x256x128xbf16> to vector<256x128xbf16>
    %7 = vector.shape_cast %4 : vector<256x128xbf16> to vector<1x256x128xbf16>
    tpu.vector_store %arg4[%c0_4, %c0_5, %c0_6], %7 {strides = array<i32>} : memref<1x256x128xbf16, #tpu.memory_space<vmem>>, vector<1x256x128xbf16>,
    %cst_7 = arith.constant dense<0.000000e+00> : vector<128xf32>
    %8 = vector.multi_reduction <add>, %3, %cst_7 [0] : vector<256x128xf32> to vector<128xf32>
    %9 = vector.shape_cast %8 : vector<128xf32> to vector<1x128xf32>
    %c0_8 = arith.constant 0 : index
    %c0_9 = arith.constant 0 : index
    %c0_10 = arith.constant 0 : index
    %c0_11 = arith.constant 0 : index
    %10 = vector.load %arg5[%c0_8, %c0_9, %c0_10, %c0_11] : memref<1x1x2x128xf32, #tpu.memory_space<vmem>>, vector<1x1x1x128xf32>
    %11 = vector.shape_cast %10 : vector<1x1x1x128xf32> to vector<1x128xf32>
    %12 = vector.shape_cast %9 : vector<1x128xf32> to vector<1x1x1x128xf32>
    tpu.vector_store %arg5[%c0_8, %c0_9, %c0_10, %c0_11], %12 {strides = array<i32>} : memref<1x1x2x128xf32, #tpu.memory_space<vmem>>, vector<1x1x1x128xf32>,
    %13 = arith.mulf %3, %3 : vector<256x128xf32>
    %cst_12 = arith.constant dense<0.000000e+00> : vector<128xf32>
    %14 = vector.multi_reduction <add>, %13, %cst_12 [0] : vector<256x128xf32> to vector<128xf32>
    %15 = vector.shape_cast %14 : vector<128xf32> to vector<1x128xf32>
    %c0_13 = arith.constant 0 : index
    %c0_14 = arith.constant 0 : index
    %c1 = arith.constant 1 : index
    %c0_15 = arith.constant 0 : index
    %16 = vector.load %arg5[%c0_13, %c0_14, %c1, %c0_15] : memref<1x1x2x128xf32, #tpu.memory_space<vmem>>, vector<1x1x1x128xf32>
    %17 = vector.shape_cast %16 : vector<1x1x1x128xf32> to vector<1x128xf32>
    %18 = vector.shape_cast %15 : vector<1x128xf32> to vector<1x1x1x128xf32>
    tpu.vector_store %arg5[%c0_13, %c0_14, %c1, %c0_15], %18 {strides = array<i32>} : memref<1x1x2x128xf32, #tpu.memory_space<vmem>>, vector<1x1x1x128xf32>,
    return
  }
  func.func @transform_0(%arg0: i32, %arg1: i32) -> (i32, i32, i32) {
    %c0_i32 = arith.constant 0 : i32
    %c0_i32_0 = arith.constant 0 : i32
    return %arg0, %arg1, %c0_i32 : i32, i32, i32
  }
  func.func @transform_1(%arg0: i32, %arg1: i32) -> (i32, i32) {
    %c0_i32 = arith.constant 0 : i32
    %c0_i32_0 = arith.constant 0 : i32
    %c0_i32_1 = arith.constant 0 : i32
    return %c0_i32, %c0_i32_0 : i32, i32
  }
  func.func @transform_2(%arg0: i32, %arg1: i32) -> (i32, i32, i32) {
    %c0_i32 = arith.constant 0 : i32
    %c0_i32_0 = arith.constant 0 : i32
    return %arg0, %arg1, %c0_i32 : i32, i32, i32
  }
  func.func @transform_3(%arg0: i32, %arg1: i32) -> (i32, i32, i32, i32) {
    %c0_i32 = arith.constant 0 : i32
    %c0_i32_0 = arith.constant 0 : i32
    %c0_i32_1 = arith.constant 0 : i32
    return %arg0, %arg1, %c0_i32, %c0_i32_0 : i32, i32, i32, i32
  }
}

module attributes {stable_mosaic.version = 11 : i64} {
  func.func @_bn_relu_conv1x1_stats_kernel(%arg0: i32, %arg1: i32, %arg2: memref<1x256x128xbf16, #tpu.memory_space<vmem>>, %arg3: memref<1x128xf32, #tpu.memory_space<vmem>>, %arg4: memref<1x128xf32, #tpu.memory_space<vmem>>, %arg5: memref<128x128xbf16, #tpu.memory_space<vmem>>, %arg6: memref<1x256x128xbf16, #tpu.memory_space<vmem>>, %arg7: memref<1x1x2x128xf32, #tpu.memory_space<vmem>>) attributes {dimension_semantics = [#tpu.dimension_semantics<parallel>, #tpu.dimension_semantics<parallel>], iteration_bounds = array<i64: 2, 1>, scalar_prefetch = 0 : i64, scratch_operands = 0 : i64, tpu.core_type = #tpu.core_type<tc>, window_params = [{transform_indices = @transform_0, window_bounds = array<i64: 1, 256, 128>}, {pipeline_mode = #tpu.pipeline_mode<synchronous>, transform_indices = @transform_1, window_bounds = array<i64: 1, 128>}, {pipeline_mode = #tpu.pipeline_mode<synchronous>, transform_indices = @transform_2, window_bounds = array<i64: 1, 128>}, {pipeline_mode = #tpu.pipeline_mode<synchronous>, transform_indices = @transform_3, window_bounds = array<i64: 128, 128>}, {transform_indices = @transform_4, window_bounds = array<i64: 1, 256, 128>}, {transform_indices = @transform_5, window_bounds = array<i64: 1, 1, 2, 128>}]} {
    %c0 = arith.constant 0 : index
    %c0_0 = arith.constant 0 : index
    %c0_1 = arith.constant 0 : index
    %0 = vector.load %arg2[%c0, %c0_0, %c0_1] : memref<1x256x128xbf16, #tpu.memory_space<vmem>>, vector<1x256x128xbf16>
    %1 = vector.shape_cast %0 : vector<1x256x128xbf16> to vector<256x128xbf16>
    %2 = arith.extf %1 : vector<256x128xbf16> to vector<256x128xf32>
    %c0_2 = arith.constant 0 : index
    %c0_3 = arith.constant 0 : index
    %3 = vector.load %arg3[%c0_2, %c0_3] : memref<1x128xf32, #tpu.memory_space<vmem>>, vector<1x128xf32>
    %4 = vector.broadcast %3 : vector<1x128xf32> to vector<256x128xf32>
    %5 = arith.mulf %2, %4 : vector<256x128xf32>
    %c0_4 = arith.constant 0 : index
    %c0_5 = arith.constant 0 : index
    %6 = vector.load %arg4[%c0_4, %c0_5] : memref<1x128xf32, #tpu.memory_space<vmem>>, vector<1x128xf32>
    %7 = vector.broadcast %6 : vector<1x128xf32> to vector<256x128xf32>
    %8 = arith.addf %5, %7 : vector<256x128xf32>
    %cst = arith.constant 0.000000e+00 : f32
    %9 = vector.broadcast %cst : f32 to vector<256x128xf32>
    %10 = arith.maximumf %8, %9 : vector<256x128xf32>
    %11 = arith.truncf %10 : vector<256x128xf32> to vector<256x128xbf16>
    %c0_6 = arith.constant 0 : index
    %c0_7 = arith.constant 0 : index
    %12 = vector.load %arg5[%c0_6, %c0_7] : memref<128x128xbf16, #tpu.memory_space<vmem>>, vector<128x128xbf16>
    %cst_8 = arith.constant dense<0.000000e+00> : vector<256x128xf32>
    %13 = tpu.matmul %11, %12, %cst_8 {dimension_numbers = #tpu.dot_dimension_numbers<[1], [0], [0], [1], [0, 0, 1, 1], [], []>} : vector<256x128xbf16>, vector<128x128xbf16>, vector<256x128xf32> -> vector<256x128xf32>
    %14 = arith.truncf %13 : vector<256x128xf32> to vector<256x128xbf16>
    %c0_9 = arith.constant 0 : index
    %c0_10 = arith.constant 0 : index
    %c0_11 = arith.constant 0 : index
    %15 = vector.load %arg6[%c0_9, %c0_10, %c0_11] : memref<1x256x128xbf16, #tpu.memory_space<vmem>>, vector<1x256x128xbf16>
    %16 = vector.shape_cast %15 : vector<1x256x128xbf16> to vector<256x128xbf16>
    %17 = vector.shape_cast %14 : vector<256x128xbf16> to vector<1x256x128xbf16>
    tpu.vector_store %arg6[%c0_9, %c0_10, %c0_11], %17 {strides = array<i32>} : memref<1x256x128xbf16, #tpu.memory_space<vmem>>, vector<1x256x128xbf16>,
    %cst_12 = arith.constant dense<0.000000e+00> : vector<128xf32>
    %18 = vector.multi_reduction <add>, %13, %cst_12 [0] : vector<256x128xf32> to vector<128xf32>
    %19 = vector.shape_cast %18 : vector<128xf32> to vector<1x128xf32>
    %c0_13 = arith.constant 0 : index
    %c0_14 = arith.constant 0 : index
    %c0_15 = arith.constant 0 : index
    %c0_16 = arith.constant 0 : index
    %20 = vector.load %arg7[%c0_13, %c0_14, %c0_15, %c0_16] : memref<1x1x2x128xf32, #tpu.memory_space<vmem>>, vector<1x1x1x128xf32>
    %21 = vector.shape_cast %20 : vector<1x1x1x128xf32> to vector<1x128xf32>
    %22 = vector.shape_cast %19 : vector<1x128xf32> to vector<1x1x1x128xf32>
    tpu.vector_store %arg7[%c0_13, %c0_14, %c0_15, %c0_16], %22 {strides = array<i32>} : memref<1x1x2x128xf32, #tpu.memory_space<vmem>>, vector<1x1x1x128xf32>,
    %23 = arith.mulf %13, %13 : vector<256x128xf32>
    %cst_17 = arith.constant dense<0.000000e+00> : vector<128xf32>
    %24 = vector.multi_reduction <add>, %23, %cst_17 [0] : vector<256x128xf32> to vector<128xf32>
    %25 = vector.shape_cast %24 : vector<128xf32> to vector<1x128xf32>
    %c0_18 = arith.constant 0 : index
    %c0_19 = arith.constant 0 : index
    %c1 = arith.constant 1 : index
    %c0_20 = arith.constant 0 : index
    %26 = vector.load %arg7[%c0_18, %c0_19, %c1, %c0_20] : memref<1x1x2x128xf32, #tpu.memory_space<vmem>>, vector<1x1x1x128xf32>
    %27 = vector.shape_cast %26 : vector<1x1x1x128xf32> to vector<1x128xf32>
    %28 = vector.shape_cast %25 : vector<1x128xf32> to vector<1x1x1x128xf32>
    tpu.vector_store %arg7[%c0_18, %c0_19, %c1, %c0_20], %28 {strides = array<i32>} : memref<1x1x2x128xf32, #tpu.memory_space<vmem>>, vector<1x1x1x128xf32>,
    return
  }
  func.func @transform_0(%arg0: i32, %arg1: i32) -> (i32, i32, i32) {
    %c0_i32 = arith.constant 0 : i32
    %c0_i32_0 = arith.constant 0 : i32
    return %arg0, %arg1, %c0_i32 : i32, i32, i32
  }
  func.func @transform_1(%arg0: i32, %arg1: i32) -> (i32, i32) {
    %c0_i32 = arith.constant 0 : i32
    %c0_i32_0 = arith.constant 0 : i32
    %c0_i32_1 = arith.constant 0 : i32
    return %c0_i32, %c0_i32_0 : i32, i32
  }
  func.func @transform_2(%arg0: i32, %arg1: i32) -> (i32, i32) {
    %c0_i32 = arith.constant 0 : i32
    %c0_i32_0 = arith.constant 0 : i32
    %c0_i32_1 = arith.constant 0 : i32
    return %c0_i32, %c0_i32_0 : i32, i32
  }
  func.func @transform_3(%arg0: i32, %arg1: i32) -> (i32, i32) {
    %c0_i32 = arith.constant 0 : i32
    %c0_i32_0 = arith.constant 0 : i32
    %c0_i32_1 = arith.constant 0 : i32
    return %c0_i32, %c0_i32_0 : i32, i32
  }
  func.func @transform_4(%arg0: i32, %arg1: i32) -> (i32, i32, i32) {
    %c0_i32 = arith.constant 0 : i32
    %c0_i32_0 = arith.constant 0 : i32
    return %arg0, %arg1, %c0_i32 : i32, i32, i32
  }
  func.func @transform_5(%arg0: i32, %arg1: i32) -> (i32, i32, i32, i32) {
    %c0_i32 = arith.constant 0 : i32
    %c0_i32_0 = arith.constant 0 : i32
    %c0_i32_1 = arith.constant 0 : i32
    return %arg0, %arg1, %c0_i32, %c0_i32_0 : i32, i32, i32, i32
  }
}

module attributes {stable_mosaic.version = 11 : i64} {
  func.func @kernel(%arg0: i32, %arg1: memref<1x256x128xbf16, #tpu.memory_space<vmem>>, %arg2: memref<1x128xf32, #tpu.memory_space<vmem>>, %arg3: memref<1x128xf32, #tpu.memory_space<vmem>>, %arg4: memref<256x1xbf16, #tpu.memory_space<vmem>>, %arg5: memref<256x1xbf16, #tpu.memory_space<vmem>>, %arg6: memref<9x128x128xbf16, #tpu.memory_space<vmem>>, %arg7: memref<1x256x128xbf16, #tpu.memory_space<vmem>>, %arg8: memref<1x2x128xf32, #tpu.memory_space<vmem>>, %arg9: memref<3x288x128xbf16, #tpu.memory_space<vmem>>, %arg10: memref<256x128xf32, #tpu.memory_space<vmem>>) attributes {dimension_semantics = [#tpu.dimension_semantics<parallel>], iteration_bounds = array<i64: 2>, scalar_prefetch = 0 : i64, scratch_operands = 2 : i64, tpu.core_type = #tpu.core_type<tc>, window_params = [{transform_indices = @transform_0, window_bounds = array<i64: 1, 256, 128>}, {pipeline_mode = #tpu.pipeline_mode<synchronous>, transform_indices = @transform_1, window_bounds = array<i64: 1, 128>}, {pipeline_mode = #tpu.pipeline_mode<synchronous>, transform_indices = @transform_2, window_bounds = array<i64: 1, 128>}, {pipeline_mode = #tpu.pipeline_mode<synchronous>, transform_indices = @transform_3, window_bounds = array<i64: 256, 1>}, {pipeline_mode = #tpu.pipeline_mode<synchronous>, transform_indices = @transform_4, window_bounds = array<i64: 256, 1>}, {pipeline_mode = #tpu.pipeline_mode<synchronous>, transform_indices = @transform_5, window_bounds = array<i64: 9, 128, 128>}, {transform_indices = @transform_6, window_bounds = array<i64: 1, 256, 128>}, {transform_indices = @transform_7, window_bounds = array<i64: 1, 2, 128>}]} {
    %c0 = arith.constant 0 : index
    %c0_0 = arith.constant 0 : index
    %c0_1 = arith.constant 0 : index
    %0 = vector.load %arg1[%c0, %c0_0, %c0_1] : memref<1x256x128xbf16, #tpu.memory_space<vmem>>, vector<1x256x128xbf16>
    %1 = vector.shape_cast %0 : vector<1x256x128xbf16> to vector<256x128xbf16>
    %2 = arith.extf %1 : vector<256x128xbf16> to vector<256x128xf32>
    %c0_2 = arith.constant 0 : index
    %c0_3 = arith.constant 0 : index
    %3 = vector.load %arg2[%c0_2, %c0_3] : memref<1x128xf32, #tpu.memory_space<vmem>>, vector<1x128xf32>
    %4 = vector.broadcast %3 : vector<1x128xf32> to vector<256x128xf32>
    %5 = arith.mulf %2, %4 : vector<256x128xf32>
    %c0_4 = arith.constant 0 : index
    %c0_5 = arith.constant 0 : index
    %6 = vector.load %arg3[%c0_4, %c0_5] : memref<1x128xf32, #tpu.memory_space<vmem>>, vector<1x128xf32>
    %7 = vector.broadcast %6 : vector<1x128xf32> to vector<256x128xf32>
    %8 = arith.addf %5, %7 : vector<256x128xf32>
    %cst = arith.constant 0.000000e+00 : f32
    %9 = vector.broadcast %cst : f32 to vector<256x128xf32>
    %10 = arith.maximumf %8, %9 : vector<256x128xf32>
    %11 = arith.truncf %10 : vector<256x128xf32> to vector<256x128xbf16>
    %c0_6 = arith.constant 0 : index
    %c0_7 = arith.constant 0 : index
    %12 = vector.load %arg4[%c0_6, %c0_7] : memref<256x1xbf16, #tpu.memory_space<vmem>>, vector<256x1xbf16>
    %13 = vector.broadcast %12 : vector<256x1xbf16> to vector<256x128xbf16>
    %14 = arith.mulf %11, %13 : vector<256x128xbf16>
    %cst_8 = arith.constant 0.000000e+00 : bf16
    %15 = vector.broadcast %cst_8 : bf16 to vector<17x128xbf16>
    %c0_9 = arith.constant 0 : index
    %c0_10 = arith.constant 0 : index
    %c0_11 = arith.constant 0 : index
    %16 = vector.load %arg9[%c0_9, %c0_10, %c0_11] : memref<3x288x128xbf16, #tpu.memory_space<vmem>>, vector<1x17x128xbf16>
    %17 = vector.shape_cast %16 : vector<1x17x128xbf16> to vector<17x128xbf16>
    %18 = vector.shape_cast %15 : vector<17x128xbf16> to vector<1x17x128xbf16>
    tpu.vector_store %arg9[%c0_9, %c0_10, %c0_11], %18 {strides = array<i32>} : memref<3x288x128xbf16, #tpu.memory_space<vmem>>, vector<1x17x128xbf16>,
    %c0_12 = arith.constant 0 : index
    %c17 = arith.constant 17 : index
    %c0_13 = arith.constant 0 : index
    %19 = vector.load %arg9[%c0_12, %c17, %c0_13] : memref<3x288x128xbf16, #tpu.memory_space<vmem>>, vector<1x256x128xbf16>
    %20 = vector.shape_cast %19 : vector<1x256x128xbf16> to vector<256x128xbf16>
    %21 = vector.shape_cast %14 : vector<256x128xbf16> to vector<1x256x128xbf16>
    tpu.vector_store %arg9[%c0_12, %c17, %c0_13], %21 {strides = array<i32>} : memref<3x288x128xbf16, #tpu.memory_space<vmem>>, vector<1x256x128xbf16>,
    %cst_14 = arith.constant 0.000000e+00 : bf16
    %22 = vector.broadcast %cst_14 : bf16 to vector<15x128xbf16>
    %c0_15 = arith.constant 0 : index
    %c273 = arith.constant 273 : index
    %c0_16 = arith.constant 0 : index
    %23 = vector.load %arg9[%c0_15, %c273, %c0_16] : memref<3x288x128xbf16, #tpu.memory_space<vmem>>, vector<1x15x128xbf16>
    %24 = vector.shape_cast %23 : vector<1x15x128xbf16> to vector<15x128xbf16>
    %25 = vector.shape_cast %22 : vector<15x128xbf16> to vector<1x15x128xbf16>
    tpu.vector_store %arg9[%c0_15, %c273, %c0_16], %25 {strides = array<i32>} : memref<3x288x128xbf16, #tpu.memory_space<vmem>>, vector<1x15x128xbf16>,
    %cst_17 = arith.constant 0.000000e+00 : bf16
    %26 = vector.broadcast %cst_17 : bf16 to vector<16x128xbf16>
    %c1 = arith.constant 1 : index
    %c0_18 = arith.constant 0 : index
    %c0_19 = arith.constant 0 : index
    %27 = vector.load %arg9[%c1, %c0_18, %c0_19] : memref<3x288x128xbf16, #tpu.memory_space<vmem>>, vector<1x16x128xbf16>
    %28 = vector.shape_cast %27 : vector<1x16x128xbf16> to vector<16x128xbf16>
    %29 = vector.shape_cast %26 : vector<16x128xbf16> to vector<1x16x128xbf16>
    tpu.vector_store %arg9[%c1, %c0_18, %c0_19], %29 {strides = array<i32>} : memref<3x288x128xbf16, #tpu.memory_space<vmem>>, vector<1x16x128xbf16>,
    %c1_20 = arith.constant 1 : index
    %c16 = arith.constant 16 : index
    %c0_21 = arith.constant 0 : index
    %30 = vector.load %arg9[%c1_20, %c16, %c0_21] : memref<3x288x128xbf16, #tpu.memory_space<vmem>>, vector<1x256x128xbf16>
    %31 = vector.shape_cast %30 : vector<1x256x128xbf16> to vector<256x128xbf16>
    %32 = vector.shape_cast %11 : vector<256x128xbf16> to vector<1x256x128xbf16>
    tpu.vector_store %arg9[%c1_20, %c16, %c0_21], %32 {strides = array<i32>} : memref<3x288x128xbf16, #tpu.memory_space<vmem>>, vector<1x256x128xbf16>,
    %cst_22 = arith.constant 0.000000e+00 : bf16
    %33 = vector.broadcast %cst_22 : bf16 to vector<16x128xbf16>
    %c1_23 = arith.constant 1 : index
    %c272 = arith.constant 272 : index
    %c0_24 = arith.constant 0 : index
    %34 = vector.load %arg9[%c1_23, %c272, %c0_24] : memref<3x288x128xbf16, #tpu.memory_space<vmem>>, vector<1x16x128xbf16>
    %35 = vector.shape_cast %34 : vector<1x16x128xbf16> to vector<16x128xbf16>
    %36 = vector.shape_cast %33 : vector<16x128xbf16> to vector<1x16x128xbf16>
    tpu.vector_store %arg9[%c1_23, %c272, %c0_24], %36 {strides = array<i32>} : memref<3x288x128xbf16, #tpu.memory_space<vmem>>, vector<1x16x128xbf16>,
    %c0_25 = arith.constant 0 : index
    %c0_26 = arith.constant 0 : index
    %37 = vector.load %arg5[%c0_25, %c0_26] : memref<256x1xbf16, #tpu.memory_space<vmem>>, vector<256x1xbf16>
    %38 = vector.broadcast %37 : vector<256x1xbf16> to vector<256x128xbf16>
    %39 = arith.mulf %11, %38 : vector<256x128xbf16>
    %cst_27 = arith.constant 0.000000e+00 : bf16
    %40 = vector.broadcast %cst_27 : bf16 to vector<15x128xbf16>
    %c2 = arith.constant 2 : index
    %c0_28 = arith.constant 0 : index
    %c0_29 = arith.constant 0 : index
    %41 = vector.load %arg9[%c2, %c0_28, %c0_29] : memref<3x288x128xbf16, #tpu.memory_space<vmem>>, vector<1x15x128xbf16>
    %42 = vector.shape_cast %41 : vector<1x15x128xbf16> to vector<15x128xbf16>
    %43 = vector.shape_cast %40 : vector<15x128xbf16> to vector<1x15x128xbf16>
    tpu.vector_store %arg9[%c2, %c0_28, %c0_29], %43 {strides = array<i32>} : memref<3x288x128xbf16, #tpu.memory_space<vmem>>, vector<1x15x128xbf16>,
    %c2_30 = arith.constant 2 : index
    %c15 = arith.constant 15 : index
    %c0_31 = arith.constant 0 : index
    %44 = vector.load %arg9[%c2_30, %c15, %c0_31] : memref<3x288x128xbf16, #tpu.memory_space<vmem>>, vector<1x256x128xbf16>
    %45 = vector.shape_cast %44 : vector<1x256x128xbf16> to vector<256x128xbf16>
    %46 = vector.shape_cast %39 : vector<256x128xbf16> to vector<1x256x128xbf16>
    tpu.vector_store %arg9[%c2_30, %c15, %c0_31], %46 {strides = array<i32>} : memref<3x288x128xbf16, #tpu.memory_space<vmem>>, vector<1x256x128xbf16>,
    %cst_32 = arith.constant 0.000000e+00 : bf16
    %47 = vector.broadcast %cst_32 : bf16 to vector<17x128xbf16>
    %c2_33 = arith.constant 2 : index
    %c271 = arith.constant 271 : index
    %c0_34 = arith.constant 0 : index
    %48 = vector.load %arg9[%c2_33, %c271, %c0_34] : memref<3x288x128xbf16, #tpu.memory_space<vmem>>, vector<1x17x128xbf16>
    %49 = vector.shape_cast %48 : vector<1x17x128xbf16> to vector<17x128xbf16>
    %50 = vector.shape_cast %47 : vector<17x128xbf16> to vector<1x17x128xbf16>
    tpu.vector_store %arg9[%c2_33, %c271, %c0_34], %50 {strides = array<i32>} : memref<3x288x128xbf16, #tpu.memory_space<vmem>>, vector<1x17x128xbf16>,
    %c0_35 = arith.constant 0 : index
    %c0_36 = arith.constant 0 : index
    %c0_37 = arith.constant 0 : index
    %51 = vector.load %arg9[%c0_35, %c0_36, %c0_37] : memref<3x288x128xbf16, #tpu.memory_space<vmem>>, vector<1x256x128xbf16>
    %52 = vector.shape_cast %51 : vector<1x256x128xbf16> to vector<256x128xbf16>
    %c0_38 = arith.constant 0 : index
    %c0_39 = arith.constant 0 : index
    %c0_40 = arith.constant 0 : index
    %53 = vector.load %arg6[%c0_38, %c0_39, %c0_40] : memref<9x128x128xbf16, #tpu.memory_space<vmem>>, vector<1x128x128xbf16>
    %54 = vector.shape_cast %53 : vector<1x128x128xbf16> to vector<128x128xbf16>
    %cst_41 = arith.constant dense<0.000000e+00> : vector<256x128xf32>
    %55 = tpu.matmul %52, %54, %cst_41 {dimension_numbers = #tpu.dot_dimension_numbers<[1], [0], [0], [1], [0, 0, 1, 1], [], []>} : vector<256x128xbf16>, vector<128x128xbf16>, vector<256x128xf32> -> vector<256x128xf32>
    %c0_42 = arith.constant 0 : index
    %c0_43 = arith.constant 0 : index
    %56 = vector.load %arg10[%c0_42, %c0_43] : memref<256x128xf32, #tpu.memory_space<vmem>>, vector<256x128xf32>
    tpu.vector_store %arg10[%c0_42, %c0_43], %55 {strides = array<i32>} : memref<256x128xf32, #tpu.memory_space<vmem>>, vector<256x128xf32>,
    %c1_44 = arith.constant 1 : index
    %c0_45 = arith.constant 0 : index
    %c0_46 = arith.constant 0 : index
    %57 = vector.load %arg9[%c1_44, %c0_45, %c0_46] : memref<3x288x128xbf16, #tpu.memory_space<vmem>>, vector<1x256x128xbf16>
    %58 = vector.shape_cast %57 : vector<1x256x128xbf16> to vector<256x128xbf16>
    %c1_47 = arith.constant 1 : index
    %c0_48 = arith.constant 0 : index
    %c0_49 = arith.constant 0 : index
    %59 = vector.load %arg6[%c1_47, %c0_48, %c0_49] : memref<9x128x128xbf16, #tpu.memory_space<vmem>>, vector<1x128x128xbf16>
    %60 = vector.shape_cast %59 : vector<1x128x128xbf16> to vector<128x128xbf16>
    %cst_50 = arith.constant dense<0.000000e+00> : vector<256x128xf32>
    %61 = tpu.matmul %58, %60, %cst_50 {dimension_numbers = #tpu.dot_dimension_numbers<[1], [0], [0], [1], [0, 0, 1, 1], [], []>} : vector<256x128xbf16>, vector<128x128xbf16>, vector<256x128xf32> -> vector<256x128xf32>
    %c0_51 = arith.constant 0 : index
    %c0_52 = arith.constant 0 : index
    %62 = vector.load %arg10[%c0_51, %c0_52] : memref<256x128xf32, #tpu.memory_space<vmem>>, vector<256x128xf32>
    %63 = arith.addf %62, %61 : vector<256x128xf32>
    %c0_53 = arith.constant 0 : index
    %c0_54 = arith.constant 0 : index
    %64 = vector.load %arg10[%c0_53, %c0_54] : memref<256x128xf32, #tpu.memory_space<vmem>>, vector<256x128xf32>
    tpu.vector_store %arg10[%c0_53, %c0_54], %63 {strides = array<i32>} : memref<256x128xf32, #tpu.memory_space<vmem>>, vector<256x128xf32>,
    %c2_55 = arith.constant 2 : index
    %c0_56 = arith.constant 0 : index
    %c0_57 = arith.constant 0 : index
    %65 = vector.load %arg9[%c2_55, %c0_56, %c0_57] : memref<3x288x128xbf16, #tpu.memory_space<vmem>>, vector<1x256x128xbf16>
    %66 = vector.shape_cast %65 : vector<1x256x128xbf16> to vector<256x128xbf16>
    %c2_58 = arith.constant 2 : index
    %c0_59 = arith.constant 0 : index
    %c0_60 = arith.constant 0 : index
    %67 = vector.load %arg6[%c2_58, %c0_59, %c0_60] : memref<9x128x128xbf16, #tpu.memory_space<vmem>>, vector<1x128x128xbf16>
    %68 = vector.shape_cast %67 : vector<1x128x128xbf16> to vector<128x128xbf16>
    %cst_61 = arith.constant dense<0.000000e+00> : vector<256x128xf32>
    %69 = tpu.matmul %66, %68, %cst_61 {dimension_numbers = #tpu.dot_dimension_numbers<[1], [0], [0], [1], [0, 0, 1, 1], [], []>} : vector<256x128xbf16>, vector<128x128xbf16>, vector<256x128xf32> -> vector<256x128xf32>
    %c0_62 = arith.constant 0 : index
    %c0_63 = arith.constant 0 : index
    %70 = vector.load %arg10[%c0_62, %c0_63] : memref<256x128xf32, #tpu.memory_space<vmem>>, vector<256x128xf32>
    %71 = arith.addf %70, %69 : vector<256x128xf32>
    %c0_64 = arith.constant 0 : index
    %c0_65 = arith.constant 0 : index
    %72 = vector.load %arg10[%c0_64, %c0_65] : memref<256x128xf32, #tpu.memory_space<vmem>>, vector<256x128xf32>
    tpu.vector_store %arg10[%c0_64, %c0_65], %71 {strides = array<i32>} : memref<256x128xf32, #tpu.memory_space<vmem>>, vector<256x128xf32>,
    %c0_66 = arith.constant 0 : index
    %c16_67 = arith.constant 16 : index
    %c0_68 = arith.constant 0 : index
    %73 = vector.load %arg9[%c0_66, %c16_67, %c0_68] : memref<3x288x128xbf16, #tpu.memory_space<vmem>>, vector<1x256x128xbf16>
    %74 = vector.shape_cast %73 : vector<1x256x128xbf16> to vector<256x128xbf16>
    %c3 = arith.constant 3 : index
    %c0_69 = arith.constant 0 : index
    %c0_70 = arith.constant 0 : index
    %75 = vector.load %arg6[%c3, %c0_69, %c0_70] : memref<9x128x128xbf16, #tpu.memory_space<vmem>>, vector<1x128x128xbf16>
    %76 = vector.shape_cast %75 : vector<1x128x128xbf16> to vector<128x128xbf16>
    %cst_71 = arith.constant dense<0.000000e+00> : vector<256x128xf32>
    %77 = tpu.matmul %74, %76, %cst_71 {dimension_numbers = #tpu.dot_dimension_numbers<[1], [0], [0], [1], [0, 0, 1, 1], [], []>} : vector<256x128xbf16>, vector<128x128xbf16>, vector<256x128xf32> -> vector<256x128xf32>
    %c0_72 = arith.constant 0 : index
    %c0_73 = arith.constant 0 : index
    %78 = vector.load %arg10[%c0_72, %c0_73] : memref<256x128xf32, #tpu.memory_space<vmem>>, vector<256x128xf32>
    %79 = arith.addf %78, %77 : vector<256x128xf32>
    %c0_74 = arith.constant 0 : index
    %c0_75 = arith.constant 0 : index
    %80 = vector.load %arg10[%c0_74, %c0_75] : memref<256x128xf32, #tpu.memory_space<vmem>>, vector<256x128xf32>
    tpu.vector_store %arg10[%c0_74, %c0_75], %79 {strides = array<i32>} : memref<256x128xf32, #tpu.memory_space<vmem>>, vector<256x128xf32>,
    %c1_76 = arith.constant 1 : index
    %c16_77 = arith.constant 16 : index
    %c0_78 = arith.constant 0 : index
    %81 = vector.load %arg9[%c1_76, %c16_77, %c0_78] : memref<3x288x128xbf16, #tpu.memory_space<vmem>>, vector<1x256x128xbf16>
    %82 = vector.shape_cast %81 : vector<1x256x128xbf16> to vector<256x128xbf16>
    %c4 = arith.constant 4 : index
    %c0_79 = arith.constant 0 : index
    %c0_80 = arith.constant 0 : index
    %83 = vector.load %arg6[%c4, %c0_79, %c0_80] : memref<9x128x128xbf16, #tpu.memory_space<vmem>>, vector<1x128x128xbf16>
    %84 = vector.shape_cast %83 : vector<1x128x128xbf16> to vector<128x128xbf16>
    %cst_81 = arith.constant dense<0.000000e+00> : vector<256x128xf32>
    %85 = tpu.matmul %82, %84, %cst_81 {dimension_numbers = #tpu.dot_dimension_numbers<[1], [0], [0], [1], [0, 0, 1, 1], [], []>} : vector<256x128xbf16>, vector<128x128xbf16>, vector<256x128xf32> -> vector<256x128xf32>
    %c0_82 = arith.constant 0 : index
    %c0_83 = arith.constant 0 : index
    %86 = vector.load %arg10[%c0_82, %c0_83] : memref<256x128xf32, #tpu.memory_space<vmem>>, vector<256x128xf32>
    %87 = arith.addf %86, %85 : vector<256x128xf32>
    %c0_84 = arith.constant 0 : index
    %c0_85 = arith.constant 0 : index
    %88 = vector.load %arg10[%c0_84, %c0_85] : memref<256x128xf32, #tpu.memory_space<vmem>>, vector<256x128xf32>
    tpu.vector_store %arg10[%c0_84, %c0_85], %87 {strides = array<i32>} : memref<256x128xf32, #tpu.memory_space<vmem>>, vector<256x128xf32>,
    %c2_86 = arith.constant 2 : index
    %c16_87 = arith.constant 16 : index
    %c0_88 = arith.constant 0 : index
    %89 = vector.load %arg9[%c2_86, %c16_87, %c0_88] : memref<3x288x128xbf16, #tpu.memory_space<vmem>>, vector<1x256x128xbf16>
    %90 = vector.shape_cast %89 : vector<1x256x128xbf16> to vector<256x128xbf16>
    %c5 = arith.constant 5 : index
    %c0_89 = arith.constant 0 : index
    %c0_90 = arith.constant 0 : index
    %91 = vector.load %arg6[%c5, %c0_89, %c0_90] : memref<9x128x128xbf16, #tpu.memory_space<vmem>>, vector<1x128x128xbf16>
    %92 = vector.shape_cast %91 : vector<1x128x128xbf16> to vector<128x128xbf16>
    %cst_91 = arith.constant dense<0.000000e+00> : vector<256x128xf32>
    %93 = tpu.matmul %90, %92, %cst_91 {dimension_numbers = #tpu.dot_dimension_numbers<[1], [0], [0], [1], [0, 0, 1, 1], [], []>} : vector<256x128xbf16>, vector<128x128xbf16>, vector<256x128xf32> -> vector<256x128xf32>
    %c0_92 = arith.constant 0 : index
    %c0_93 = arith.constant 0 : index
    %94 = vector.load %arg10[%c0_92, %c0_93] : memref<256x128xf32, #tpu.memory_space<vmem>>, vector<256x128xf32>
    %95 = arith.addf %94, %93 : vector<256x128xf32>
    %c0_94 = arith.constant 0 : index
    %c0_95 = arith.constant 0 : index
    %96 = vector.load %arg10[%c0_94, %c0_95] : memref<256x128xf32, #tpu.memory_space<vmem>>, vector<256x128xf32>
    tpu.vector_store %arg10[%c0_94, %c0_95], %95 {strides = array<i32>} : memref<256x128xf32, #tpu.memory_space<vmem>>, vector<256x128xf32>,
    %c0_96 = arith.constant 0 : index
    %c32 = arith.constant 32 : index
    %c0_97 = arith.constant 0 : index
    %97 = vector.load %arg9[%c0_96, %c32, %c0_97] : memref<3x288x128xbf16, #tpu.memory_space<vmem>>, vector<1x256x128xbf16>
    %98 = vector.shape_cast %97 : vector<1x256x128xbf16> to vector<256x128xbf16>
    %c6 = arith.constant 6 : index
    %c0_98 = arith.constant 0 : index
    %c0_99 = arith.constant 0 : index
    %99 = vector.load %arg6[%c6, %c0_98, %c0_99] : memref<9x128x128xbf16, #tpu.memory_space<vmem>>, vector<1x128x128xbf16>
    %100 = vector.shape_cast %99 : vector<1x128x128xbf16> to vector<128x128xbf16>
    %cst_100 = arith.constant dense<0.000000e+00> : vector<256x128xf32>
    %101 = tpu.matmul %98, %100, %cst_100 {dimension_numbers = #tpu.dot_dimension_numbers<[1], [0], [0], [1], [0, 0, 1, 1], [], []>} : vector<256x128xbf16>, vector<128x128xbf16>, vector<256x128xf32> -> vector<256x128xf32>
    %c0_101 = arith.constant 0 : index
    %c0_102 = arith.constant 0 : index
    %102 = vector.load %arg10[%c0_101, %c0_102] : memref<256x128xf32, #tpu.memory_space<vmem>>, vector<256x128xf32>
    %103 = arith.addf %102, %101 : vector<256x128xf32>
    %c0_103 = arith.constant 0 : index
    %c0_104 = arith.constant 0 : index
    %104 = vector.load %arg10[%c0_103, %c0_104] : memref<256x128xf32, #tpu.memory_space<vmem>>, vector<256x128xf32>
    tpu.vector_store %arg10[%c0_103, %c0_104], %103 {strides = array<i32>} : memref<256x128xf32, #tpu.memory_space<vmem>>, vector<256x128xf32>,
    %c1_105 = arith.constant 1 : index
    %c32_106 = arith.constant 32 : index
    %c0_107 = arith.constant 0 : index
    %105 = vector.load %arg9[%c1_105, %c32_106, %c0_107] : memref<3x288x128xbf16, #tpu.memory_space<vmem>>, vector<1x256x128xbf16>
    %106 = vector.shape_cast %105 : vector<1x256x128xbf16> to vector<256x128xbf16>
    %c7 = arith.constant 7 : index
    %c0_108 = arith.constant 0 : index
    %c0_109 = arith.constant 0 : index
    %107 = vector.load %arg6[%c7, %c0_108, %c0_109] : memref<9x128x128xbf16, #tpu.memory_space<vmem>>, vector<1x128x128xbf16>
    %108 = vector.shape_cast %107 : vector<1x128x128xbf16> to vector<128x128xbf16>
    %cst_110 = arith.constant dense<0.000000e+00> : vector<256x128xf32>
    %109 = tpu.matmul %106, %108, %cst_110 {dimension_numbers = #tpu.dot_dimension_numbers<[1], [0], [0], [1], [0, 0, 1, 1], [], []>} : vector<256x128xbf16>, vector<128x128xbf16>, vector<256x128xf32> -> vector<256x128xf32>
    %c0_111 = arith.constant 0 : index
    %c0_112 = arith.constant 0 : index
    %110 = vector.load %arg10[%c0_111, %c0_112] : memref<256x128xf32, #tpu.memory_space<vmem>>, vector<256x128xf32>
    %111 = arith.addf %110, %109 : vector<256x128xf32>
    %c0_113 = arith.constant 0 : index
    %c0_114 = arith.constant 0 : index
    %112 = vector.load %arg10[%c0_113, %c0_114] : memref<256x128xf32, #tpu.memory_space<vmem>>, vector<256x128xf32>
    tpu.vector_store %arg10[%c0_113, %c0_114], %111 {strides = array<i32>} : memref<256x128xf32, #tpu.memory_space<vmem>>, vector<256x128xf32>,
    %c2_115 = arith.constant 2 : index
    %c32_116 = arith.constant 32 : index
    %c0_117 = arith.constant 0 : index
    %113 = vector.load %arg9[%c2_115, %c32_116, %c0_117] : memref<3x288x128xbf16, #tpu.memory_space<vmem>>, vector<1x256x128xbf16>
    %114 = vector.shape_cast %113 : vector<1x256x128xbf16> to vector<256x128xbf16>
    %c8 = arith.constant 8 : index
    %c0_118 = arith.constant 0 : index
    %c0_119 = arith.constant 0 : index
    %115 = vector.load %arg6[%c8, %c0_118, %c0_119] : memref<9x128x128xbf16, #tpu.memory_space<vmem>>, vector<1x128x128xbf16>
    %116 = vector.shape_cast %115 : vector<1x128x128xbf16> to vector<128x128xbf16>
    %cst_120 = arith.constant dense<0.000000e+00> : vector<256x128xf32>
    %117 = tpu.matmul %114, %116, %cst_120 {dimension_numbers = #tpu.dot_dimension_numbers<[1], [0], [0], [1], [0, 0, 1, 1], [], []>} : vector<256x128xbf16>, vector<128x128xbf16>, vector<256x128xf32> -> vector<256x128xf32>
    %c0_121 = arith.constant 0 : index
    %c0_122 = arith.constant 0 : index
    %118 = vector.load %arg10[%c0_121, %c0_122] : memref<256x128xf32, #tpu.memory_space<vmem>>, vector<256x128xf32>
    %119 = arith.addf %118, %117 : vector<256x128xf32>
    %c0_123 = arith.constant 0 : index
    %c0_124 = arith.constant 0 : index
    %120 = vector.load %arg10[%c0_123, %c0_124] : memref<256x128xf32, #tpu.memory_space<vmem>>, vector<256x128xf32>
    tpu.vector_store %arg10[%c0_123, %c0_124], %119 {strides = array<i32>} : memref<256x128xf32, #tpu.memory_space<vmem>>, vector<256x128xf32>,
    %c0_125 = arith.constant 0 : index
    %c0_126 = arith.constant 0 : index
    %121 = vector.load %arg10[%c0_125, %c0_126] : memref<256x128xf32, #tpu.memory_space<vmem>>, vector<256x128xf32>
    %122 = arith.truncf %121 : vector<256x128xf32> to vector<256x128xbf16>
    %c0_127 = arith.constant 0 : index
    %c0_128 = arith.constant 0 : index
    %c0_129 = arith.constant 0 : index
    %123 = vector.load %arg7[%c0_127, %c0_128, %c0_129] : memref<1x256x128xbf16, #tpu.memory_space<vmem>>, vector<1x256x128xbf16>
    %124 = vector.shape_cast %123 : vector<1x256x128xbf16> to vector<256x128xbf16>
    %125 = vector.shape_cast %122 : vector<256x128xbf16> to vector<1x256x128xbf16>
    tpu.vector_store %arg7[%c0_127, %c0_128, %c0_129], %125 {strides = array<i32>} : memref<1x256x128xbf16, #tpu.memory_space<vmem>>, vector<1x256x128xbf16>,
    %cst_130 = arith.constant dense<0.000000e+00> : vector<128xf32>
    %126 = vector.multi_reduction <add>, %121, %cst_130 [0] : vector<256x128xf32> to vector<128xf32>
    %127 = vector.shape_cast %126 : vector<128xf32> to vector<1x128xf32>
    %c0_131 = arith.constant 0 : index
    %c0_132 = arith.constant 0 : index
    %c0_133 = arith.constant 0 : index
    %128 = vector.load %arg8[%c0_131, %c0_132, %c0_133] : memref<1x2x128xf32, #tpu.memory_space<vmem>>, vector<1x1x128xf32>
    %129 = vector.shape_cast %128 : vector<1x1x128xf32> to vector<1x128xf32>
    %130 = vector.shape_cast %127 : vector<1x128xf32> to vector<1x1x128xf32>
    tpu.vector_store %arg8[%c0_131, %c0_132, %c0_133], %130 {strides = array<i32>} : memref<1x2x128xf32, #tpu.memory_space<vmem>>, vector<1x1x128xf32>,
    %131 = arith.mulf %121, %121 : vector<256x128xf32>
    %cst_134 = arith.constant dense<0.000000e+00> : vector<128xf32>
    %132 = vector.multi_reduction <add>, %131, %cst_134 [0] : vector<256x128xf32> to vector<128xf32>
    %133 = vector.shape_cast %132 : vector<128xf32> to vector<1x128xf32>
    %c0_135 = arith.constant 0 : index
    %c1_136 = arith.constant 1 : index
    %c0_137 = arith.constant 0 : index
    %134 = vector.load %arg8[%c0_135, %c1_136, %c0_137] : memref<1x2x128xf32, #tpu.memory_space<vmem>>, vector<1x1x128xf32>
    %135 = vector.shape_cast %134 : vector<1x1x128xf32> to vector<1x128xf32>
    %136 = vector.shape_cast %133 : vector<1x128xf32> to vector<1x1x128xf32>
    tpu.vector_store %arg8[%c0_135, %c1_136, %c0_137], %136 {strides = array<i32>} : memref<1x2x128xf32, #tpu.memory_space<vmem>>, vector<1x1x128xf32>,
    return
  }
  func.func @transform_0(%arg0: i32) -> (i32, i32, i32) {
    %c0_i32 = arith.constant 0 : i32
    %c0_i32_0 = arith.constant 0 : i32
    %c0_i32_1 = arith.constant 0 : i32
    return %arg0, %c0_i32, %c0_i32_0 : i32, i32, i32
  }
  func.func @transform_1(%arg0: i32) -> (i32, i32) {
    %c0_i32 = arith.constant 0 : i32
    %c0_i32_0 = arith.constant 0 : i32
    %c0_i32_1 = arith.constant 0 : i32
    return %c0_i32, %c0_i32_0 : i32, i32
  }
  func.func @transform_2(%arg0: i32) -> (i32, i32) {
    %c0_i32 = arith.constant 0 : i32
    %c0_i32_0 = arith.constant 0 : i32
    %c0_i32_1 = arith.constant 0 : i32
    return %c0_i32, %c0_i32_0 : i32, i32
  }
  func.func @transform_3(%arg0: i32) -> (i32, i32) {
    %c0_i32 = arith.constant 0 : i32
    %c0_i32_0 = arith.constant 0 : i32
    %c0_i32_1 = arith.constant 0 : i32
    return %c0_i32, %c0_i32_0 : i32, i32
  }
  func.func @transform_4(%arg0: i32) -> (i32, i32) {
    %c0_i32 = arith.constant 0 : i32
    %c0_i32_0 = arith.constant 0 : i32
    %c0_i32_1 = arith.constant 0 : i32
    return %c0_i32, %c0_i32_0 : i32, i32
  }
  func.func @transform_5(%arg0: i32) -> (i32, i32, i32) {
    %c0_i32 = arith.constant 0 : i32
    %c0_i32_0 = arith.constant 0 : i32
    %c0_i32_1 = arith.constant 0 : i32
    %c0_i32_2 = arith.constant 0 : i32
    return %c0_i32, %c0_i32_0, %c0_i32_1 : i32, i32, i32
  }
  func.func @transform_6(%arg0: i32) -> (i32, i32, i32) {
    %c0_i32 = arith.constant 0 : i32
    %c0_i32_0 = arith.constant 0 : i32
    %c0_i32_1 = arith.constant 0 : i32
    return %arg0, %c0_i32, %c0_i32_0 : i32, i32, i32
  }
  func.func @transform_7(%arg0: i32) -> (i32, i32, i32) {
    %c0_i32 = arith.constant 0 : i32
    %c0_i32_0 = arith.constant 0 : i32
    %c0_i32_1 = arith.constant 0 : i32
    return %arg0, %c0_i32, %c0_i32_0 : i32, i32, i32
  }
}

module attributes {stable_mosaic.version = 11 : i64} {
  func.func @_bn_add_relu_kernel(%arg0: i32, %arg1: i32, %arg2: memref<1x256x128xbf16, #tpu.memory_space<vmem>>, %arg3: memref<1x128xf32, #tpu.memory_space<vmem>>, %arg4: memref<1x128xf32, #tpu.memory_space<vmem>>, %arg5: memref<1x256x128xbf16, #tpu.memory_space<vmem>>, %arg6: memref<1x256x128xf32, #tpu.memory_space<vmem>>) attributes {dimension_semantics = [#tpu.dimension_semantics<parallel>, #tpu.dimension_semantics<parallel>], iteration_bounds = array<i64: 2, 1>, scalar_prefetch = 0 : i64, scratch_operands = 0 : i64, tpu.core_type = #tpu.core_type<tc>, window_params = [{transform_indices = @transform_0, window_bounds = array<i64: 1, 256, 128>}, {pipeline_mode = #tpu.pipeline_mode<synchronous>, transform_indices = @transform_1, window_bounds = array<i64: 1, 128>}, {pipeline_mode = #tpu.pipeline_mode<synchronous>, transform_indices = @transform_2, window_bounds = array<i64: 1, 128>}, {transform_indices = @transform_3, window_bounds = array<i64: 1, 256, 128>}, {transform_indices = @transform_4, window_bounds = array<i64: 1, 256, 128>}]} {
    %c0 = arith.constant 0 : index
    %c0_0 = arith.constant 0 : index
    %c0_1 = arith.constant 0 : index
    %0 = vector.load %arg2[%c0, %c0_0, %c0_1] : memref<1x256x128xbf16, #tpu.memory_space<vmem>>, vector<1x256x128xbf16>
    %1 = vector.shape_cast %0 : vector<1x256x128xbf16> to vector<256x128xbf16>
    %2 = arith.extf %1 : vector<256x128xbf16> to vector<256x128xf32>
    %c0_2 = arith.constant 0 : index
    %c0_3 = arith.constant 0 : index
    %3 = vector.load %arg3[%c0_2, %c0_3] : memref<1x128xf32, #tpu.memory_space<vmem>>, vector<1x128xf32>
    %4 = vector.broadcast %3 : vector<1x128xf32> to vector<256x128xf32>
    %5 = arith.mulf %2, %4 : vector<256x128xf32>
    %c0_4 = arith.constant 0 : index
    %c0_5 = arith.constant 0 : index
    %6 = vector.load %arg4[%c0_4, %c0_5] : memref<1x128xf32, #tpu.memory_space<vmem>>, vector<1x128xf32>
    %7 = vector.broadcast %6 : vector<1x128xf32> to vector<256x128xf32>
    %8 = arith.addf %5, %7 : vector<256x128xf32>
    %c0_6 = arith.constant 0 : index
    %c0_7 = arith.constant 0 : index
    %c0_8 = arith.constant 0 : index
    %9 = vector.load %arg5[%c0_6, %c0_7, %c0_8] : memref<1x256x128xbf16, #tpu.memory_space<vmem>>, vector<1x256x128xbf16>
    %10 = vector.shape_cast %9 : vector<1x256x128xbf16> to vector<256x128xbf16>
    %11 = arith.extf %10 : vector<256x128xbf16> to vector<256x128xf32>
    %12 = arith.addf %8, %11 : vector<256x128xf32>
    %cst = arith.constant 0.000000e+00 : f32
    %13 = vector.broadcast %cst : f32 to vector<256x128xf32>
    %14 = arith.maximumf %12, %13 : vector<256x128xf32>
    %c0_9 = arith.constant 0 : index
    %c0_10 = arith.constant 0 : index
    %c0_11 = arith.constant 0 : index
    %15 = vector.load %arg6[%c0_9, %c0_10, %c0_11] : memref<1x256x128xf32, #tpu.memory_space<vmem>>, vector<1x256x128xf32>
    %16 = vector.shape_cast %15 : vector<1x256x128xf32> to vector<256x128xf32>
    %17 = vector.shape_cast %14 : vector<256x128xf32> to vector<1x256x128xf32>
    tpu.vector_store %arg6[%c0_9, %c0_10, %c0_11], %17 {strides = array<i32>} : memref<1x256x128xf32, #tpu.memory_space<vmem>>, vector<1x256x128xf32>,
    return
  }
  func.func @transform_0(%arg0: i32, %arg1: i32) -> (i32, i32, i32) {
    %c0_i32 = arith.constant 0 : i32
    %c0_i32_0 = arith.constant 0 : i32
    return %arg0, %arg1, %c0_i32 : i32, i32, i32
  }
  func.func @transform_1(%arg0: i32, %arg1: i32) -> (i32, i32) {
    %c0_i32 = arith.constant 0 : i32
    %c0_i32_0 = arith.constant 0 : i32
    %c0_i32_1 = arith.constant 0 : i32
    return %c0_i32, %c0_i32_0 : i32, i32
  }
  func.func @transform_2(%arg0: i32, %arg1: i32) -> (i32, i32) {
    %c0_i32 = arith.constant 0 : i32
    %c0_i32_0 = arith.constant 0 : i32
    %c0_i32_1 = arith.constant 0 : i32
    return %c0_i32, %c0_i32_0 : i32, i32
  }
  func.func @transform_3(%arg0: i32, %arg1: i32) -> (i32, i32, i32) {
    %c0_i32 = arith.constant 0 : i32
    %c0_i32_0 = arith.constant 0 : i32
    return %arg0, %arg1, %c0_i32 : i32, i32, i32
  }
  func.func @transform_4(%arg0: i32, %arg1: i32) -> (i32, i32, i32) {
    %c0_i32 = arith.constant 0 : i32
    %c0_i32_0 = arith.constant 0 : i32
    return %arg0, %arg1, %c0_i32 : i32, i32, i32
  }
}

</mosaic_0001>

<bundles_post_ra>
// kernel: bottleneck_forward.4
= control target key start
LH: loop header
LB: loop body
LE: loop exit
PB: predicated region body
PF: predicated region fallthrough
CT: control target
= control target key end

     0   :  { %s1356_s12 = smov 0   ;;  %s1358_s13 = smov 0   ;;  %s1544_s0 = inlined_call_operand.vmem [shape: bf16[2,256,128], index: 0, kind: input, shape index: {}]   ;;  %s1545_s1 = inlined_call_operand.vmem [shape: bf16[128,128], index: 1, kind: input, shape index: {}]   ;;  %s1546_s2 = inlined_call_operand.vmem [shape: bf16[2,256,128], index: 2, kind: output, shape index: {0}]   ;;  %s1547_s3 = inlined_call_operand.vmem [shape: f32[2,1,2,128], index: 3, kind: output, shape index: {1}]  }
   0x1   :  { %s1360_s14 = smov 0  }
   0x2 LB: > { %s26_s15 = sadd.s32 1, %s1330_s13  ;;  %p983_p0 = scmp.ge.s32.totalorder %s1334_s14, 1  ;;  %s1334_s14 = sphi %s1360_s14, %s14_s14   ;;  %s1330_s13 = sphi %s1358_s13, %s1549_s13   ;;  %s1326_s12 = sphi %s1356_s12, %s1548_s12  }
   0x3   : > { %p28_p1 = scmp.ge.s32.totalorder %s26_s15, 2  ;;  %p163_p2 = scmp.lt.s32.totalorder %s1334_s14, 3 }
   0x5   : > { %s1551_s15 = smov (%p28_p1, %s26_s15), 0  ;;  %p164_p3 = pnand %p983_p0, %p163_p2 }
   0x6   : > { %v1288_v0 = vld [vmem:[%s1545_s1] sm:$0xff] (!%p164_p3)   ;;  %p203_p4 = scmp.lt.s32.totalorder (!%p164_p3), %s1326_s12, 1  ;;  %v1289_v1 = vld [vmem:[%s1545_s1 + $0x8] sm:$0xff] (!%p164_p3)   ;;  %v1290_v2 = vld [vmem:[%s1545_s1 + $0x10] sm:$0xff] (!%p164_p3)  }
   0x7   : > { %167 = sbr.rel (%p164_p3) target bundleno = 331 (0x14b), region = 28  ;;  %1200 = vmatprep.subr.bf16.mxu0 (!%p164_p3), %v1288_v0  ;;  %1248 = vmatprep.subr.bf16.mxu1 (!%p164_p3), %v1288_v0  ;;  %v1291_v3 = vld [vmem:[%s1545_s1 + $0x18] sm:$0xff] (!%p164_p3)   ;;  %v1292_v5 = vld [vmem:[%s1545_s1 + $0x20] sm:$0xff] (!%p164_p3)   ;;  %v1293_v6 = vld [vmem:[%s1545_s1 + $0x28] sm:$0xff] (!%p164_p3)  }
   0x8   : > { %1201 = vmatpush3.bf16.msra.mxu0 (!%p164_p3), %v1288_v0  ;;  %1256 = vmatpush3.bf16.msra.mxu1 (!%p164_p3), %v1288_v0  ;;  %v1294_v8 = vld [vmem:[%s1545_s1 + $0x30] sm:$0xff] (!%p164_p3)   ;;  %v1295_v9 = vld [vmem:[%s1545_s1 + $0x38] sm:$0xff] (!%p164_p3)  }
   0x9   : > { %1202 = vmatprep.subr.bf16.mxu0 (!%p164_p3), %v1289_v1  ;;  %1249 = vmatprep.subr.bf16.mxu1 (!%p164_p3), %v1289_v1 }
   0xc   : > { %1203 = vmatpush3.bf16.msra.mxu0 (!%p164_p3), %v1289_v1  ;;  %1257 = vmatpush3.bf16.msra.mxu1 (!%p164_p3), %v1289_v1 }
   0xd   : > { %1204 = vmatprep.subr.bf16.mxu0 (!%p164_p3), %v1290_v2  ;;  %1250 = vmatprep.subr.bf16.mxu1 (!%p164_p3), %v1290_v2 }
   0xe   : > { %s1553_s12 = smov (!%p203_p4, %s1326_s12), 1 }
   0xf   : > { %s1047_s22 = sshll.u32 %s1553_s12, 7  ;;  %s988_s16 = sshll.u32 %s1553_s12, 1 }
  0x10   : > { %s1391_s25 = scalar_lea.vmem %s1544_s0, %s1047_s22  ;;  %1205 = vmatpush3.bf16.msra.mxu0 %v1290_v2  ;;  %1258 = vmatpush3.bf16.msra.mxu1 %v1290_v2  ;;  %s1433_s11 = scalar_lea.vmem %s1546_s2, %s1047_s22 }
  0x11   : > { %v1296_v4 = vld [vmem:[%s1391_s25] sm:$0xff]   ;;  %1206 = vmatprep.subr.bf16.mxu0 %v1291_v3  ;;  %1251 = vmatprep.subr.bf16.mxu1 %v1291_v3  ;;  %v1297_v10 = vld [vmem:[%s1391_s25 + $0x8] sm:$0xff]   ;;  %v1298_v12 = vld [vmem:[%s1391_s25 + $0x10] sm:$0xff]   ;;  %s228_s19 = scalar_lea.vmem %s1547_s3, %s988_s16 }
  0x12   : > { %1216 = vmatprep.mubr.bf16.mxu0 %v1296_v4  ;;  %v1304_v7 = vld [vmem:[%s1391_s25 + $0x40] sm:$0xff]   ;;  %v1305_v11 = vld [vmem:[%s1391_s25 + $0x48] sm:$0xff]   ;;  %v1306_v13 = vld [vmem:[%s1391_s25 + $0x50] sm:$0xff]  }
  0x13   : > { %1232 = vmatprep.mubr.bf16.mxu1 %v1304_v7  ;;  %v1299_v14 = vld [vmem:[%s1391_s25 + $0x18] sm:$0xff]   ;;  %v1300_v16 = vld [vmem:[%s1391_s25 + $0x20] sm:$0xff]   ;;  %v1301_v18 = vld [vmem:[%s1391_s25 + $0x28] sm:$0xff]  }
  0x14   : > { %1207 = vmatpush3.bf16.msra.mxu0 %v1291_v3  ;;  %1259 = vmatpush3.bf16.msra.mxu1 %v1291_v3  ;;  %v1307_v15 = vld [vmem:[%s1391_s25 + $0x58] sm:$0xff]   ;;  %v1308_v17 = vld [vmem:[%s1391_s25 + $0x60] sm:$0xff]   ;;  %v1309_v19 = vld [vmem:[%s1391_s25 + $0x68] sm:$0xff]  }
  0x15   : > { %1208 = vmatprep.subr.bf16.mxu0 %v1292_v5  ;;  %1252 = vmatprep.subr.bf16.mxu1 %v1292_v5  ;;  %v1302_v20 = vld [vmem:[%s1391_s25 + $0x30] sm:$0xff]   ;;  %v1303_v22 = vld [vmem:[%s1391_s25 + $0x38] sm:$0xff]  }
  0x16   : > { %v1310_v21 = vld [vmem:[%s1391_s25 + $0x70] sm:$0xff]   ;;  %v1311_v23 = vld [vmem:[%s1391_s25 + $0x78] sm:$0xff]  }
  0x18   : > { %1209 = vmatpush3.bf16.msra.mxu0 %v1292_v5  ;;  %1260 = vmatpush3.bf16.msra.mxu1 %v1292_v5 }
  0x19   : > { %1210 = vmatprep.subr.bf16.mxu0 %v1293_v6  ;;  %1253 = vmatprep.subr.bf16.mxu1 %v1293_v6 }
  0x1c   : > { %1211 = vmatpush3.bf16.msra.mxu0 %v1293_v6  ;;  %1261 = vmatpush3.bf16.msra.mxu1 %v1293_v6 }
  0x1d   : > { %1212 = vmatprep.subr.bf16.mxu0 %v1294_v8  ;;  %1254 = vmatprep.subr.bf16.mxu1 %v1294_v8 }
  0x20   : > { %1213 = vmatpush3.bf16.msra.mxu0 %v1294_v8  ;;  %1262 = vmatpush3.bf16.msra.mxu1 %v1294_v8 }
  0x21   : > { %1214 = vmatprep.subr.bf16.mxu0 %v1295_v9  ;;  %1255 = vmatprep.subr.bf16.mxu1 %v1295_v9 }
  0x24   : > { %1215 = vmatpush3.bf16.msra.mxu0 %v1295_v9  ;;  %1263 = vmatpush3.bf16.msra.mxu1 %v1295_v9 }
  0x27   : > { %1217 = vmatmul.mubr.bf16.vlgmr.msra.gmra.mrb[0].mxu0 %v1297_v10  ;;  %1233 = vmatmul.mubr.bf16.vlgmr.msra.gmra.mrb[0].mxu1 %v1305_v11 }
  0x28   : > { %1220 = vmatprep.mubr.bf16.mxu0 %v1298_v12  ;;  %1236 = vmatprep.mubr.bf16.mxu1 %v1306_v13 }
  0x2f   : > { %1221 = vmatmul.mubr.bf16.gmra.mrb[4].mxu0 %v1299_v14  ;;  %1237 = vmatmul.mubr.bf16.gmra.mrb[4].mxu1 %v1307_v15 }
  0x30   : > { %1224 = vmatprep.mubr.bf16.mxu0 %v1300_v16  ;;  %1240 = vmatprep.mubr.bf16.mxu1 %v1308_v17 }
  0x37   : > { %1225 = vmatmul.mubr.bf16.gmra.mrb[8].mxu0 %v1301_v18  ;;  %1241 = vmatmul.mubr.bf16.gmra.mrb[8].mxu1 %v1309_v19 }
  0x38   : > { %1228 = vmatprep.mubr.bf16.mxu0 %v1302_v20  ;;  %1244 = vmatprep.mubr.bf16.mxu1 %v1310_v21 }
  0x3f   : > { %1229 = vmatmul.mubr.bf16.gmra.mrb[12].mxu0 %v1303_v22  ;;  %1245 = vmatmul.mubr.bf16.gmra.mrb[12].mxu1 %v1311_v23 }
  0xfa   : > { %v1218_v24 = vpop.f32.mrb[0].mxu0  ;;  %v1424_v25 = vpop.f32.mrb[0].mxu1 }
  0xfb   : > { %v456_v26 = vpop.f32.mrb[1].mxu0  ;;  %v1426_v27 = vpop.f32.mrb[1].mxu1  ;;  %v783_v39 = vmul.f32 %v1218_v24, %v1218_v24 }
  0xfc   : > { %v1219_v28 = vpop.f32.mrb[2].mxu0  ;;  %v1435_v29 = vpop.f32.mrb[2].mxu1  ;;  %v781_v30 = vmul.f32 %v456_v26, %v456_v26 }
  0xfd   : > { %v1089_v31 = vpack.c.bf16 %v1219_v28, %v1218_v24  ;;  %v459_v32 = vpop.f32.mrb[3].mxu0  ;;  %v1129_v33 = vpack.c.bf16 %v1435_v29, %v1424_v25  ;;  %v1439_v34 = vpop.f32.mrb[3].mxu1  ;;  %v784_v42 = vmul.f32 %v1219_v28, %v1219_v28 }
  0xfe   : > { %v1084_v35 = vpack.c.bf16 %v459_v32, %v456_v26  ;;  %v743_v36 = vadd.f32 %v459_v32, %v456_v26  ;;  %v782_v37 = vmul.f32 %v459_v32, %v459_v32  ;;  %v1124_v38 = vpack.c.bf16 %v1439_v34, %v1426_v27 }
  0xff   : > { %1161 = vst [vmem:[%s1433_s11 + $0x8] sm:$0xff] %v1089_v31   ;;  %1169 = vst [vmem:[%s1433_s11 + $0x48] sm:$0xff] %v1129_v33  }
 0x100   : > { %1085 = vst [vmem:[%s1433_s11] sm:$0xff] %v1084_v35   ;;  %v744_v40 = vadd.f32 %v1218_v24, %v743_v36  ;;  %v813_v41 = vadd.f32 %v782_v37, %v781_v30  ;;  %1168 = vst [vmem:[%s1433_s11 + $0x40] sm:$0xff] %v1124_v38  }
 0x102   : > { %v814_v43 = vadd.f32 %v813_v41, %v783_v39  ;;  %v1222_v44 = vpop.f32.mrb[4].mxu0  ;;  %v745_v45 = vadd.f32 %v1219_v28, %v744_v40  ;;  %v1447_v46 = vpop.f32.mrb[4].mxu1 }
 0x103   : > { %v472_v47 = vpop.f32.mrb[5].mxu0  ;;  %v1449_v48 = vpop.f32.mrb[5].mxu1  ;;  %v787_v63 = vmul.f32 %v1222_v44, %v1222_v44 }
 0x104   : > { %v746_v49 = vadd.f32 %v745_v45, %v472_v47  ;;  %v785_v50 = vmul.f32 %v472_v47, %v472_v47  ;;  %v815_v51 = vadd.f32 %v814_v43, %v784_v42  ;;  %v1223_v52 = vpop.f32.mrb[6].mxu0  ;;  %v1451_v53 = vpop.f32.mrb[6].mxu1 }
 0x105   : > { %v1099_v54 = vpack.c.bf16 %v1223_v52, %v1222_v44  ;;  %v475_v55 = vpop.f32.mrb[7].mxu0  ;;  %v1139_v56 = vpack.c.bf16 %v1451_v53, %v1447_v46  ;;  %v1455_v57 = vpop.f32.mrb[7].mxu1  ;;  %v788_v2 = vmul.f32 %v1223_v52, %v1223_v52 }
 0x106   : > { %v816_v58 = vadd.f32 %v815_v51, %v785_v50  ;;  %v1094_v59 = vpack.c.bf16 %v475_v55, %v472_v47  ;;  %v747_v60 = vadd.f32 %v746_v49, %v475_v55  ;;  %v786_v61 = vmul.f32 %v475_v55, %v475_v55 }
 0x107   : > { %1163 = vst [vmem:[%s1433_s11 + $0x18] sm:$0xff] %v1099_v54   ;;  %1171 = vst [vmem:[%s1433_s11 + $0x58] sm:$0xff] %v1139_v56   ;;  %v1134_v62 = vpack.c.bf16 %v1455_v57, %v1449_v48 }
 0x108   : > { %1162 = vst [vmem:[%s1433_s11 + $0x10] sm:$0xff] %v1094_v59   ;;  %v748_v0 = vadd.f32 %v1222_v44, %v747_v60  ;;  %v817_v1 = vadd.f32 %v816_v58, %v786_v61  ;;  %v797_v61 = vmul.f32 %v1426_v27, %v1426_v27 }
 0x109   : > { %1170 = vst [vmem:[%s1433_s11 + $0x50] sm:$0xff] %v1134_v62  }
 0x10a   : > { %v818_v3 = vadd.f32 %v817_v1, %v787_v63  ;;  %v1226_v4 = vpop.f32.mrb[8].mxu0  ;;  %v749_v5 = vadd.f32 %v1223_v52, %v748_v0  ;;  %v1463_v6 = vpop.f32.mrb[8].mxu1 }
 0x10b   : > { %v488_v7 = vpop.f32.mrb[9].mxu0  ;;  %v1465_v8 = vpop.f32.mrb[9].mxu1  ;;  %v791_v23 = vmul.f32 %v1226_v4, %v1226_v4 }
 0x10c   : > { %v750_v9 = vadd.f32 %v749_v5, %v488_v7  ;;  %v789_v10 = vmul.f32 %v488_v7, %v488_v7  ;;  %v819_v11 = vadd.f32 %v818_v3, %v788_v2  ;;  %v1227_v12 = vpop.f32.mrb[10].mxu0  ;;  %v1467_v13 = vpop.f32.mrb[10].mxu1  ;;  %v798_v2 = vmul.f32 %v1439_v34, %v1439_v34 }
 0x10d   : > { %v1109_v14 = vpack.c.bf16 %v1227_v12, %v1226_v4  ;;  %v491_v15 = vpop.f32.mrb[11].mxu0  ;;  %v1149_v16 = vpack.c.bf16 %v1467_v13, %v1463_v6  ;;  %v1471_v17 = vpop.f32.mrb[11].mxu1  ;;  %v792_v28 = vmul.f32 %v1227_v12, %v1227_v12  ;;  %v799_v3 = vmul.f32 %v1424_v25, %v1424_v25 }
 0x10e   : > { %v820_v18 = vadd.f32 %v819_v11, %v789_v10  ;;  %v1104_v19 = vpack.c.bf16 %v491_v15, %v488_v7  ;;  %v751_v20 = vadd.f32 %v750_v9, %v491_v15  ;;  %v790_v21 = vmul.f32 %v491_v15, %v491_v15 }
 0x10f   : > { %1165 = vst [vmem:[%s1433_s11 + $0x28] sm:$0xff] %v1109_v14   ;;  %1173 = vst [vmem:[%s1433_s11 + $0x68] sm:$0xff] %v1149_v16   ;;  %v1144_v22 = vpack.c.bf16 %v1471_v17, %v1465_v8  ;;  %v800_v7 = vmul.f32 %v1435_v29, %v1435_v29  ;;  %v802_v15 = vmul.f32 %v1455_v57, %v1455_v57 }
 0x110   : > { %1164 = vst [vmem:[%s1433_s11 + $0x20] sm:$0xff] %v1104_v19   ;;  %v752_v24 = vadd.f32 %v1226_v4, %v751_v20  ;;  %v821_v26 = vadd.f32 %v820_v18, %v790_v21 }
 0x111   : > { %1172 = vst [vmem:[%s1433_s11 + $0x60] sm:$0xff] %v1144_v22  }
 0x112   : > { %v822_v30 = vadd.f32 %v821_v26, %v791_v23  ;;  %v1230_v31 = vpop.f32.mrb[12].mxu0  ;;  %v753_v32 = vadd.f32 %v1227_v12, %v752_v24  ;;  %v1479_v33 = vpop.f32.mrb[12].mxu1  ;;  %v806_v24 = vmul.f32 %v1471_v17, %v1471_v17 }
 0x113   : > { %v504_v35 = vpop.f32.mrb[13].mxu0  ;;  %v568_v36 = vpop.f32.mrb[13].mxu1  ;;  %v795_v54 = vmul.f32 %v1230_v31, %v1230_v31 }
 0x114   : > { %v754_v37 = vadd.f32 %v753_v32, %v504_v35  ;;  %v793_v38 = vmul.f32 %v504_v35, %v504_v35  ;;  %v823_v39 = vadd.f32 %v822_v30, %v792_v28  ;;  %v1231_v40 = vpop.f32.mrb[14].mxu0  ;;  %v1481_v41 = vpop.f32.mrb[14].mxu1 }
 0x115   : > { %v1119_v42 = vpack.c.bf16 %v1231_v40, %v1230_v31  ;;  %v507_v43 = vpop.f32.mrb[15].mxu0  ;;  %v1159_v44 = vpack.c.bf16 %v1481_v41, %v1479_v33  ;;  %v571_v45 = vpop.f32.mrb[15].mxu1  ;;  %v796_v58 = vmul.f32 %v1231_v40, %v1231_v40 }
 0x116   : > { %v824_v47 = vadd.f32 %v823_v39, %v793_v38  ;;  %v1114_v49 = vpack.c.bf16 %v507_v43, %v504_v35  ;;  %v755_v50 = vadd.f32 %v754_v37, %v507_v43  ;;  %v794_v51 = vmul.f32 %v507_v43, %v507_v43 }
 0x117   : > { %1167 = vst [vmem:[%s1433_s11 + $0x38] sm:$0xff] %v1119_v42   ;;  %1175 = vst [vmem:[%s1433_s11 + $0x78] sm:$0xff] %v1159_v44   ;;  %v1154_v52 = vpack.c.bf16 %v571_v45, %v568_v36  ;;  %v810_v39 = vmul.f32 %v571_v45, %v571_v45  ;;  %v812_v42 = vmul.f32 %v1481_v41, %v1481_v41 }
 0x118   : > { %1166 = vst [vmem:[%s1433_s11 + $0x30] sm:$0xff] %v1114_v49   ;;  %v756_v55 = vadd.f32 %v1230_v31, %v755_v50  ;;  %v825_v56 = vadd.f32 %v824_v47, %v794_v51 }
 0x119   : > { %1174 = vst [vmem:[%s1433_s11 + $0x70] sm:$0xff] %v1154_v52  }
 0x11a   : > { %v826_v59 = vadd.f32 %v825_v56, %v795_v54  ;;  %v757_v60 = vadd.f32 %v1231_v40, %v756_v55 }
 0x11c   : > { %v758_v62 = vadd.f32 %v757_v60, %v1426_v27  ;;  %v827_v63 = vadd.f32 %v826_v59, %v796_v58  ;;  %v801_v27 = vmul.f32 %v1449_v48, %v1449_v48 }
 0x11e   : > { %v828_v0 = vadd.f32 %v827_v63, %v797_v61  ;;  %v759_v1 = vadd.f32 %v758_v62, %v1439_v34 }
 0x120   : > { %v760_v4 = vadd.f32 %v1424_v25, %v759_v1  ;;  %v829_v5 = vadd.f32 %v828_v0, %v798_v2  ;;  %v803_v25 = vmul.f32 %v1447_v46, %v1447_v46 }
 0x122   : > { %v830_v9 = vadd.f32 %v829_v5, %v799_v3  ;;  %v761_v10 = vadd.f32 %v1435_v29, %v760_v4  ;;  %v804_v29 = vmul.f32 %v1451_v53, %v1451_v53 }
 0x124   : > { %v762_v11 = vadd.f32 %v761_v10, %v1449_v48  ;;  %v831_v12 = vadd.f32 %v830_v9, %v800_v7  ;;  %v805_v48 = vmul.f32 %v1465_v8, %v1465_v8 }
 0x126   : > { %v832_v14 = vadd.f32 %v831_v12, %v801_v27  ;;  %v763_v34 = vadd.f32 %v762_v11, %v1455_v57 }
 0x128   : > { %v764_v16 = vadd.f32 %v1447_v46, %v763_v34  ;;  %v833_v18 = vadd.f32 %v832_v14, %v802_v15  ;;  %v807_v46 = vmul.f32 %v1463_v6, %v1463_v6 }
 0x12a   : > { %v834_v19 = vadd.f32 %v833_v18, %v803_v25  ;;  %v765_v20 = vadd.f32 %v1451_v53, %v764_v16  ;;  %v808_v53 = vmul.f32 %v1467_v13, %v1467_v13 }
 0x12c   : > { %v766_v21 = vadd.f32 %v765_v20, %v1465_v8  ;;  %v835_v22 = vadd.f32 %v834_v19, %v804_v29  ;;  %v809_v8 = vmul.f32 %v568_v36, %v568_v36 }
 0x12e   : > { %v836_v23 = vadd.f32 %v835_v22, %v805_v48  ;;  %v767_v57 = vadd.f32 %v766_v21, %v1471_v17  ;;  %v811_v17 = vmul.f32 %v1479_v33, %v1479_v33 }
 0x130   : > { %v768_v26 = vadd.f32 %v1463_v6, %v767_v57  ;;  %v837_v28 = vadd.f32 %v836_v23, %v806_v24 }
 0x132   : > { %v838_v30 = vadd.f32 %v837_v28, %v807_v46  ;;  %v769_v31 = vadd.f32 %v1467_v13, %v768_v26 }
 0x134   : > { %v770_v32 = vadd.f32 %v769_v31, %v568_v36  ;;  %v839_v35 = vadd.f32 %v838_v30, %v808_v53 }
 0x136   : > { %v840_v37 = vadd.f32 %v839_v35, %v809_v8  ;;  %v771_v38 = vadd.f32 %v770_v32, %v571_v45 }
 0x138   : > { %v772_v40 = vadd.f32 %v1479_v33, %v771_v38  ;;  %v841_v6 = vadd.f32 %v840_v37, %v810_v39 }
 0x13a   : > { %v773_v43 = vadd.f32 %v1481_v41, %v772_v40  ;;  %v842_v44 = vadd.f32 %v841_v6, %v811_v17 }
 0x13c   : > { %v774_v13 = vrot.slane %v773_v43, 4  ;;  %v843_v47 = vadd.f32 %v842_v44, %v812_v42 }
 0x13e   : > { %v775_v36 = vadd.f32 %v774_v13, %v773_v43  ;;  %v844_v49 = vrot.slane %v843_v47, 4 }
 0x140   : > { %v776_v50 = vrot.slane %v775_v36, 2  ;;  %v845_v51 = vadd.f32 %v844_v49, %v843_v47 }
 0x142   : > { %v777_v45 = vadd.f32 %v776_v50, %v775_v36  ;;  %v846_v52 = vrot.slane %v845_v51, 2 }
 0x144   : > { %v778_v54 = vrot.slane %v777_v45, 1  ;;  %v847_v55 = vadd.f32 %v846_v52, %v845_v51 }
 0x146   : > { %v779_v33 = vadd.f32 %v778_v54, %v777_v45  ;;  %v848_v56 = vrot.slane %v847_v55, 1 }
 0x148   : > { %780 = vst [vmem:[%s228_s19] sm:$0x1] %v779_v33  ;;  %v849_v41 = vadd.f32 %v848_v56, %v847_v55 }
 0x14a   : > { %850 = vst [vmem:[%s228_s19 + $0x1] sm:$0x1] %v849_v41 }
 0x14b PF: > { %s14_s14 = sadd.s32 1, %s1334_s14   ;;  %s1548_s12 = smov %s1330_s13 }
 0x14c   : > { %p11_p5 = scmp.ge.s32.totalorder %s14_s14, 4   ;;  %s1549_s13 = smov %s1551_s15 }
 0x14e   :  { %13 = sbr.rel (!%p11_p5) target bundleno = 2 (0x2), region = 70 }

// kernel: bottleneck_forward.6
= control target key start
LH: loop header
LB: loop body
LE: loop exit
PB: predicated region body
PF: predicated region fallthrough
CT: control target
= control target key end

     0   :  { %s1531_s18 = smov 0   ;;  %s1533_s19 = smov 0   ;;  %s1811_s0 = inlined_call_operand.vmem [shape: bf16[2,256,128], index: 0, kind: input, shape index: {}]   ;;  %s1812_s1 = inlined_call_operand.vmem [shape: f32[1,128], index: 1, kind: input, shape index: {}]   ;;  %s1813_s2 = inlined_call_operand.vmem [shape: f32[1,128], index: 2, kind: input, shape index: {}]   ;;  %s1814_s3 = inlined_call_operand.vmem [shape: bf16[128,128], index: 3, kind: input, shape index: {}]   ;;  %s1815_s4 = inlined_call_operand.vmem [shape: bf16[2,256,128], index: 4, kind: output, shape index: {0}]   ;;  %s1816_s5 = inlined_call_operand.vmem [shape: f32[2,1,2,128], index: 5, kind: output, shape index: {1}]  }
   0x1   :  { %s1535_s20 = smov 0  }
   0x2 LB: > { %s28_s21 = sadd.s32 1, %s1495_s19  ;;  %p1099_p0 = scmp.ge.s32.totalorder %s1499_s20, 1  ;;  %s1499_s20 = sphi %s1535_s20, %s16_s20   ;;  %s1495_s19 = sphi %s1533_s19, %s1818_s19   ;;  %s1491_s18 = sphi %s1531_s18, %s1817_s18  }
   0x3   : > { %p30_p1 = scmp.ge.s32.totalorder %s28_s21, 2  ;;  %p213_p2 = scmp.lt.s32.totalorder %s1499_s20, 3 }
   0x5   : > { %s1820_s21 = smov (%p30_p1, %s28_s21), 0  ;;  %p214_p3 = pnand %p1099_p0, %p213_p2 }
   0x6   : > { %v1469_v0 = vld [vmem:[%s1814_s3] sm:$0xff] (!%p214_p3)   ;;  %p257_p4 = scmp.lt.s32.totalorder (!%p214_p3), %s1491_s18, 1  ;;  %v1470_v1 = vld [vmem:[%s1814_s3 + $0x8] sm:$0xff] (!%p214_p3)   ;;  %v1471_v2 = vld [vmem:[%s1814_s3 + $0x10] sm:$0xff] (!%p214_p3)  }
   0x7   : > { %217 = sbr.rel (%p214_p3) target bundleno = 331 (0x14b), region = 36  ;;  %1381 = vmatprep.subr.bf16.mxu0 (!%p214_p3), %v1469_v0  ;;  %1429 = vmatprep.subr.bf16.mxu1 (!%p214_p3), %v1469_v0  ;;  %v1472_v3 = vld [vmem:[%s1814_s3 + $0x18] sm:$0xff] (!%p214_p3)   ;;  %v1575_v5 = vld [vmem:[%s1812_s1] ss:$0 sm:$0xff] (!%p214_p3)  ;;  %v1474_v34 = vld [vmem:[%s1814_s3 + $0x28] sm:$0xff] (!%p214_p3)  }
   0x8   : > { %1382 = vmatpush3.bf16.msra.mxu0 (!%p214_p3), %v1469_v0  ;;  %1437 = vmatpush3.bf16.msra.mxu1 (!%p214_p3), %v1469_v0  ;;  %v1583_v11 = vld [vmem:[%s1813_s2] ss:$0 sm:$0xff] (!%p214_p3)  ;;  %v1475_v49 = vld [vmem:[%s1814_s3 + $0x30] sm:$0xff] (!%p214_p3)   ;;  %v1476_v63 = vld [vmem:[%s1814_s3 + $0x38] sm:$0xff] (!%p214_p3)  }
   0x9   : > { %1383 = vmatprep.subr.bf16.mxu0 (!%p214_p3), %v1470_v1  ;;  %1430 = vmatprep.subr.bf16.mxu1 (!%p214_p3), %v1470_v1  ;;  %v1473_v20 = vld [vmem:[%s1814_s3 + $0x20] sm:$0xff] (!%p214_p3)  }
   0xc   : > { %1384 = vmatpush3.bf16.msra.mxu0 (!%p214_p3), %v1470_v1  ;;  %1438 = vmatpush3.bf16.msra.mxu1 (!%p214_p3), %v1470_v1 }
   0xd   : > { %1385 = vmatprep.subr.bf16.mxu0 (!%p214_p3), %v1471_v2  ;;  %1431 = vmatprep.subr.bf16.mxu1 (!%p214_p3), %v1471_v2 }
   0xe   : > { %s1822_s18 = smov (!%p257_p4, %s1491_s18), 1 }
   0xf   : > { %s1149_s28 = sshll.u32 %s1822_s18, 7 }
  0x10   : > { %s1566_s6 = scalar_lea.vmem %s1811_s0, %s1149_s28  ;;  %1386 = vmatpush3.bf16.msra.mxu0 %v1471_v2  ;;  %1439 = vmatpush3.bf16.msra.mxu1 %v1471_v2  ;;  %s1708_s27 = scalar_lea.vmem %s1815_s4, %s1149_s28 }
  0x11   : > { %v1184_v4 = vld [vmem:[%s1566_s6] sm:$0xff]   ;;  %v1327_v8 = vld [vmem:[%s1566_s6 + $0x8] sm:$0xff]   ;;  %v1328_v9 = vld [vmem:[%s1566_s6 + $0x10] sm:$0xff]   ;;  %1387 = vmatprep.subr.bf16.mxu0 %v1472_v3  ;;  %1432 = vmatprep.subr.bf16.mxu1 %v1472_v3  ;;  %s1104_s28 = sshll.u32 %s1822_s18, 1 }
  0x12   : > { %v1185_v6 = vunpack.c.l.bf16 %v1184_v4  ;;  %v1186_v7 = vunpack.c.h.bf16 %v1184_v4  ;;  %v1329_v10 = vld [vmem:[%s1566_s6 + $0x18] sm:$0xff]   ;;  %v1189_v12 = vunpack.c.l.bf16 %v1327_v8  ;;  %v1190_v13 = vunpack.c.h.bf16 %v1327_v8  ;;  %v1330_v29 = vld [vmem:[%s1566_s6 + $0x20] sm:$0xff]   ;;  %v1331_v33 = vld [vmem:[%s1566_s6 + $0x28] sm:$0xff]  }
  0x13   : > { %v1193_v14 = vunpack.c.l.bf16 %v1328_v9  ;;  %v1194_v15 = vunpack.c.h.bf16 %v1328_v9  ;;  %v1197_v18 = vunpack.c.l.bf16 %v1329_v10  ;;  %v1198_v19 = vunpack.c.h.bf16 %v1329_v10  ;;  %v1332_v42 = vld [vmem:[%s1566_s6 + $0x30] sm:$0xff]   ;;  %v1612_v48 = vld [vmem:[%s1566_s6 + $0x38] sm:$0xff]   ;;  %v1334_v60 = vld [vmem:[%s1566_s6 + $0x40] sm:$0xff]  }
  0x14   : > { %v355_v16 = vmul.f32 %v1185_v6, %v1575_v5  ;;  %v356_v17 = vmul.f32 %v1186_v7, %v1575_v5  ;;  %v357_v21 = vmul.f32 %v1189_v12, %v1575_v5  ;;  %v358_v22 = vmul.f32 %v1190_v13, %v1575_v5  ;;  %1388 = vmatpush3.bf16.msra.mxu0 %v1472_v3  ;;  %v1336_v9 = vld [vmem:[%s1566_s6 + $0x50] sm:$0xff]  }
  0x15   : > { %v359_v23 = vmul.f32 %v1193_v14, %v1575_v5  ;;  %v360_v24 = vmul.f32 %v1194_v15, %v1575_v5  ;;  %v361_v27 = vmul.f32 %v1197_v18, %v1575_v5  ;;  %v362_v28 = vmul.f32 %v1198_v19, %v1575_v5  ;;  %1440 = vmatpush3.bf16.msra.mxu1 %v1472_v3  ;;  %v1335_v3 = vld [vmem:[%s1566_s6 + $0x48] sm:$0xff]   ;;  %v1337_v19 = vld [vmem:[%s1566_s6 + $0x58] sm:$0xff]  }
  0x16   : > { %v394_v25 = vadd.f32 %v1583_v11, %v355_v16  ;;  %v395_v26 = vadd.f32 %v1583_v11, %v356_v17  ;;  %v396_v32 = vadd.f32 %v1583_v11, %v357_v21  ;;  %1389 = vmatprep.subr.bf16.mxu0 %v1473_v20  ;;  %v397_v35 = vadd.f32 %v1583_v11, %v358_v22 }
  0x17   : > { %v398_v36 = vadd.f32 %v1583_v11, %v359_v23  ;;  %v399_v37 = vadd.f32 %v1583_v11, %v360_v24  ;;  %1433 = vmatprep.subr.bf16.mxu1 %v1473_v20  ;;  %v400_v39 = vadd.f32 %v1583_v11, %v361_v27  ;;  %v401_v40 = vadd.f32 %v1583_v11, %v362_v28 }
  0x18   : > { %v426_v30 = vmax.f32 %v394_v25, 0.0  ;;  %v427_v31 = vmax.f32 %v395_v26, 0.0  ;;  %v1201_v41 = vunpack.c.l.bf16 %v1330_v29  ;;  %v1202_v43 = vunpack.c.h.bf16 %v1330_v29  ;;  %1390 = vmatpush3.bf16.msra.mxu0 %v1473_v20 }
  0x19   : > { %v1205_v44 = vunpack.c.l.bf16 %v1331_v33  ;;  %v428_v45 = vmax.f32 %v396_v32, 0.0  ;;  %v1206_v47 = vunpack.c.h.bf16 %v1331_v33  ;;  %1391 = vmatprep.subr.bf16.mxu0 %v1474_v34  ;;  %v429_v50 = vmax.f32 %v397_v35, 0.0  ;;  %1441 = vmatpush3.bf16.msra.mxu1 %v1473_v20  ;;  %v1338_v32 = vld [vmem:[%s1566_s6 + $0x60] sm:$0xff]  }
  0x1a   : > { %v458_v38 = vpack.c.bf16 %v427_v31, %v426_v30  ;;  %v363_v46 = vmul.f32 %v1201_v41, %v1575_v5  ;;  %v430_v51 = vmax.f32 %v398_v36, 0.0  ;;  %v431_v52 = vmax.f32 %v399_v37, 0.0  ;;  %1434 = vmatprep.subr.bf16.mxu1 %v1474_v34 }
  0x1b   : > { %v1209_v53 = vunpack.c.l.bf16 %v1332_v42  ;;  %v432_v54 = vmax.f32 %v400_v39, 0.0  ;;  %v433_v55 = vmax.f32 %v401_v40, 0.0  ;;  %v364_v56 = vmul.f32 %v1202_v43, %v1575_v5 }
  0x1c   : > { %1397 = vmatprep.mubr.bf16.mxu0 %v458_v38  ;;  %v365_v57 = vmul.f32 %v1205_v44, %v1575_v5  ;;  %v1210_v58 = vunpack.c.h.bf16 %v1332_v42  ;;  %v1213_v59 = vunpack.c.l.bf16 %v1612_v48  ;;  %1392 = vmatpush3.bf16.msra.mxu0 %v1474_v34  ;;  %v1622_v61 = vadd.f32 %v1583_v11, %v363_v46 }
  0x1d   : > { %v366_v62 = vmul.f32 %v1206_v47, %v1575_v5  ;;  %1393 = vmatprep.subr.bf16.mxu0 %v1475_v49  ;;  %v459_v0 = vpack.c.bf16 %v429_v50, %v428_v45  ;;  %v460_v1 = vpack.c.bf16 %v431_v52, %v430_v51  ;;  %1442 = vmatpush3.bf16.msra.mxu1 %v1474_v34  ;;  %v1214_v7 = vunpack.c.h.bf16 %v1612_v48  ;;  %v1339_v45 = vld [vmem:[%s1566_s6 + $0x68] sm:$0xff]  }
  0x1e   : > { %v367_v2 = vmul.f32 %v1209_v53, %v1575_v5  ;;  %v1630_v4 = vpack.c.bf16 %v433_v55, %v432_v54  ;;  %v1633_v6 = vadd.f32 %v1583_v11, %v364_v56  ;;  %1435 = vmatprep.subr.bf16.mxu1 %v1475_v49  ;;  %v1217_v8 = vunpack.c.l.bf16 %v1334_v60  ;;  %v1340_v55 = vld [vmem:[%s1566_s6 + $0x70] sm:$0xff]  }
  0x1f   : > { %v1638_v10 = vadd.f32 %v1583_v11, %v365_v57  ;;  %v1641_v12 = vmul.f32 %v1210_v58, %v1575_v5  ;;  %v1644_v13 = vmul.f32 %v1213_v59, %v1575_v5  ;;  %v1218_v14 = vunpack.c.h.bf16 %v1334_v60 }
  0x20   : > { %1394 = vmatpush3.bf16.msra.mxu0 %v1475_v49  ;;  %v434_v15 = vmax.f32 %v1622_v61, 0.0  ;;  %v1648_v16 = vadd.f32 %v1583_v11, %v366_v62  ;;  %v371_v17 = vmul.f32 %v1217_v8, %v1575_v5  ;;  %v1221_v18 = vunpack.c.l.bf16 %v1335_v3 }
  0x21   : > { %1395 = vmatprep.subr.bf16.mxu0 %v1476_v63  ;;  %1443 = vmatpush3.bf16.msra.mxu1 %v1475_v49  ;;  %v1653_v20 = vadd.f32 %v1583_v11, %v367_v2  ;;  %v372_v21 = vmul.f32 %v1218_v14, %v1575_v5  ;;  %v1222_v22 = vunpack.c.h.bf16 %v1335_v3  ;;  %v1225_v23 = vunpack.c.l.bf16 %v1336_v9 }
  0x22   : > { %v435_v24 = vmax.f32 %v1633_v6, 0.0  ;;  %1436 = vmatprep.subr.bf16.mxu1 %v1476_v63  ;;  %v410_v25 = vadd.f32 %v1583_v11, %v371_v17  ;;  %v373_v26 = vmul.f32 %v1221_v18, %v1575_v5  ;;  %v1226_v27 = vunpack.c.h.bf16 %v1336_v9  ;;  %v1341_v17 = vld [vmem:[%s1566_s6 + $0x78] sm:$0xff]   ;;  %s282_s6 = scalar_lea.vmem %s1816_s5, %s1104_s28 }
  0x23   : > { %v411_v28 = vadd.f32 %v1583_v11, %v372_v21  ;;  %v374_v29 = vmul.f32 %v1222_v22, %v1575_v5  ;;  %v375_v30 = vmul.f32 %v1225_v23, %v1575_v5  ;;  %v1229_v31 = vunpack.c.l.bf16 %v1337_v19 }
  0x24   : > { %1396 = vmatpush3.bf16.msra.mxu0 %v1476_v63  ;;  %v442_v33 = vmax.f32 %v410_v25, 0.0  ;;  %v412_v34 = vadd.f32 %v1583_v11, %v373_v26  ;;  %v376_v35 = vmul.f32 %v1226_v27, %v1575_v5  ;;  %v1230_v36 = vunpack.c.h.bf16 %v1337_v19 }
  0x25   : > { %1444 = vmatpush3.bf16.msra.mxu1 %v1476_v63  ;;  %v443_v37 = vmax.f32 %v411_v28, 0.0  ;;  %v413_v38 = vadd.f32 %v1583_v11, %v374_v29  ;;  %v414_v39 = vadd.f32 %v1583_v11, %v375_v30  ;;  %v377_v40 = vmul.f32 %v1229_v31, %v1575_v5 }
  0x26   : > { %v444_v41 = vmax.f32 %v412_v34, 0.0  ;;  %v415_v42 = vadd.f32 %v1583_v11, %v376_v35  ;;  %v378_v43 = vmul.f32 %v1230_v36, %v1575_v5  ;;  %v1233_v44 = vunpack.c.l.bf16 %v1338_v32 }
  0x27   : > { %1398 = vmatmul.mubr.bf16.vlgmr.msra.gmra.mrb[0].mxu0 %v459_v0  ;;  %v466_v46 = vpack.c.bf16 %v443_v37, %v442_v33  ;;  %v445_v47 = vmax.f32 %v413_v38, 0.0  ;;  %v446_v49 = vmax.f32 %v414_v39, 0.0  ;;  %v416_v50 = vadd.f32 %v1583_v11, %v377_v40 }
  0x28   : > { %1401 = vmatprep.mubr.bf16.mxu0 %v460_v1  ;;  %v447_v51 = vmax.f32 %v415_v42, 0.0  ;;  %v417_v52 = vadd.f32 %v1583_v11, %v378_v43  ;;  %v1234_v53 = vunpack.c.h.bf16 %v1338_v32  ;;  %v379_v54 = vmul.f32 %v1233_v44, %v1575_v5 }
  0x29   : > { %1413 = vmatprep.mubr.bf16.mxu1 %v466_v46  ;;  %v467_v56 = vpack.c.bf16 %v445_v47, %v444_v41  ;;  %v448_v57 = vmax.f32 %v416_v50, 0.0  ;;  %v1237_v58 = vunpack.c.l.bf16 %v1339_v45  ;;  %v1238_v59 = vunpack.c.h.bf16 %v1339_v45 }
  0x2a   : > { %v468_v60 = vpack.c.bf16 %v447_v51, %v446_v49  ;;  %v449_v61 = vmax.f32 %v417_v52, 0.0  ;;  %v380_v62 = vmul.f32 %v1234_v53, %v1575_v5  ;;  %v418_v63 = vadd.f32 %v1583_v11, %v379_v54 }
  0x2b   : > { %1414 = vmatmul.mubr.bf16.vlgmr.msra.gmra.mrb[0].mxu1 %v467_v56  ;;  %v381_v0 = vmul.f32 %v1237_v58, %v1575_v5  ;;  %v382_v1 = vmul.f32 %v1238_v59, %v1575_v5  ;;  %v1241_v2 = vunpack.c.l.bf16 %v1340_v55  ;;  %v1242_v3 = vunpack.c.h.bf16 %v1340_v55 }
  0x2c   : > { %v462_v6 = vpack.c.bf16 %v435_v24, %v434_v15  ;;  %v407_v8 = vadd.f32 %v1583_v11, %v1641_v12  ;;  %1417 = vmatprep.mubr.bf16.mxu1 %v468_v60  ;;  %v419_v9 = vadd.f32 %v1583_v11, %v380_v62  ;;  %v450_v14 = vmax.f32 %v418_v63, 0.0 }
  0x2d   : > { %v436_v18 = vmax.f32 %v1638_v10, 0.0  ;;  %v370_v19 = vmul.f32 %v1214_v7, %v1575_v5  ;;  %v383_v21 = vmul.f32 %v1241_v2, %v1575_v5  ;;  %v384_v22 = vmul.f32 %v1242_v3, %v1575_v5 }
  0x2e   : > { %v437_v15 = vmax.f32 %v1648_v16, 0.0  ;;  %v438_v23 = vmax.f32 %v1653_v20, 0.0  ;;  %v469_v12 = vpack.c.bf16 %v449_v61, %v448_v57  ;;  %v451_v24 = vmax.f32 %v419_v9, 0.0 }
  0x2f   : > { %1402 = vmatmul.mubr.bf16.gmra.mrb[4].mxu0 %v1630_v4  ;;  %v420_v25 = vadd.f32 %v1583_v11, %v381_v0  ;;  %v421_v10 = vadd.f32 %v1583_v11, %v382_v1  ;;  %v1245_v26 = vunpack.c.l.bf16 %v1341_v17  ;;  %v1246_v27 = vunpack.c.h.bf16 %v1341_v17 }
  0x30   : > { %1405 = vmatprep.mubr.bf16.mxu0 %v462_v6  ;;  %v439_v48 = vmax.f32 %v407_v8, 0.0  ;;  %v470_v7 = vpack.c.bf16 %v451_v24, %v450_v14  ;;  %v422_v28 = vadd.f32 %v1583_v11, %v383_v21  ;;  %v423_v29 = vadd.f32 %v1583_v11, %v384_v22 }
  0x31   : > { %v463_v16 = vpack.c.bf16 %v437_v15, %v436_v18  ;;  %v408_v20 = vadd.f32 %v1583_v11, %v1644_v13  ;;  %v409_v30 = vadd.f32 %v1583_v11, %v370_v19  ;;  %v452_v4 = vmax.f32 %v420_v25, 0.0 }
  0x32   : > { %v453_v31 = vmax.f32 %v421_v10, 0.0  ;;  %v385_v32 = vmul.f32 %v1245_v26, %v1575_v5  ;;  %v386_v33 = vmul.f32 %v1246_v27, %v1575_v5  ;;  %v464_v34 = vpack.c.bf16 %v439_v48, %v438_v23 }
  0x33   : > { %1418 = vmatmul.mubr.bf16.gmra.mrb[4].mxu1 %v469_v12  ;;  %v454_v35 = vmax.f32 %v422_v28, 0.0  ;;  %v455_v36 = vmax.f32 %v423_v29, 0.0  ;;  %v440_v37 = vmax.f32 %v408_v20, 0.0  ;;  %v441_v38 = vmax.f32 %v409_v30, 0.0 }
  0x34   : > { %1421 = vmatprep.mubr.bf16.mxu1 %v470_v7  ;;  %v471_v39 = vpack.c.bf16 %v453_v31, %v452_v4  ;;  %v424_v13 = vadd.f32 %v1583_v11, %v385_v32  ;;  %v425_v40 = vadd.f32 %v1583_v11, %v386_v33 }
  0x35   : > { %v472_v41 = vpack.c.bf16 %v455_v36, %v454_v35  ;;  %v465_v42 = vpack.c.bf16 %v441_v38, %v440_v37 }
  0x36   : > { %v456_v43 = vmax.f32 %v424_v13, 0.0  ;;  %v457_v44 = vmax.f32 %v425_v40, 0.0 }
  0x37   : > { %1406 = vmatmul.mubr.bf16.gmra.mrb[8].mxu0 %v463_v16 }
  0x38   : > { %1409 = vmatprep.mubr.bf16.mxu0 %v464_v34  ;;  %v473_v5 = vpack.c.bf16 %v457_v44, %v456_v43 }
  0x3b   : > { %1422 = vmatmul.mubr.bf16.gmra.mrb[8].mxu1 %v471_v39 }
  0x3c   : > { %1425 = vmatprep.mubr.bf16.mxu1 %v472_v41 }
  0x3f   : > { %1410 = vmatmul.mubr.bf16.gmra.mrb[12].mxu0 %v465_v42 }
  0x43   : > { %1426 = vmatmul.mubr.bf16.gmra.mrb[12].mxu1 %v473_v5 }
  0xfa   : > { %v1399_v45 = vpop.f32.mrb[0].mxu0 }
  0xfb   : > { %v572_v46 = vpop.f32.mrb[1].mxu0  ;;  %v899_v56 = vmul.f32 %v1399_v45, %v1399_v45 }
  0xfc   : > { %v1400_v11 = vpop.f32.mrb[2].mxu0  ;;  %v897_v50 = vmul.f32 %v572_v46, %v572_v46 }
  0xfd   : > { %v1255_v47 = vpack.c.bf16 %v1400_v11, %v1399_v45  ;;  %v575_v49 = vpop.f32.mrb[3].mxu0  ;;  %v900_v62 = vmul.f32 %v1400_v11, %v1400_v11 }
  0xfe   : > { %v1250_v51 = vpack.c.bf16 %v575_v49, %v572_v46  ;;  %v859_v52 = vadd.f32 %v575_v49, %v572_v46  ;;  %v898_v53 = vmul.f32 %v575_v49, %v575_v49  ;;  %v1710_v54 = vpop.f32.mrb[0].mxu1 }
  0xff   : > { %1342 = vst [vmem:[%s1708_s27 + $0x8] sm:$0xff] %v1255_v47   ;;  %v1713_v55 = vpop.f32.mrb[1].mxu1 }
 0x100   : > { %1251 = vst [vmem:[%s1708_s27] sm:$0xff] %v1250_v51   ;;  %v860_v57 = vadd.f32 %v1399_v45, %v859_v52  ;;  %v929_v58 = vadd.f32 %v898_v53, %v897_v50  ;;  %v1716_v59 = vpop.f32.mrb[2].mxu1 }
 0x101   : > { %v1295_v60 = vpack.c.bf16 %v1716_v59, %v1710_v54  ;;  %v1720_v61 = vpop.f32.mrb[3].mxu1 }
 0x102   : > { %v930_v63 = vadd.f32 %v929_v58, %v899_v56  ;;  %v1403_v0 = vpop.f32.mrb[4].mxu0  ;;  %v861_v1 = vadd.f32 %v1400_v11, %v860_v57  ;;  %v1290_v2 = vpack.c.bf16 %v1720_v61, %v1713_v55 }
 0x103   : > { %v588_v3 = vpop.f32.mrb[5].mxu0  ;;  %1350 = vst [vmem:[%s1708_s27 + $0x48] sm:$0xff] %v1295_v60   ;;  %v903_v24 = vmul.f32 %v1403_v0, %v1403_v0 }
 0x104   : > { %v862_v6 = vadd.f32 %v861_v1, %v588_v3  ;;  %v901_v8 = vmul.f32 %v588_v3, %v588_v3  ;;  %v931_v9 = vadd.f32 %v930_v63, %v900_v62  ;;  %v1404_v14 = vpop.f32.mrb[6].mxu0  ;;  %1349 = vst [vmem:[%s1708_s27 + $0x40] sm:$0xff] %v1290_v2  }
 0x105   : > { %v1265_v17 = vpack.c.bf16 %v1404_v14, %v1403_v0  ;;  %v591_v18 = vpop.f32.mrb[7].mxu0  ;;  %v904_v7 = vmul.f32 %v1404_v14, %v1404_v14 }
 0x106   : > { %v932_v19 = vadd.f32 %v931_v9, %v901_v8  ;;  %v1260_v21 = vpack.c.bf16 %v591_v18, %v588_v3  ;;  %v863_v22 = vadd.f32 %v862_v6, %v591_v18  ;;  %v902_v15 = vmul.f32 %v591_v18, %v591_v18  ;;  %v1726_v23 = vpop.f32.mrb[4].mxu1 }
 0x107   : > { %1344 = vst [vmem:[%s1708_s27 + $0x18] sm:$0xff] %v1265_v17   ;;  %v1729_v12 = vpop.f32.mrb[5].mxu1  ;;  %v913_v17 = vmul.f32 %v1713_v55, %v1713_v55 }
 0x108   : > { %1343 = vst [vmem:[%s1708_s27 + $0x10] sm:$0xff] %v1260_v21   ;;  %v864_v25 = vadd.f32 %v1403_v0, %v863_v22  ;;  %v933_v10 = vadd.f32 %v932_v19, %v902_v15  ;;  %v1732_v26 = vpop.f32.mrb[6].mxu1 }
 0x109   : > { %v1305_v27 = vpack.c.bf16 %v1732_v26, %v1726_v23  ;;  %v1736_v48 = vpop.f32.mrb[7].mxu1 }
 0x10a   : > { %v934_v28 = vadd.f32 %v933_v10, %v903_v24  ;;  %v1407_v29 = vpop.f32.mrb[8].mxu0  ;;  %v865_v16 = vadd.f32 %v1404_v14, %v864_v25  ;;  %v1300_v20 = vpack.c.bf16 %v1736_v48, %v1729_v12 }
 0x10b   : > { %v604_v30 = vpop.f32.mrb[9].mxu0  ;;  %1352 = vst [vmem:[%s1708_s27 + $0x58] sm:$0xff] %v1305_v27   ;;  %v907_v41 = vmul.f32 %v1407_v29, %v1407_v29 }
 0x10c   : > { %v866_v4 = vadd.f32 %v865_v16, %v604_v30  ;;  %v905_v31 = vmul.f32 %v604_v30, %v604_v30  ;;  %v935_v32 = vadd.f32 %v934_v28, %v904_v7  ;;  %v1408_v33 = vpop.f32.mrb[10].mxu0  ;;  %1351 = vst [vmem:[%s1708_s27 + $0x50] sm:$0xff] %v1300_v20   ;;  %v914_v28 = vmul.f32 %v1720_v61, %v1720_v61 }
 0x10d   : > { %v1275_v34 = vpack.c.bf16 %v1408_v33, %v1407_v29  ;;  %v607_v35 = vpop.f32.mrb[11].mxu0  ;;  %v908_v46 = vmul.f32 %v1408_v33, %v1408_v33 }
 0x10e   : > { %v936_v36 = vadd.f32 %v935_v32, %v905_v31  ;;  %v1270_v37 = vpack.c.bf16 %v607_v35, %v604_v30  ;;  %v867_v38 = vadd.f32 %v866_v4, %v607_v35  ;;  %v906_v39 = vmul.f32 %v607_v35, %v607_v35  ;;  %v1742_v13 = vpop.f32.mrb[8].mxu1 }
 0x10f   : > { %1346 = vst [vmem:[%s1708_s27 + $0x28] sm:$0xff] %v1275_v34   ;;  %v1745_v40 = vpop.f32.mrb[9].mxu1  ;;  %v916_v30 = vmul.f32 %v1716_v59, %v1716_v59  ;;  %v917_v31 = vmul.f32 %v1729_v12, %v1729_v12  ;;  %v918_v35 = vmul.f32 %v1736_v48, %v1736_v48 }
 0x110   : > { %1345 = vst [vmem:[%s1708_s27 + $0x20] sm:$0xff] %v1270_v37   ;;  %v868_v42 = vadd.f32 %v1407_v29, %v867_v38  ;;  %v937_v43 = vadd.f32 %v936_v36, %v906_v39  ;;  %v1748_v44 = vpop.f32.mrb[10].mxu1  ;;  %v915_v29 = vmul.f32 %v1710_v54, %v1710_v54 }
 0x111   : > { %v1315_v5 = vpack.c.bf16 %v1748_v44, %v1742_v13  ;;  %v1752_v45 = vpop.f32.mrb[11].mxu1 }
 0x112   : > { %v938_v11 = vadd.f32 %v937_v43, %v907_v41  ;;  %v1411_v47 = vpop.f32.mrb[12].mxu0  ;;  %v869_v49 = vadd.f32 %v1408_v33, %v868_v42  ;;  %v1310_v50 = vpack.c.bf16 %v1752_v45, %v1745_v40 }
 0x113   : > { %v620_v51 = vpop.f32.mrb[13].mxu0  ;;  %1354 = vst [vmem:[%s1708_s27 + $0x68] sm:$0xff] %v1315_v5   ;;  %v911_v6 = vmul.f32 %v1411_v47, %v1411_v47  ;;  %v922_v5 = vmul.f32 %v1752_v45, %v1752_v45 }
 0x114   : > { %v870_v52 = vadd.f32 %v869_v49, %v620_v51  ;;  %v909_v53 = vmul.f32 %v620_v51, %v620_v51  ;;  %v939_v56 = vadd.f32 %v938_v11, %v908_v46  ;;  %v1412_v57 = vpop.f32.mrb[14].mxu0  ;;  %1353 = vst [vmem:[%s1708_s27 + $0x60] sm:$0xff] %v1310_v50  }
 0x115   : > { %v1285_v58 = vpack.c.bf16 %v1412_v57, %v1411_v47  ;;  %v623_v60 = vpop.f32.mrb[15].mxu0  ;;  %v912_v21 = vmul.f32 %v1412_v57, %v1412_v57 }
 0x116   : > { %v940_v62 = vadd.f32 %v939_v56, %v909_v53  ;;  %v1280_v63 = vpack.c.bf16 %v623_v60, %v620_v51  ;;  %v871_v0 = vadd.f32 %v870_v52, %v623_v60  ;;  %v910_v1 = vmul.f32 %v623_v60, %v623_v60  ;;  %v1427_v2 = vpop.f32.mrb[12].mxu1 }
 0x117   : > { %1348 = vst [vmem:[%s1708_s27 + $0x38] sm:$0xff] %v1285_v58   ;;  %v684_v3 = vpop.f32.mrb[13].mxu1 }
 0x118   : > { %1347 = vst [vmem:[%s1708_s27 + $0x30] sm:$0xff] %v1280_v63   ;;  %v872_v8 = vadd.f32 %v1411_v47, %v871_v0  ;;  %v941_v9 = vadd.f32 %v940_v62, %v910_v1  ;;  %v1428_v14 = vpop.f32.mrb[14].mxu1 }
 0x119   : > { %v1325_v18 = vpack.c.bf16 %v1428_v14, %v1427_v2  ;;  %v687_v19 = vpop.f32.mrb[15].mxu1  ;;  %v928_v60 = vmul.f32 %v1428_v14, %v1428_v14 }
 0x11a   : > { %v942_v22 = vadd.f32 %v941_v9, %v911_v6  ;;  %v873_v15 = vadd.f32 %v1412_v57, %v872_v8  ;;  %v1320_v24 = vpack.c.bf16 %v687_v19, %v684_v3  ;;  %v926_v56 = vmul.f32 %v687_v19, %v687_v19 }
 0x11b   : > { %1356 = vst [vmem:[%s1708_s27 + $0x78] sm:$0xff] %v1325_v18  }
 0x11c   : > { %v874_v25 = vadd.f32 %v873_v15, %v1713_v55  ;;  %v943_v10 = vadd.f32 %v942_v22, %v912_v21  ;;  %1355 = vst [vmem:[%s1708_s27 + $0x70] sm:$0xff] %v1320_v24  }
 0x11e   : > { %v944_v27 = vadd.f32 %v943_v10, %v913_v17  ;;  %v875_v7 = vadd.f32 %v874_v25, %v1720_v61 }
 0x120   : > { %v876_v16 = vadd.f32 %v1710_v54, %v875_v7  ;;  %v945_v20 = vadd.f32 %v944_v27, %v914_v28  ;;  %v919_v54 = vmul.f32 %v1726_v23, %v1726_v23 }
 0x122   : > { %v946_v4 = vadd.f32 %v945_v20, %v915_v29  ;;  %v877_v55 = vadd.f32 %v1716_v59, %v876_v16  ;;  %v920_v59 = vmul.f32 %v1732_v26, %v1732_v26 }
 0x124   : > { %v878_v32 = vadd.f32 %v877_v55, %v1729_v12  ;;  %v947_v33 = vadd.f32 %v946_v4, %v916_v30  ;;  %v921_v12 = vmul.f32 %v1745_v40, %v1745_v40 }
 0x126   : > { %v948_v34 = vadd.f32 %v947_v33, %v917_v31  ;;  %v879_v61 = vadd.f32 %v878_v32, %v1736_v48 }
 0x128   : > { %v880_v36 = vadd.f32 %v1726_v23, %v879_v61  ;;  %v949_v37 = vadd.f32 %v948_v34, %v918_v35  ;;  %v923_v23 = vmul.f32 %v1742_v13, %v1742_v13 }
 0x12a   : > { %v950_v38 = vadd.f32 %v949_v37, %v919_v54  ;;  %v881_v39 = vadd.f32 %v1732_v26, %v880_v36  ;;  %v924_v26 = vmul.f32 %v1748_v44, %v1748_v44 }
 0x12c   : > { %v882_v41 = vadd.f32 %v881_v39, %v1745_v40  ;;  %v951_v42 = vadd.f32 %v950_v38, %v920_v59  ;;  %v925_v40 = vmul.f32 %v684_v3, %v684_v3 }
 0x12e   : > { %v952_v43 = vadd.f32 %v951_v42, %v921_v12  ;;  %v883_v48 = vadd.f32 %v882_v41, %v1752_v45  ;;  %v927_v45 = vmul.f32 %v1427_v2, %v1427_v2 }
 0x130   : > { %v884_v46 = vadd.f32 %v1742_v13, %v883_v48  ;;  %v953_v11 = vadd.f32 %v952_v43, %v922_v5 }
 0x132   : > { %v954_v47 = vadd.f32 %v953_v11, %v923_v23  ;;  %v885_v49 = vadd.f32 %v1748_v44, %v884_v46 }
 0x134   : > { %v886_v50 = vadd.f32 %v885_v49, %v684_v3  ;;  %v955_v51 = vadd.f32 %v954_v47, %v924_v26 }
 0x136   : > { %v956_v52 = vadd.f32 %v955_v51, %v925_v40  ;;  %v887_v53 = vadd.f32 %v886_v50, %v687_v19 }
 0x138   : > { %v888_v57 = vadd.f32 %v1427_v2, %v887_v53  ;;  %v957_v58 = vadd.f32 %v956_v52, %v926_v56 }
 0x13a   : > { %v889_v62 = vadd.f32 %v1428_v14, %v888_v57  ;;  %v958_v13 = vadd.f32 %v957_v58, %v927_v45 }
 0x13c   : > { %v890_v63 = vrot.slane %v889_v62, 4  ;;  %v959_v0 = vadd.f32 %v958_v13, %v928_v60 }
 0x13e   : > { %v891_v1 = vadd.f32 %v890_v63, %v889_v62  ;;  %v960_v6 = vrot.slane %v959_v0, 4 }
 0x140   : > { %v892_v8 = vrot.slane %v891_v1, 2  ;;  %v961_v9 = vadd.f32 %v960_v6, %v959_v0 }
 0x142   : > { %v893_v44 = vadd.f32 %v892_v8, %v891_v1  ;;  %v962_v3 = vrot.slane %v961_v9, 2 }
 0x144   : > { %v894_v17 = vrot.slane %v893_v44, 1  ;;  %v963_v18 = vadd.f32 %v962_v3, %v961_v9 }
 0x146   : > { %v895_v2 = vadd.f32 %v894_v17, %v893_v44  ;;  %v964_v19 = vrot.slane %v963_v18, 1 }
 0x148   : > { %896 = vst [vmem:[%s282_s6] sm:$0x1] %v895_v2  ;;  %v965_v14 = vadd.f32 %v964_v19, %v963_v18 }
 0x14a   : > { %966 = vst [vmem:[%s282_s6 + $0x1] sm:$0x1] %v965_v14 }
 0x14b PF: > { %s16_s20 = sadd.s32 1, %s1499_s20   ;;  %s1817_s18 = smov %s1495_s19 }
 0x14c   : > { %p13_p5 = scmp.ge.s32.totalorder %s16_s20, 4   ;;  %s1818_s19 = smov %s1820_s21 }
 0x14e   :  { %15 = sbr.rel (!%p13_p5) target bundleno = 2 (0x2), region = 78 }

// kernel: bottleneck_forward.7
= control target key start
LH: loop header
LB: loop body
LE: loop exit
PB: predicated region body
PF: predicated region fallthrough
CT: control target
= control target key end

     0   :  { %9 = vsyncpa [#allocation3], 0  ;;  %s1288_s0 = inlined_call_operand.vmem [shape: bf16[2,256,128], index: 0, kind: input, shape index: {}]   ;;  %s1289_s1 = inlined_call_operand.vmem [shape: f32[1,128], index: 1, kind: input, shape index: {}]   ;;  %s1290_s2 = inlined_call_operand.vmem [shape: f32[1,128], index: 2, kind: input, shape index: {}]   ;;  %s1291_s3 = inlined_call_operand.vmem [shape: bf16[2,256,128], index: 3, kind: input, shape index: {}]   ;;  %s1292_s4 = inlined_call_operand.hbm [shape: f32[2,256,128], index: 4, kind: output, shape index: {}]  }
   0x1   :  { %11 = vsyncpa [#allocation3 + $0x1], 0  ;;  %s1021_s15 = smov 0   ;;  %s1023_s16 = smov 0  }
   0x2   :  { %s1025_s17 = smov 0   ;;  %s1027_s18 = smov 0  }
   0x3   :  { %s1029_s19 = smov 0   ;;  %s1031_s20 = smov 0  }
   0x4 LB: > { %s678_s21 = sadd.s32 4294967295, %s991_s20   ;;  %s679_s22 = sadd.s32 4294967294, %s991_s20   ;;  %s991_s20 = sphi %s1031_s20, %s17_s20   ;;  %s987_s19 = sphi %s1029_s19, %s1299_s19   ;;  %s983_s18 = sphi %s1027_s18, %s1298_s18   ;;  %s979_s17 = sphi %s1025_s17, %s1297_s17   ;;  %s975_s16 = sphi %s1023_s16, %s1296_s16   ;;  %s971_s15 = sphi %s1021_s15, %s1295_s15  }
   0x5   : > { %s29_s23 = sadd.s32 1, %s987_s19  ;;  %s136_s24 = sadd.s32 1, %s979_s17 }
   0x6   : > { %p31_p0 = scmp.ge.s32.totalorder %s29_s23, 2  ;;  %p146_p1 = scmp.ne.s32.totalorder %s979_s17, %s975_s16 }
   0x7   : > { %p147_p2 = scmp.eq.s32.totalorder %s678_s21, 1  ;;  %p152_p3 = scmp.ne.s32.totalorder %s975_s16, %s971_s15 }
   0x8   : > { %s1301_s23 = smov (%p31_p0, %s29_s23), 0  ;;  %p153_p5 = scmp.eq.s32.totalorder %s679_s22, 1 }
   0x9   : > { %p1061_p4 = por %p147_p2, %p146_p1  ;;  %s131_s26 = ssub.s32 %s987_s19, %s1301_s23 }
   0xa   : > { %p682_p6 = scmp.ge.s32.totalorder %s991_s20, 1  ;;  %p134_p7 = scmp.eq.s32.totalorder %s131_s26, 0 }
   0xb   : > { %p1068_p8 = por %p153_p5, %p152_p3  ;;  %p203_p9 = scmp.lt.s32.totalorder %s991_s20, 3 }
   0xc   : > { %s1074_s28 = scalar_select %p134_p7, %s979_s17, %s136_s24  }
   0xd   : > { %p204_p10 = pnand %p682_p6, %p203_p9 }
   0xe   : > { %p243_p11 = scmp.lt.s32.totalorder (!%p204_p10), %s983_s18, 1  ;;  %v1091_v0 = vld [vmem:[%s1289_s1] ss:$0 sm:$0xff] (!%p204_p10)  ;;  %s239_s13 = sand.u32 (!%p204_p10), 1, %s975_s16  }
   0xf   : > { %207 = sbr.rel (%p204_p10) target bundleno = 95 (0x5f), region = 36  ;;  %v1103_v11 = vld [vmem:[%s1290_s2] ss:$0 sm:$0xff] (!%p204_p10)  ;;  %s683_s22 = sshll.u32 (!%p204_p10), %s239_s13, 8 }
  0x10   : > { %s1127_s24 = scalar_lea.vmem (!%p204_p10), [#allocation2], %s683_s22  ;;  %s697_s26 = sshll.u32 (!%p204_p10), %s983_s18, 12 }
  0x11   : > { %s1234_s6 = scalar_lea.hbm (!%p204_p10), %s1292_s4, %s697_s26  ;;  %s993_s8 = smov (!%p204_p10), [#allocation2]  }
  0x12   : > { %s917_s9 = sshll.u32 (!%p204_p10), %s993_s8, 4  ;;  %s918_s9 = int_to_ptr.vmem [resolvable:$false] %s917_s9 }
  0x16   : > { %s244_s29 = scalar_select %p243_p11, %s983_s18, 1 }
  0x17   : > { %s1242_s18 = scalar_lea.sflag [#allocation3], %s239_s13 }
  0x18   : > { %s695_s30 = sshll.u32 %s244_s29, 7  ;;  %s581_s29 = sshll.u32 %s1127_s24, 4  ;;  %s1236_s29 = int_to_ptr.vmem [resolvable:$true] %s581_s29 }
  0x19   : > { %s1081_s7 = scalar_lea.vmem %s1288_s0, %s695_s30  ;;  %s1086_s10 = scalar_lea.vmem %s1291_s3, %s695_s30 }
  0x1a   : > { %v699_v1 = vld [vmem:[%s1081_s7] sm:$0xff]   ;;  %v826_v3 = vld [vmem:[%s1081_s7 + $0x8] sm:$0xff]   ;;  %v827_v9 = vld [vmem:[%s1081_s7 + $0x10] sm:$0xff]   ;;  %p920_p1 = scmp.lt.s32.totalorder %s1236_s29, %s918_s9 }
  0x1b   : > { %v763_v2 = vld [vmem:[%s1086_s10] sm:$0xff]   ;;  %v700_v4 = vunpack.c.l.bf16 %v699_v1  ;;  %v701_v6 = vunpack.c.h.bf16 %v699_v1  ;;  %v841_v8 = vld [vmem:[%s1086_s10 + $0x8] sm:$0xff]   ;;  %v842_v10 = vld [vmem:[%s1086_s10 + $0x10] sm:$0xff]   ;;  %v704_v12 = vunpack.c.l.bf16 %v826_v3  ;;  %v705_v14 = vunpack.c.h.bf16 %v826_v3 }
  0x1c   : > { %v764_v5 = vunpack.c.l.bf16 %v763_v2  ;;  %v765_v7 = vunpack.c.h.bf16 %v763_v2  ;;  %v768_v13 = vunpack.c.l.bf16 %v841_v8  ;;  %v769_v15 = vunpack.c.h.bf16 %v841_v8  ;;  %v828_v16 = vld [vmem:[%s1081_s7 + $0x18] sm:$0xff]   ;;  %v829_v42 = vld [vmem:[%s1081_s7 + $0x20] sm:$0xff]   ;;  %v830_v52 = vld [vmem:[%s1081_s7 + $0x28] sm:$0xff]  }
  0x1d   : > { %v334_v17 = vmul.f32 %v700_v4, %v1091_v0  ;;  %v335_v18 = vmul.f32 %v701_v6, %v1091_v0  ;;  %v708_v19 = vunpack.c.l.bf16 %v827_v9  ;;  %v772_v20 = vunpack.c.l.bf16 %v842_v10  ;;  %v843_v21 = vld [vmem:[%s1086_s10 + $0x18] sm:$0xff]   ;;  %v844_v47 = vld [vmem:[%s1086_s10 + $0x20] sm:$0xff]   ;;  %v845_v57 = vld [vmem:[%s1086_s10 + $0x28] sm:$0xff]  }
  0x1e   : > { %v336_v22 = vmul.f32 %v704_v12, %v1091_v0  ;;  %v337_v23 = vmul.f32 %v705_v14, %v1091_v0  ;;  %v709_v24 = vunpack.c.h.bf16 %v827_v9  ;;  %v773_v25 = vunpack.c.h.bf16 %v842_v10  ;;  %v831_v62 = vld [vmem:[%s1081_s7 + $0x30] sm:$0xff]   ;;  %v832_v14 = vld [vmem:[%s1081_s7 + $0x38] sm:$0xff]  }
  0x1f   : > { %v373_v26 = vadd.f32 %v1103_v11, %v334_v17  ;;  %v374_v27 = vadd.f32 %v1103_v11, %v335_v18  ;;  %v338_v28 = vmul.f32 %v708_v19, %v1091_v0  ;;  %v712_v29 = vunpack.c.l.bf16 %v828_v16  ;;  %v846_v4 = vld [vmem:[%s1086_s10 + $0x30] sm:$0xff]  }
  0x20   : > { %v375_v30 = vadd.f32 %v1103_v11, %v336_v22  ;;  %v376_v31 = vadd.f32 %v1103_v11, %v337_v23  ;;  %v339_v32 = vmul.f32 %v709_v24, %v1091_v0  ;;  %v776_v33 = vunpack.c.l.bf16 %v843_v21  ;;  %v847_v23 = vld [vmem:[%s1086_s10 + $0x38] sm:$0xff]  }
  0x21   : > { %v469_v34 = vadd.f32 %v764_v5, %v373_v26  ;;  %v470_v35 = vadd.f32 %v765_v7, %v374_v27  ;;  %v377_v36 = vadd.f32 %v1103_v11, %v338_v28  ;;  %v340_v37 = vmul.f32 %v712_v29, %v1091_v0 }
  0x22   : > { %v471_v38 = vadd.f32 %v768_v13, %v375_v30  ;;  %v472_v39 = vadd.f32 %v769_v15, %v376_v31  ;;  %v378_v40 = vadd.f32 %v1103_v11, %v339_v32  ;;  %v713_v41 = vunpack.c.h.bf16 %v828_v16  ;;  %v833_v32 = vld [vmem:[%s1081_s7 + $0x40] sm:$0xff]  }
  0x23   : > { %v501_v43 = vmax.f32 %v469_v34, 0.0  ;;  %v502_v44 = vmax.f32 %v470_v35, 0.0  ;;  %v473_v45 = vadd.f32 %v772_v20, %v377_v36  ;;  %v379_v46 = vadd.f32 %v1103_v11, %v340_v37  ;;  %v848_v37 = vld [vmem:[%s1086_s10 + $0x40] sm:$0xff]  }
  0x24   : > { %v503_v48 = vmax.f32 %v471_v38, 0.0  ;;  %v504_v49 = vmax.f32 %v472_v39, 0.0  ;;  %v474_v50 = vadd.f32 %v773_v25, %v378_v40  ;;  %v341_v51 = vmul.f32 %v713_v41, %v1091_v0 }
  0x25   : > { %533 = vst [vmem:[%s1127_s24] sm:$0xff] %v501_v43  ;;  %534 = vst [vmem:[%s1127_s24 + $0x8] sm:$0xff] %v502_v44  ;;  %v505_v53 = vmax.f32 %v473_v45, 0.0  ;;  %v475_v54 = vadd.f32 %v776_v33, %v379_v46  ;;  %v777_v55 = vunpack.c.h.bf16 %v843_v21  ;;  %v716_v56 = vunpack.c.l.bf16 %v829_v42  ;;  %v834_v46 = vld [vmem:[%s1081_s7 + $0x48] sm:$0xff]  }
  0x26   : > { %535 = vst [vmem:[%s1127_s24 + $0x10] sm:$0xff] %v503_v48  ;;  %536 = vst [vmem:[%s1127_s24 + $0x18] sm:$0xff] %v504_v49  ;;  %v506_v58 = vmax.f32 %v474_v50, 0.0  ;;  %v380_v59 = vadd.f32 %v1103_v11, %v341_v51  ;;  %v780_v60 = vunpack.c.l.bf16 %v844_v47  ;;  %v717_v61 = vunpack.c.h.bf16 %v829_v42 }
  0x27   : > { %537 = vst [vmem:[%s1127_s24 + $0x20] sm:$0xff] %v505_v53  ;;  %v507_v63 = vmax.f32 %v475_v54, 0.0  ;;  %v342_v1 = vmul.f32 %v716_v56, %v1091_v0  ;;  %v781_v2 = vunpack.c.h.bf16 %v844_v47  ;;  %v720_v3 = vunpack.c.l.bf16 %v830_v52  ;;  %v849_v47 = vld [vmem:[%s1086_s10 + $0x48] sm:$0xff]   ;;  %v835_v56 = vld [vmem:[%s1081_s7 + $0x50] sm:$0xff]  }
  0x28   : > { %538 = vst [vmem:[%s1127_s24 + $0x28] sm:$0xff] %v506_v58  ;;  %v476_v5 = vadd.f32 %v777_v55, %v380_v59  ;;  %v343_v6 = vmul.f32 %v717_v61, %v1091_v0  ;;  %v784_v7 = vunpack.c.l.bf16 %v845_v57  ;;  %v721_v8 = vunpack.c.h.bf16 %v830_v52  ;;  %v850_v61 = vld [vmem:[%s1086_s10 + $0x50] sm:$0xff]  }
  0x29   : > { %539 = vst [vmem:[%s1127_s24 + $0x30] sm:$0xff] %v507_v63  ;;  %v381_v9 = vadd.f32 %v1103_v11, %v342_v1  ;;  %v344_v10 = vmul.f32 %v720_v3, %v1091_v0  ;;  %v785_v12 = vunpack.c.h.bf16 %v845_v57  ;;  %v724_v13 = vunpack.c.l.bf16 %v831_v62 }
  0x2a   : > { %v508_v15 = vmax.f32 %v476_v5, 0.0  ;;  %v382_v16 = vadd.f32 %v1103_v11, %v343_v6  ;;  %v345_v17 = vmul.f32 %v721_v8, %v1091_v0  ;;  %v788_v18 = vunpack.c.l.bf16 %v846_v4 }
  0x2b   : > { %v477_v19 = vadd.f32 %v780_v60, %v381_v9  ;;  %v383_v20 = vadd.f32 %v1103_v11, %v344_v10  ;;  %v346_v21 = vmul.f32 %v724_v13, %v1091_v0  ;;  %v725_v22 = vunpack.c.h.bf16 %v831_v62 }
  0x2c   : > { %540 = vst [vmem:[%s1127_s24 + $0x38] sm:$0xff] %v508_v15  ;;  %v478_v24 = vadd.f32 %v781_v2, %v382_v16  ;;  %v384_v25 = vadd.f32 %v1103_v11, %v345_v17  ;;  %v789_v26 = vunpack.c.h.bf16 %v846_v4  ;;  %v728_v27 = vunpack.c.l.bf16 %v832_v14  ;;  %v851_v17 = vld [vmem:[%s1086_s10 + $0x58] sm:$0xff]  }
  0x2d   : > { %v509_v28 = vmax.f32 %v477_v19, 0.0  ;;  %v479_v29 = vadd.f32 %v784_v7, %v383_v20  ;;  %v385_v30 = vadd.f32 %v1103_v11, %v346_v21  ;;  %v347_v31 = vmul.f32 %v725_v22, %v1091_v0 }
  0x2e   : > { %v510_v33 = vmax.f32 %v478_v24, 0.0  ;;  %v480_v34 = vadd.f32 %v785_v12, %v384_v25  ;;  %v348_v35 = vmul.f32 %v728_v27, %v1091_v0  ;;  %v792_v36 = vunpack.c.l.bf16 %v847_v23  ;;  %v836_v12 = vld [vmem:[%s1081_s7 + $0x58] sm:$0xff]  }
  0x2f   : > { %541 = vst [vmem:[%s1127_s24 + $0x40] sm:$0xff] %v509_v28  ;;  %v511_v38 = vmax.f32 %v479_v29, 0.0  ;;  %v481_v39 = vadd.f32 %v788_v18, %v385_v30  ;;  %v386_v40 = vadd.f32 %v1103_v11, %v347_v31  ;;  %v729_v41 = vunpack.c.h.bf16 %v832_v14  ;;  %v852_v31 = vld [vmem:[%s1086_s10 + $0x60] sm:$0xff]  }
  0x30   : > { %542 = vst [vmem:[%s1127_s24 + $0x48] sm:$0xff] %v510_v33  ;;  %v512_v42 = vmax.f32 %v480_v34, 0.0  ;;  %v387_v43 = vadd.f32 %v1103_v11, %v348_v35  ;;  %v793_v44 = vunpack.c.h.bf16 %v847_v23  ;;  %v732_v45 = vunpack.c.l.bf16 %v833_v32 }
  0x31   : > { %543 = vst [vmem:[%s1127_s24 + $0x50] sm:$0xff] %v511_v38  ;;  %v513_v48 = vmax.f32 %v481_v39, 0.0  ;;  %v482_v49 = vadd.f32 %v789_v26, %v386_v40  ;;  %v349_v50 = vmul.f32 %v729_v41, %v1091_v0  ;;  %v796_v51 = vunpack.c.l.bf16 %v848_v37  ;;  %v837_v26 = vld [vmem:[%s1081_s7 + $0x60] sm:$0xff]   ;;  %v838_v40 = vld [vmem:[%s1081_s7 + $0x68] sm:$0xff]  }
  0x32   : > { %544 = vst [vmem:[%s1127_s24 + $0x58] sm:$0xff] %v512_v42  ;;  %v483_v52 = vadd.f32 %v792_v36, %v387_v43  ;;  %v350_v53 = vmul.f32 %v732_v45, %v1091_v0  ;;  %v733_v54 = vunpack.c.h.bf16 %v833_v32  ;;  %v797_v55 = vunpack.c.h.bf16 %v848_v37  ;;  %v853_v41 = vld [vmem:[%s1086_s10 + $0x68] sm:$0xff]  }
  0x33   : > { %545 = vst [vmem:[%s1127_s24 + $0x60] sm:$0xff] %v513_v48  ;;  %v514_v57 = vmax.f32 %v482_v49, 0.0  ;;  %v388_v58 = vadd.f32 %v1103_v11, %v349_v50  ;;  %v736_v59 = vunpack.c.l.bf16 %v834_v46  ;;  %v800_v60 = vunpack.c.l.bf16 %v849_v47  ;;  %v839_v50 = vld [vmem:[%s1081_s7 + $0x70] sm:$0xff]  }
  0x34   : > { %v515_v62 = vmax.f32 %v483_v52, 0.0  ;;  %v389_v63 = vadd.f32 %v1103_v11, %v350_v53  ;;  %v351_v1 = vmul.f32 %v733_v54, %v1091_v0  ;;  %v737_v2 = vunpack.c.h.bf16 %v834_v46 }
  0x35   : > { %546 = vst [vmem:[%s1127_s24 + $0x68] sm:$0xff] %v514_v57  ;;  %v484_v3 = vadd.f32 %v793_v44, %v388_v58  ;;  %v352_v4 = vmul.f32 %v736_v59, %v1091_v0  ;;  %v801_v5 = vunpack.c.h.bf16 %v849_v47  ;;  %v740_v6 = vunpack.c.l.bf16 %v835_v56  ;;  %v854_v59 = vld [vmem:[%s1086_s10 + $0x70] sm:$0xff]  }
  0x36   : > { %547 = vst [vmem:[%s1127_s24 + $0x70] sm:$0xff] %v515_v62  ;;  %v485_v7 = vadd.f32 %v796_v51, %v389_v63  ;;  %v390_v8 = vadd.f32 %v1103_v11, %v351_v1  ;;  %v353_v9 = vmul.f32 %v737_v2, %v1091_v0  ;;  %v804_v10 = vunpack.c.l.bf16 %v850_v61 }
  0x37   : > { %v516_v13 = vmax.f32 %v484_v3, 0.0  ;;  %v391_v14 = vadd.f32 %v1103_v11, %v352_v4  ;;  %v354_v15 = vmul.f32 %v740_v6, %v1091_v0  ;;  %v741_v16 = vunpack.c.h.bf16 %v835_v56 }
  0x38   : > { %v517_v18 = vmax.f32 %v485_v7, 0.0  ;;  %v486_v19 = vadd.f32 %v797_v55, %v390_v8  ;;  %v392_v20 = vadd.f32 %v1103_v11, %v353_v9  ;;  %v805_v21 = vunpack.c.h.bf16 %v850_v61 }
  0x39   : > { %548 = vst [vmem:[%s1127_s24 + $0x78] sm:$0xff] %v516_v13  ;;  %v487_v22 = vadd.f32 %v800_v60, %v391_v14  ;;  %v393_v23 = vadd.f32 %v1103_v11, %v354_v15  ;;  %v355_v24 = vmul.f32 %v741_v16, %v1091_v0  ;;  %v744_v25 = vunpack.c.l.bf16 %v836_v12 }
  0x3a   : > { %549 = vst [vmem:[%s1127_s24 + $0x80] sm:$0xff] %v517_v18  ;;  %v518_v27 = vmax.f32 %v486_v19, 0.0  ;;  %v488_v28 = vadd.f32 %v801_v5, %v392_v20  ;;  %v808_v29 = vunpack.c.l.bf16 %v851_v17  ;;  %v745_v30 = vunpack.c.h.bf16 %v836_v12  ;;  %v840_v5 = vld [vmem:[%s1081_s7 + $0x78] sm:$0xff]   ;;  %s913_s7 = scalar_lea.vmem %s1236_s29, 4096 }
  0x3b   : > { %v519_v32 = vmax.f32 %v487_v22, 0.0  ;;  %v489_v33 = vadd.f32 %v804_v10, %v393_v23  ;;  %v394_v34 = vadd.f32 %v1103_v11, %v355_v24  ;;  %v356_v35 = vmul.f32 %v744_v25, %v1091_v0  ;;  %v855_v10 = vld [vmem:[%s1086_s10 + $0x78] sm:$0xff]   ;;  %p914_p12 = scmp.ne.s32.totalorder %s1236_s29, %s913_s7  ;;  %s919_s10 = scalar_lea.vmem %s918_s9, 8192 }
  0x3c   : > { %550 = vst [vmem:[%s1127_s24 + $0x88] sm:$0xff] %v518_v27  ;;  %v520_v36 = vmax.f32 %v488_v28, 0.0  ;;  %v357_v37 = vmul.f32 %v745_v30, %v1091_v0  ;;  %v809_v38 = vunpack.c.h.bf16 %v851_v17  ;;  %v748_v39 = vunpack.c.l.bf16 %v837_v26  ;;  %p921_p2 = scmp.lt.s32.totalorder %s919_s10, %s913_s7 }
  0x3d   : > { %551 = vst [vmem:[%s1127_s24 + $0x90] sm:$0xff] %v519_v32  ;;  %v521_v42 = vmax.f32 %v489_v33, 0.0  ;;  %v490_v43 = vadd.f32 %v805_v21, %v394_v34  ;;  %v395_v44 = vadd.f32 %v1103_v11, %v356_v35  ;;  %v812_v45 = vunpack.c.l.bf16 %v852_v31  ;;  %p915_p13 = pnand %p914_p12, %p1061_p4 }
  0x3e   : > { %552 = vst [vmem:[%s1127_s24 + $0x98] sm:$0xff] %v520_v36  ;;  %v396_v46 = vadd.f32 %v1103_v11, %v357_v37  ;;  %v358_v47 = vmul.f32 %v748_v39, %v1091_v0  ;;  %v749_v48 = vunpack.c.h.bf16 %v837_v26  ;;  %v813_v49 = vunpack.c.h.bf16 %v852_v31  ;;  %p922_p3 = por %p921_p2, %p920_p1 }
  0x3f   : > { %553 = vst [vmem:[%s1127_s24 + $0xa0] sm:$0xff] %v521_v42  ;;  %v522_v51 = vmax.f32 %v490_v43, 0.0  ;;  %v491_v52 = vadd.f32 %v808_v29, %v395_v44  ;;  %v752_v53 = vunpack.c.l.bf16 %v838_v40  ;;  %v816_v54 = vunpack.c.l.bf16 %v853_v41  ;;  %p916_p0 = pneg %p915_p13 }
  0x40   : > { %v492_v55 = vadd.f32 %v809_v38, %v396_v46  ;;  %v397_v56 = vadd.f32 %v1103_v11, %v358_v47  ;;  %v359_v57 = vmul.f32 %v749_v48, %v1091_v0  ;;  %v753_v58 = vunpack.c.h.bf16 %v838_v40 }
  0x41   : > { %554 = vst [vmem:[%s1127_s24 + $0xa8] sm:$0xff] %v522_v51  ;;  %v523_v60 = vmax.f32 %v491_v52, 0.0  ;;  %v360_v61 = vmul.f32 %v752_v53, %v1091_v0  ;;  %v817_v62 = vunpack.c.h.bf16 %v853_v41  ;;  %v756_v63 = vunpack.c.l.bf16 %v839_v50  ;;  %p923_p5 = pnand %p922_p3, %p916_p0 }
  0x42   : > { %v524_v1 = vmax.f32 %v492_v55, 0.0  ;;  %v493_v2 = vadd.f32 %v812_v45, %v397_v56  ;;  %v398_v3 = vadd.f32 %v1103_v11, %v359_v57  ;;  %v361_v4 = vmul.f32 %v753_v58, %v1091_v0 }
  0x43   : > { %555 = vst [vmem:[%s1127_s24 + $0xb0] sm:$0xff] %v523_v60  ;;  %v399_v6 = vadd.f32 %v1103_v11, %v360_v61  ;;  %v362_v7 = vmul.f32 %v756_v63, %v1091_v0  ;;  %v820_v8 = vunpack.c.l.bf16 %v854_v59  ;;  %v757_v9 = vunpack.c.h.bf16 %v839_v50 }
  0x44   : > { %556 = vst [vmem:[%s1127_s24 + $0xb8] sm:$0xff] %v524_v1  ;;  %v525_v12 = vmax.f32 %v493_v2, 0.0  ;;  %v494_v13 = vadd.f32 %v813_v49, %v398_v3  ;;  %v400_v14 = vadd.f32 %v1103_v11, %v361_v4  ;;  %v821_v15 = vunpack.c.h.bf16 %v854_v59 }
  0x45   : > { %v495_v16 = vadd.f32 %v816_v54, %v399_v6  ;;  %v401_v17 = vadd.f32 %v1103_v11, %v362_v7  ;;  %v363_v18 = vmul.f32 %v757_v9, %v1091_v0  ;;  %v760_v19 = vunpack.c.l.bf16 %v840_v5 }
  0x46   : > { %557 = vst [vmem:[%s1127_s24 + $0xc0] sm:$0xff] %v525_v12  ;;  %v526_v20 = vmax.f32 %v494_v13, 0.0  ;;  %v496_v21 = vadd.f32 %v817_v62, %v400_v14  ;;  %v824_v22 = vunpack.c.l.bf16 %v855_v10  ;;  %v761_v23 = vunpack.c.h.bf16 %v840_v5 }
  0x47   : > { %v527_v24 = vmax.f32 %v495_v16, 0.0  ;;  %v497_v25 = vadd.f32 %v820_v8, %v401_v17  ;;  %v402_v26 = vadd.f32 %v1103_v11, %v363_v18  ;;  %v364_v27 = vmul.f32 %v760_v19, %v1091_v0 }
  0x48   : > { %558 = vst [vmem:[%s1127_s24 + $0xc8] sm:$0xff] %v526_v20  ;;  %v528_v28 = vmax.f32 %v496_v21, 0.0  ;;  %v365_v29 = vmul.f32 %v761_v23, %v1091_v0  ;;  %v825_v30 = vunpack.c.h.bf16 %v855_v10 }
  0x49   : > { %559 = vst [vmem:[%s1127_s24 + $0xd0] sm:$0xff] %v527_v24  ;;  %v529_v31 = vmax.f32 %v497_v25, 0.0  ;;  %v498_v32 = vadd.f32 %v821_v15, %v402_v26  ;;  %v403_v33 = vadd.f32 %v1103_v11, %v364_v27 }
  0x4a   : > { %560 = vst [vmem:[%s1127_s24 + $0xd8] sm:$0xff] %v528_v28  ;;  %v404_v34 = vadd.f32 %v1103_v11, %v365_v29 }
  0x4b   : > { %561 = vst [vmem:[%s1127_s24 + $0xe0] sm:$0xff] %v529_v31  ;;  %v530_v35 = vmax.f32 %v498_v32, 0.0  ;;  %v499_v36 = vadd.f32 %v824_v22, %v403_v33 }
  0x4c   : > { %v500_v37 = vadd.f32 %v825_v30, %v404_v34 }
  0x4d   : > { %562 = vst [vmem:[%s1127_s24 + $0xe8] sm:$0xff] %v530_v35  ;;  %v531_v0 = vmax.f32 %v499_v36, 0.0 }
  0x4e   : > { %v532_v11 = vmax.f32 %v500_v37, 0.0 }
  0x4f   : > { %563 = vst [vmem:[%s1127_s24 + $0xf0] sm:$0xff] %v531_v0 }
  0x50   : > { %564 = vst [vmem:[%s1127_s24 + $0xf8] sm:$0xff] %v532_v11 }
  0x51   : > { %926 = shalt.err (!%p923_p5)
}
  0x52   : > { %s927_s11 = scalar_lea.hbm %s1234_s6, 4096  ;;  %s931_s14 = scalar_lea.hbm %s1292_s4, 8192 }
  0x53   : > { %p928_p6 = scmp.ne.s32.totalorder %s1234_s6, %s927_s11  ;;  %p932_p10 = scmp.lt.u32.totalorder %s1234_s6, %s1292_s4 }
  0x54   : > { %p933_p11 = scmp.lt.u32.totalorder %s931_s14, %s927_s11  ;;  %p935_p13 = scmp.lt.u32.totalorder %s927_s11, %s1234_s6 }
  0x55   : > { %p929_p7 = pnand %p928_p6, %p1061_p4 }
  0x56   : > { %p934_p12 = por %p933_p11, %p932_p10 }
  0x57   : > { %p930_p9 = pneg %p929_p7 }
  0x58   : > { %p936_p0 = por %p935_p13, %p934_p12 }
  0x5a   : > { %p937_p1 = pnand %p936_p0, %p930_p9 }
  0x5c   : > { %940 = shalt.err (!%p937_p1)
}
  0x5d   : > { %s994_s24 = smov 128   ;;  %s995_s26 = smov 8  }
  0x5e   : > { %856 = dma.vmem_to_hbm [thread:$0]  (%p1061_p4), %s1236_s29, 4096, %s1234_s6, %s1242_s18, %s994_s24, %s994_s24, %s995_s26  }
  0x5f PF: > { %p862_p2 = scmp.ge.s32.totalorder %s991_s20, 2  ;;  %s596_s30 = sand.u32 1, %s971_s15  }
  0x60   : > { %s597_s5 = scalar_lea.sflag [#allocation3], %s596_s30 }
  0x61   : > { %p859_p3 = pnand %p862_p2, %p1068_p8 }
  0x63   : > { %966 = dma.done.wait (!%p859_p3), %s597_s5, 4096  }
  0x64   : > { %968 = vsyncadd (!%p859_p3), %s597_s5, 4294963200  ;;  %s17_s20 = sadd.s32 1, %s991_s20   ;;  %s1295_s15 = smov %s975_s16 }
  0x65   : > { %p14_p5 = scmp.ge.s32.totalorder %s17_s20, 4   ;;  %s1296_s16 = smov %s979_s17 }
  0x66   : > { %s1297_s17 = smov %s1074_s28  ;;  %s1298_s18 = smov %s987_s19 }
  0x67   : > { %s1299_s19 = smov %s1301_s23  ;;  %16 = sbr.rel (!%p14_p5) target bundleno = 4 (0x4), region = 74 }
  0x6e   :  { %602 = vsyncpa [#allocation3], 1 }
  0x6f   :  { %604 = vsyncpa [#allocation3 + $0x1], 1 }

// kernel: bottleneck_forward.5
= control target key start
LH: loop header
LB: loop body
LE: loop exit
PB: predicated region body
PF: predicated region fallthrough
CT: control target
= control target key end

     0   :  { %s6840_s24 = smov 0   ;;  %s7873_s0 = inlined_call_operand.vmem [shape: bf16[2,256,128], index: 0, kind: input, shape index: {}]   ;;  %s7874_s1 = inlined_call_operand.vmem [shape: f32[1,128], index: 1, kind: input, shape index: {}]   ;;  %s7875_s2 = inlined_call_operand.vmem [shape: f32[1,128], index: 2, kind: input, shape index: {}]   ;;  %s7876_s3 = inlined_call_operand.vmem [shape: bf16[256,1], index: 3, kind: input, shape index: {}]   ;;  %s7877_s4 = inlined_call_operand.vmem [shape: bf16[256,1], index: 4, kind: input, shape index: {}]   ;;  %s7878_s5 = inlined_call_operand.vmem [shape: bf16[9,128,128], index: 5, kind: input, shape index: {}]   ;;  %s7879_s6 = inlined_call_operand.vmem [shape: bf16[2,256,128], index: 6, kind: output, shape index: {0}]   ;;  %s7880_s7 = inlined_call_operand.vmem [shape: f32[2,2,128], index: 7, kind: output, shape index: {1}]  }
   0x1 LB: > { %s5275_s25 = sadd.s32 4294967295, %s6796_s24   ;;  %p5279_p0 = scmp.ge.s32.totalorder %s6796_s24, 1  ;;  %s6796_s24 = sphi %s6840_s24, %s18_s24  }
   0x2   : > { %p240_p1 = scmp.lt.s32.totalorder %s6796_s24, 3 }
   0x4   : > { %p241_p2 = pnand %p5279_p0, %p240_p1 }
   0x5   : > { %v483_v0 = vld [vmem:[%s7876_s3 + $0x8] sm:$0xf] (!%p241_p2)  ;;  %v481_v1 = vld [vmem:[%s7876_s3] sm:$0xf] (!%p241_p2)  ;;  %v6798_v3 = vmov (!%p241_p2), 0   ;;  %v6696_v18 = vld [vmem:[%s7878_s5 + $0x10] sm:$0xff] (!%p241_p2)  }
   0x6   : > { %244 = sbr.rel (%p241_p2) target bundleno = 707 (0x2c3), region = 44  ;;  %v6693_v2 = vld [vmem:[%s7878_s5] sm:$0xff] (!%p241_p2)   ;;  %6692 = vset.pattern.permute.xlu1 (!%p241_p2), %v6798_v3  ;;  %1009 = vst [vmem:[#allocation2] sm:$0xff] (!%p241_p2), %v6798_v3  ;;  %6691 = vset.pattern.permute.xlu0 (!%p241_p2), %v6798_v3  ;;  %v484_v4 = vld [vmem:[%s7876_s3 + $0xc] sm:$0xf] (!%p241_p2)  ;;  %p276_p3 = scmp.lt.s32.totalorder (!%p241_p2), %s5275_s25, 1 }
   0x7   : > { %539 = vperm.xlu1 (!%p241_p2), %6692, %v483_v0   ;;  %515 = vperm.xlu0 (!%p241_p2), %6691, %v481_v1   ;;  %v482_v5 = vld [vmem:[%s7876_s3 + $0x4] sm:$0xf] (!%p241_p2)  ;;  %v486_v6 = vld [vmem:[%s7876_s3 + $0x14] sm:$0xf] (!%p241_p2)  ;;  %v485_v7 = vld [vmem:[%s7876_s3 + $0x10] sm:$0xf] (!%p241_p2) }
   0x8   : > { %5977 = vmatprep.subr.bf16.mxu1 (!%p241_p2), %v6693_v2  ;;  %5993 = vmatprep.mubr.bf16.mxu1 (!%p241_p2), %v6798_v3  ;;  %v488_v8 = vld [vmem:[%s7876_s3 + $0x1c] sm:$0xf] (!%p241_p2)  ;;  %v487_v9 = vld [vmem:[%s7876_s3 + $0x18] sm:$0xf] (!%p241_p2)  ;;  %v490_v10 = vld [vmem:[%s7876_s3 + $0x24] sm:$0xf] (!%p241_p2) }
   0x9   : > { %5978 = vmatpush3.bf16.msra.mxu1 (!%p241_p2), %v6693_v2  ;;  %v489_v11 = vld [vmem:[%s7876_s3 + $0x20] sm:$0xf] (!%p241_p2)  ;;  %v492_v12 = vld [vmem:[%s7876_s3 + $0x2c] sm:$0xf] (!%p241_p2)  ;;  %v491_v13 = vld [vmem:[%s7876_s3 + $0x28] sm:$0xf] (!%p241_p2) }
   0xa   : > { %v494_v14 = vld [vmem:[%s7876_s3 + $0x34] sm:$0xf] (!%p241_p2)  ;;  %v493_v15 = vld [vmem:[%s7876_s3 + $0x30] sm:$0xf] (!%p241_p2)  ;;  %v6694_v16 = vld [vmem:[%s7878_s5 + $0x8] sm:$0xff] (!%p241_p2)   ;;  %vm1010_vm0 = vcmask (!%p241_p2), 1040384  }
   0xb   : > { %551 = vperm.xlu1 (!%p241_p2), %6692, %v484_v4   ;;  %527 = vperm.xlu0 (!%p241_p2), %6691, %v482_v5   ;;  %v6695_v17 = vld [vmem:[%s7878_s5 + $0x100] sm:$0xff] (!%p241_p2)   ;;  %v496_v19 = vld [vmem:[%s7876_s3 + $0x3c] sm:$0xf] (!%p241_p2)  ;;  %v495_v20 = vld [vmem:[%s7876_s3 + $0x38] sm:$0xf] (!%p241_p2)  ;;  %vm1160_vm3 = vcmask (!%p241_p2), 1047552  }
   0xc   : > { %5979 = vmatprep.subr.bf16.mxu1 (!%p241_p2), %v6694_v16  ;;  %v6697_v21 = vld [vmem:[%s7878_s5 + $0x108] sm:$0xff] (!%p241_p2)   ;;  %6169 = vmatprep.subr.bf16.mxu0 (!%p241_p2), %v6695_v17  ;;  %vm1011_vm1 = vsmask.f32 (!%p241_p2), 256  ;;  %v6698_v24 = vld [vmem:[%s7878_s5 + $0x18] sm:$0xff] (!%p241_p2)   ;;  %v1207_v25 = vld [vmem:[%s7877_s4 + $0x4] sm:$0xf] (!%p241_p2) }
   0xd   : > { %5980 = vmatpush3.bf16.msra.mxu1 %v6694_v16  ;;  %v1013_v22 = vld [vmem:[#allocation2 + $0x8] sm:$0x1]  ;;  %6170 = vmatpush3.bf16.msra.mxu0 %v6695_v17  ;;  %s7890_s25 = smov (!%p276_p3, %s5275_s25), 1  ;;  %vm6918_vm2 = vmand %vm1010_vm0, %vm1011_vm1  ;;  %v1206_v26 = vld [vmem:[%s7877_s4] sm:$0xf]  ;;  %vm1884_vm8 = vcmask 1047559  }
   0xe   : > { %5981 = vmatprep.subr.bf16.mxu1 %v6696_v18  ;;  %6171 = vmatprep.subr.bf16.mxu0 %v6697_v21  ;;  %v1014_v27 = vsel %vm6918_vm2, 0, %v1013_v22  ;;  %s5553_s9 = sshll.u32 %s7890_s25, 7  ;;  %v6937_v28 = vld [vmem:[%s7874_s1] ss:$0 sm:$0xff]  ;;  %v6699_v29 = vld [vmem:[%s7878_s5 + $0x110] sm:$0xff]   ;;  %v6701_v42 = vld [vmem:[%s7878_s5 + $0x118] sm:$0xff]  }
   0xf   : > { %575 = vperm.xlu1 %6692, %v486_v6   ;;  %563 = vperm.xlu0 %6691, %v485_v7   ;;  %1015 = vst [vmem:[#allocation2 + $0x8] sm:$0x1] %v1014_v27  ;;  %s6944_s14 = scalar_lea.vmem %s7873_s0, %s5553_s9  ;;  %v6953_v31 = vld [vmem:[%s7875_s2] ss:$0 sm:$0xff]  ;;  %v498_v34 = vld [vmem:[%s7876_s3 + $0x44] sm:$0xf]  ;;  %s7844_s26 = scalar_lea.vmem %s7879_s6, %s5553_s9 }
  0x10   : > { %v5731_v30 = vld [vmem:[%s6944_s14 + $0x8] sm:$0xff]   ;;  %v5588_v32 = vld [vmem:[%s6944_s14] sm:$0xff]   ;;  %v5732_v33 = vld [vmem:[%s6944_s14 + $0x10] sm:$0xff]   ;;  %vm1735_vm4 = vsmask.f32 7424  ;;  %s5284_s9 = sshll.u32 %s7890_s25, 1 }
  0x11   : > { %5982 = vmatpush3.bf16.msra.mxu1 %v6696_v18  ;;  %6172 = vmatpush3.bf16.msra.mxu0 %v6697_v21  ;;  %v5593_v35 = vunpack.c.l.bf16 %v5731_v30  ;;  %v5594_v36 = vunpack.c.h.bf16 %v5731_v30  ;;  %v5589_v37 = vunpack.c.l.bf16 %v5588_v32  ;;  %v5590_v38 = vunpack.c.h.bf16 %v5588_v32  ;;  %v6700_v39 = vld [vmem:[%s7878_s5 + $0x20] sm:$0xff]   ;;  %v5733_v43 = vld [vmem:[%s6944_s14 + $0x18] sm:$0xff]   ;;  %v6702_v53 = vld [vmem:[%s7878_s5 + $0x28] sm:$0xff]   ;;  %s289_s29 = scalar_lea.vmem %s7880_s7, %s5284_s9 }
  0x12   : > { %5983 = vmatprep.subr.bf16.mxu1 %v6698_v24  ;;  %6173 = vmatprep.subr.bf16.mxu0 %v6699_v29  ;;  %v5597_v40 = vunpack.c.l.bf16 %v5732_v33  ;;  %v5598_v41 = vunpack.c.h.bf16 %v5732_v33  ;;  %v497_v44 = vld [vmem:[%s7876_s3 + $0x40] sm:$0xf]  ;;  %v5601_v51 = vunpack.c.l.bf16 %v5733_v43  ;;  %v5602_v52 = vunpack.c.h.bf16 %v5733_v43  ;;  %v1209_v55 = vld [vmem:[%s7877_s4 + $0xc] sm:$0xf]  ;;  %v1208_v61 = vld [vmem:[%s7877_s4 + $0x8] sm:$0xf] }
  0x13   : > { %599 = vperm.xlu1 %6692, %v488_v8   ;;  %587 = vperm.xlu0 %6691, %v487_v9   ;;  %v364_v45 = vmul.f32 %v5593_v35, %v6937_v28  ;;  %v365_v46 = vmul.f32 %v5594_v36, %v6937_v28  ;;  %v362_v47 = vmul.f32 %v5589_v37, %v6937_v28  ;;  %v5734_v54 = vld [vmem:[%s6944_s14 + $0x20] sm:$0xff]   ;;  %v6704_v6 = vld [vmem:[%s7878_s5 + $0x30] sm:$0xff]   ;;  %v5735_v7 = vld [vmem:[%s6944_s14 + $0x28] sm:$0xff]   ;;  %vm1161_vm6 = vsmask.f32 7938 }
  0x14   : > { %v363_v48 = vmul.f32 %v5590_v38, %v6937_v28  ;;  %v366_v49 = vmul.f32 %v5597_v40, %v6937_v28  ;;  %v367_v50 = vmul.f32 %v5598_v41, %v6937_v28  ;;  %v6703_v60 = vld [vmem:[%s7878_s5 + $0x120] sm:$0xff]   ;;  %v368_v0 = vmul.f32 %v5601_v51, %v6937_v28  ;;  %v6705_v17 = vld [vmem:[%s7878_s5 + $0x128] sm:$0xff]   ;;  %v1210_v18 = vld [vmem:[%s7877_s4 + $0x10] sm:$0xf] }
  0x15   : > { %5984 = vmatpush3.bf16.msra.mxu1 %v6698_v24  ;;  %6174 = vmatpush3.bf16.msra.mxu0 %v6699_v29  ;;  %v403_v56 = vadd.f32 %v6953_v31, %v364_v45  ;;  %v404_v57 = vadd.f32 %v6953_v31, %v365_v46  ;;  %v401_v58 = vadd.f32 %v6953_v31, %v362_v47  ;;  %v5605_v1 = vunpack.c.l.bf16 %v5734_v54  ;;  %v5736_v24 = vld [vmem:[%s6944_s14 + $0x30] sm:$0xff]   ;;  %vm7023_vm5 = vmand %vm1160_vm3, %vm1735_vm4  ;;  %v5737_v32 = vld [vmem:[%s6944_s14 + $0x38] sm:$0xff]  }
  0x16   : > { %5985 = vmatprep.subr.bf16.mxu1 %v6700_v39  ;;  %v402_v59 = vadd.f32 %v6953_v31, %v363_v48  ;;  %6175 = vmatprep.subr.bf16.mxu0 %v6701_v42  ;;  %v405_v62 = vadd.f32 %v6953_v31, %v366_v49  ;;  %v406_v63 = vadd.f32 %v6953_v31, %v367_v50  ;;  %v5609_v22 = vunpack.c.l.bf16 %v5735_v7  ;;  %v6706_v35 = vld [vmem:[%s7878_s5 + $0x38] sm:$0xff]   ;;  %v500_v38 = vld [vmem:[%s7876_s3 + $0x4c] sm:$0xf]  ;;  %v499_v45 = vld [vmem:[%s7876_s3 + $0x48] sm:$0xf] }
  0x17   : > { %623 = vperm.xlu1 %6692, %v490_v10   ;;  %611 = vperm.xlu0 %6691, %v489_v11   ;;  %v435_v2 = vmax.f32 %v403_v56, 0.0  ;;  %v436_v3 = vmax.f32 %v404_v57, 0.0  ;;  %v433_v4 = vmax.f32 %v401_v58, 0.0  ;;  %v369_v10 = vmul.f32 %v5602_v52, %v6937_v28  ;;  %vm7312_vm7 = vmand %vm1160_vm3, %vm1161_vm6 }
  0x18   : > { %v434_v5 = vmax.f32 %v402_v59, 0.0  ;;  %v437_v8 = vmax.f32 %v405_v62, 0.0  ;;  %v438_v9 = vmax.f32 %v406_v63, 0.0  ;;  %v407_v11 = vadd.f32 %v6953_v31, %v368_v0  ;;  %v5738_v59 = vld [vmem:[%s6944_s14 + $0x40] sm:$0xff]  }
  0x19   : > { %5986 = vmatpush3.bf16.msra.mxu1 %v6700_v39  ;;  %6176 = vmatpush3.bf16.msra.mxu0 %v6701_v42  ;;  %v370_v16 = vmul.f32 %v5605_v1, %v6937_v28  ;;  %v5610_v29 = vunpack.c.h.bf16 %v5735_v7  ;;  %v5613_v30 = vunpack.c.l.bf16 %v5736_v24  ;;  %v5614_v36 = vunpack.c.h.bf16 %v5736_v24  ;;  %v6707_v42 = vld [vmem:[%s7878_s5 + $0x130] sm:$0xff]   ;;  %v1212_v24 = vld [vmem:[%s7877_s4 + $0x18] sm:$0xf] }
  0x1a   : > { %5987 = vmatprep.subr.bf16.mxu1 %v6702_v53  ;;  %6177 = vmatprep.subr.bf16.mxu0 %v6703_v60  ;;  %v439_v21 = vmax.f32 %v407_v11, 0.0  ;;  %v5617_v37 = vunpack.c.l.bf16 %v5737_v32  ;;  %v5618_v49 = vunpack.c.h.bf16 %v5737_v32  ;;  %v502_v1 = vld [vmem:[%s7876_s3 + $0x54] sm:$0xf]  ;;  %vm1885_vm9 = vsmask.f32 7966 }
  0x1b   : > { %647 = vperm.xlu1 %6692, %v492_v12   ;;  %635 = vperm.xlu0 %6691, %v491_v13   ;;  %v1211_v12 = vld [vmem:[%s7877_s4 + $0x14] sm:$0xf]  ;;  %v7005_v13 = vpack.c.bf16 %v436_v3, %v435_v2  ;;  %v409_v27 = vadd.f32 %v6953_v31, %v370_v16  ;;  %v373_v41 = vmul.f32 %v5610_v29, %v6937_v28  ;;  %v501_v2 = vld [vmem:[%s7876_s3 + $0x50] sm:$0xf]  ;;  %v1213_v16 = vld [vmem:[%s7877_s4 + $0x1c] sm:$0xf] }
  0x1c   : > { %v374_v43 = vmul.f32 %v5613_v30, %v6937_v28  ;;  %v375_v48 = vmul.f32 %v5614_v36, %v6937_v28  ;;  %v377_v57 = vmul.f32 %v5618_v49, %v6937_v28  ;;  %vm7365_vm10 = vmand %vm1884_vm8, %vm1885_vm9 }
  0x1d   : > { %1190 = vst [vmem:[#allocation2 + $0xa0] sm:$0xff] %v7005_v13  ;;  %5988 = vmatpush3.bf16.msra.mxu1 %v6702_v53  ;;  %6178 = vmatpush3.bf16.msra.mxu0 %v6703_v60  ;;  %v441_v40 = vmax.f32 %v409_v27, 0.0  ;;  %v412_v51 = vadd.f32 %v6953_v31, %v373_v41  ;;  %v6708_v53 = vld [vmem:[%s7878_s5 + $0x138] sm:$0xff]   ;;  %v5739_v60 = vld [vmem:[%s6944_s14 + $0x48] sm:$0xff]  }
  0x1e   : > { %5989 = vmatprep.subr.bf16.mxu1 %v6704_v6  ;;  %6179 = vmatprep.subr.bf16.mxu0 %v6705_v17  ;;  %v413_v52 = vadd.f32 %v6953_v31, %v374_v43  ;;  %v414_v56 = vadd.f32 %v6953_v31, %v375_v48  ;;  %v6711_v48 = vld [vmem:[%s7878_s5 + $0x150] sm:$0xff]  }
  0x1f   : > { %671 = vperm.xlu1 %6692, %v494_v14   ;;  %659 = vperm.xlu0 %6691, %v493_v15   ;;  %v7007_v14 = vpack.c.bf16 %v434_v5, %v433_v4  ;;  %v5606_v15 = vunpack.c.h.bf16 %v5734_v54  ;;  %v376_v54 = vmul.f32 %v5617_v37, %v6937_v28  ;;  %v444_v62 = vmax.f32 %v412_v51, 0.0  ;;  %v5740_v5 = vld [vmem:[%s6944_s14 + $0x50] sm:$0xff]  }
  0x20   : > { %v445_v63 = vmax.f32 %v413_v52, 0.0  ;;  %v446_v3 = vmax.f32 %v414_v56, 0.0  ;;  %v416_v4 = vadd.f32 %v6953_v31, %v377_v57  ;;  %v5741_v52 = vld [vmem:[%s6944_s14 + $0x58] sm:$0xff]  }
  0x21   : > { %1189 = vst [vmem:[#allocation2 + $0x98] sm:$0xff] %v7007_v14  ;;  %6185 = vmatprep.mubr.bf16.mxu0 %v7007_v14  ;;  %5990 = vmatpush3.bf16.msra.mxu1 %v6704_v6  ;;  %v415_v0 = vadd.f32 %v6953_v31, %v376_v54  ;;  %v503_v54 = vld [vmem:[%s7876_s3 + $0x58] sm:$0xf]  ;;  %v5633_v56 = vunpack.c.l.bf16 %v5741_v52  ;;  %v5634_v57 = vunpack.c.h.bf16 %v5741_v52 }
  0x22   : > { %6180 = vmatpush3.bf16.msra.mxu0 %v6705_v17  ;;  %5991 = vmatprep.subr.bf16.mxu1 %v6706_v35  ;;  %v448_v11 = vmax.f32 %v416_v4, 0.0  ;;  %v6709_v17 = vld [vmem:[%s7878_s5 + $0x140] sm:$0xff]  }
  0x23   : > { %695 = vperm.xlu1 %6692, %v496_v19   ;;  %683 = vperm.xlu0 %6691, %v495_v20   ;;  %v7016_v19 = vpack.c.bf16 %v438_v9, %v437_v8  ;;  %v408_v20 = vadd.f32 %v6953_v31, %v369_v10  ;;  %v447_v7 = vmax.f32 %v415_v0, 0.0  ;;  %v5621_v8 = vunpack.c.l.bf16 %v5738_v59  ;;  %v505_v0 = vld [vmem:[%s7876_s3 + $0x60] sm:$0xf] }
  0x24   : > { %6181 = vmatprep.subr.bf16.mxu0 %v6707_v42  ;;  %v5622_v9 = vunpack.c.h.bf16 %v5738_v59  ;;  %v7080_v10 = vpack.c.bf16 %v446_v3, %v445_v63  ;;  %v384_v59 = vmul.f32 %v5633_v56, %v6937_v28  ;;  %v506_v63 = vld [vmem:[%s7876_s3 + $0x64] sm:$0xf]  ;;  %v1221_v56 = vld [vmem:[%s7877_s4 + $0x3c] sm:$0xf] }
  0x25   : > { %1191 = vst [vmem:[#allocation2 + $0xa8] sm:$0xff] %v7016_v19  ;;  %v440_v33 = vmax.f32 %v408_v20, 0.0  ;;  %5992 = vmatpush3.bf16.msra.mxu1 %v6706_v35  ;;  %v6710_v35 = vld [vmem:[%s7878_s5 + $0x148] sm:$0xff]  }
  0x26   : > { %6182 = vmatpush3.bf16.msra.mxu0 %v6707_v42  ;;  %v379_v20 = vmul.f32 %v5622_v9, %v6937_v28  ;;  %1195 = vst [vmem:[#allocation2 + $0xc8] sm:$0xff] %v7080_v10 }
  0x27   : > { %1252 = vperm.xlu1 %6692, %v1207_v25   ;;  %1240 = vperm.xlu0 %6691, %v1206_v26   ;;  %v371_v26 = vmul.f32 %v5606_v15, %v6937_v28  ;;  %v7049_v46 = vpack.c.bf16 %v440_v33, %v439_v21  ;;  %v5626_v15 = vunpack.c.h.bf16 %v5739_v60  ;;  %v5629_v21 = vunpack.c.l.bf16 %v5740_v5 }
  0x28   : > { %6183 = vmatprep.subr.bf16.mxu0 %v6708_v53  ;;  %v418_v32 = vadd.f32 %v6953_v31, %v379_v20 }
  0x29   : > { %v410_v39 = vadd.f32 %v6953_v31, %v371_v26  ;;  %1192 = vst [vmem:[#allocation2 + $0xb0] sm:$0xff] %v7049_v46  ;;  %v7095_v26 = vpack.c.bf16 %v448_v11, %v447_v7  ;;  %v381_v29 = vmul.f32 %v5626_v15, %v6937_v28  ;;  %v382_v33 = vmul.f32 %v5629_v21, %v6937_v28  ;;  %v1216_v15 = vld [vmem:[%s7877_s4 + $0x28] sm:$0xf] }
  0x2a   : > { %6184 = vmatpush3.bf16.msra.mxu0 %v6708_v53  ;;  %v450_v41 = vmax.f32 %v418_v32, 0.0  ;;  %v504_v53 = vld [vmem:[%s7876_s3 + $0x5c] sm:$0xf]  ;;  %v6714_v21 = vld [vmem:[%s7878_s5 + $0x168] sm:$0xff]   ;;  %v6715_v32 = vld [vmem:[%s7878_s5 + $0x170] sm:$0xff]  }
  0x2b   : > { %719 = vperm.xlu1 %6692, %v498_v34   ;;  %707 = vperm.xlu0 %6691, %v497_v44   ;;  %v372_v34 = vmul.f32 %v5609_v22, %v6937_v28  ;;  %v1737_v44 = vld [vmem:[#allocation2 + $0x120] sm:$0xff]  ;;  %v442_v50 = vmax.f32 %v410_v39, 0.0  ;;  %v5630_v22 = vunpack.c.h.bf16 %v5740_v5  ;;  %1196 = vst [vmem:[#allocation2 + $0xd0] sm:$0xff] %v7095_v26  ;;  %v420_v37 = vadd.f32 %v6953_v31, %v381_v29  ;;  %v1218_v29 = vld [vmem:[%s7877_s4 + $0x30] sm:$0xf] }
  0x2c   : > { %v1738_v58 = vsel %vm7023_vm5, 0, %v1737_v44  ;;  %v1214_v39 = vld [vmem:[%s7877_s4 + $0x20] sm:$0xf]  ;;  %6217 = vmatprep.subr.bf16.mxu0 %v6709_v17  ;;  %v421_v42 = vadd.f32 %v6953_v31, %v382_v33  ;;  %v5743_v33 = vld [vmem:[%s6944_s14 + $0x68] sm:$0xff]  }
  0x2d   : > { %v411_v47 = vadd.f32 %v6953_v31, %v372_v34  ;;  %1739 = vst [vmem:[#allocation2 + $0x120] sm:$0xff] %v1738_v58  ;;  %v383_v34 = vmul.f32 %v5630_v22, %v6937_v28  ;;  %6186 = vmatmul.mubr.bf16.vlgmr.msra.gmra.mrb[0].mxu0 %v7005_v13  ;;  %v6712_v58 = vld [vmem:[%s7878_s5 + $0x158] sm:$0xff]   ;;  %v6713_v5 = vld [vmem:[%s7878_s5 + $0x160] sm:$0xff]  }
  0x2e   : > { %v453_v49 = vmax.f32 %v421_v42, 0.0  ;;  %6218 = vmatpush3.bf16.msra.mxu0 %v6709_v17  ;;  %6189 = vmatprep.mubr.bf16.mxu0 %v7016_v19  ;;  %v510_v42 = vld [vmem:[%s7876_s3 + $0x74] sm:$0xf] }
  0x2f   : > { %1276 = vperm.xlu1 %6692, %v1209_v55   ;;  %1264 = vperm.xlu0 %6691, %v1208_v61   ;;  %v443_v55 = vmax.f32 %v411_v47, 0.0  ;;  %v7066_v61 = vpack.c.bf16 %v442_v50, %v441_v40  ;;  %v422_v43 = vadd.f32 %v6953_v31, %v383_v34  ;;  %v508_v34 = vld [vmem:[%s7876_s3 + $0x6c] sm:$0xf] }
  0x30   : > { %6219 = vmatprep.subr.bf16.mxu0 %v6710_v35 }
  0x31   : > { %1193 = vst [vmem:[#allocation2 + $0xb8] sm:$0xff] %v7066_v61  ;;  %v7078_v6 = vpack.c.bf16 %v444_v62, %v443_v55  ;;  %v454_v50 = vmax.f32 %v422_v43, 0.0  ;;  %v5742_v62 = vld [vmem:[%s6944_s14 + $0x60] sm:$0xff]  }
  0x32   : > { %6220 = vmatpush3.bf16.msra.mxu0 %v6710_v35  ;;  %v5637_v3 = vunpack.c.l.bf16 %v5742_v62  ;;  %v5638_v4 = vunpack.c.h.bf16 %v5742_v62  ;;  %v5641_v35 = vunpack.c.l.bf16 %v5743_v33 }
  0x33   : > { %1300 = vperm.xlu1 %6692, %v1211_v12   ;;  %1288 = vperm.xlu0 %6691, %v1210_v18   ;;  %v5625_v12 = vunpack.c.l.bf16 %v5739_v60  ;;  %1194 = vst [vmem:[#allocation2 + $0xc0] sm:$0xff] %v7078_v6  ;;  %v378_v18 = vmul.f32 %v5621_v8, %v6937_v28  ;;  %v7134_v55 = vpack.c.bf16 %v454_v50, %v453_v49  ;;  %v509_v49 = vld [vmem:[%s7876_s3 + $0x70] sm:$0xf] }
  0x34   : > { %v385_v60 = vmul.f32 %v5634_v57, %v6937_v28  ;;  %6221 = vmatprep.subr.bf16.mxu0 %v6711_v48  ;;  %v386_v9 = vmul.f32 %v5637_v3, %v6937_v28  ;;  %v387_v11 = vmul.f32 %v5638_v4, %v6937_v28  ;;  %v1225_v3 = vld [vmem:[%s7877_s4 + $0x4c] sm:$0xf]  ;;  %v1224_v4 = vld [vmem:[%s7877_s4 + $0x48] sm:$0xf] }
  0x35   : > { %v380_v27 = vmul.f32 %v5625_v12, %v6937_v28  ;;  %v417_v30 = vadd.f32 %v6953_v31, %v378_v18  ;;  %1199 = vst [vmem:[#allocation2 + $0xe8] sm:$0xff] %v7134_v55  ;;  %6190 = vmatmul.mubr.bf16.gmra.mrb[4].mxu0 %v7049_v46  ;;  %v1217_v12 = vld [vmem:[%s7877_s4 + $0x2c] sm:$0xf] }
  0x36   : > { %6222 = vmatpush3.bf16.msra.mxu0 %v6711_v48  ;;  %6193 = vmatprep.mubr.bf16.mxu0 %v7066_v61  ;;  %v425_v18 = vadd.f32 %v6953_v31, %v386_v9  ;;  %v426_v20 = vadd.f32 %v6953_v31, %v387_v11  ;;  %v1229_v9 = vld [vmem:[%s7877_s4 + $0x5c] sm:$0xf]  ;;  %v1228_v11 = vld [vmem:[%s7877_s4 + $0x58] sm:$0xf] }
  0x37   : > { %743 = vperm.xlu1 %6692, %v500_v38   ;;  %731 = vperm.xlu0 %6691, %v499_v45   ;;  %v419_v36 = vadd.f32 %v6953_v31, %v380_v27  ;;  %v1215_v38 = vld [vmem:[%s7877_s4 + $0x24] sm:$0xf]  ;;  %v449_v40 = vmax.f32 %v417_v30, 0.0  ;;  %v452_v45 = vmax.f32 %v420_v37, 0.0  ;;  %v1219_v27 = vld [vmem:[%s7877_s4 + $0x34] sm:$0xf] }
  0x38   : > { %6223 = vmatprep.subr.bf16.mxu0 %v6712_v58  ;;  %v457_v22 = vmax.f32 %v425_v18, 0.0  ;;  %v507_v37 = vld [vmem:[%s7876_s3 + $0x68] sm:$0xf]  ;;  %v5745_v18 = vld [vmem:[%s6944_s14 + $0x78] sm:$0xff]  }
  0x39   : > { %v451_v44 = vmax.f32 %v419_v36, 0.0  ;;  %v7118_v47 = vpack.c.bf16 %v450_v41, %v449_v40  ;;  %v5642_v36 = vunpack.c.h.bf16 %v5743_v33  ;;  %v5744_v41 = vld [vmem:[%s6944_s14 + $0x70] sm:$0xff]  }
  0x3a   : > { %6224 = vmatpush3.bf16.msra.mxu0 %v6712_v58  ;;  %v5646_v48 = vunpack.c.h.bf16 %v5744_v41 }
  0x3b   : > { %767 = vperm.xlu1 %6692, %v502_v1   ;;  %755 = vperm.xlu0 %6691, %v501_v2   ;;  %v7124_v51 = vpack.c.bf16 %v452_v45, %v451_v44  ;;  %1197 = vst [vmem:[#allocation2 + $0xd8] sm:$0xff] %v7118_v47  ;;  %v423_v1 = vadd.f32 %v6953_v31, %v384_v59  ;;  %v5645_v45 = vunpack.c.l.bf16 %v5744_v41  ;;  %v521_v41 = vlaneseq }
  0x3c   : > { %v424_v2 = vadd.f32 %v6953_v31, %v385_v60  ;;  %6225 = vmatprep.subr.bf16.mxu0 %v6713_v5  ;;  %v389_v40 = vmul.f32 %v5642_v36, %v6937_v28  ;;  %v1220_v60 = vld [vmem:[%s7877_s4 + $0x38] sm:$0xf] }
  0x3d   : > { %1198 = vst [vmem:[#allocation2 + $0xe0] sm:$0xff] %v7124_v51  ;;  %v455_v7 = vmax.f32 %v423_v1, 0.0  ;;  %6194 = vmatmul.mubr.bf16.gmra.mrb[8].mxu0 %v7078_v6 }
  0x3e   : > { %v456_v8 = vmax.f32 %v424_v2, 0.0  ;;  %6226 = vmatpush3.bf16.msra.mxu0 %v6713_v5  ;;  %6197 = vmatprep.mubr.bf16.mxu0 %v7080_v10  ;;  %v428_v44 = vadd.f32 %v6953_v31, %v389_v40  ;;  %v1222_v2 = vld [vmem:[%s7877_s4 + $0x40] sm:$0xf]  ;;  %v1227_v5 = vld [vmem:[%s7877_s4 + $0x54] sm:$0xf] }
  0x3f   : > { %1324 = vperm.xlu1 %6692, %v1213_v16   ;;  %1312 = vperm.xlu0 %6691, %v1212_v24   ;;  %v7168_v16 = vld [vmem:[%s7878_s5 + $0x40] sm:$0xff]   ;;  %v458_v24 = vmax.f32 %v426_v20, 0.0  ;;  %v5649_v20 = vunpack.c.l.bf16 %v5745_v18 }
  0x40   : > { %v7170_v17 = vpack.c.bf16 %v456_v8, %v455_v7  ;;  %6025 = vmatprep.subr.bf16.mxu1 %v7168_v16  ;;  %6227 = vmatprep.subr.bf16.mxu0 %v6714_v21  ;;  %v460_v52 = vmax.f32 %v428_v44, 0.0  ;;  %v1226_v7 = vld [vmem:[%s7877_s4 + $0x50] sm:$0xf]  ;;  %v7252_v8 = vld [vmem:[%s7878_s5 + $0x180] sm:$0xff]  }
  0x41   : > { %v7185_v30 = vpack.c.bf16 %v458_v24, %v457_v22  ;;  %v1237_v22 = vld [vmem:[%s7877_s4 + $0x7c] sm:$0xf]  ;;  %v1236_v24 = vld [vmem:[%s7877_s4 + $0x78] sm:$0xf] }
  0x42   : > { %1200 = vst [vmem:[#allocation2 + $0xf0] sm:$0xff] %v7170_v17  ;;  %6228 = vmatpush3.bf16.msra.mxu0 %v6714_v21  ;;  %v5650_v21 = vunpack.c.h.bf16 %v5745_v18 }
  0x43   : > { %1348 = vperm.xlu1 %6692, %v1215_v38   ;;  %1336 = vperm.xlu0 %6691, %v1214_v39   ;;  %1201 = vst [vmem:[#allocation2 + $0xf8] sm:$0xff] %v7185_v30  ;;  %v6717_v38 = vld [vmem:[%s7878_s5 + $0x178] sm:$0xff]   ;;  %v388_v39 = vmul.f32 %v5641_v35, %v6937_v28  ;;  %v1232_v35 = vld [vmem:[%s7877_s4 + $0x68] sm:$0xf] }
  0x44   : > { %6229 = vmatprep.subr.bf16.mxu0 %v6715_v32 }
  0x45   : > { %v427_v43 = vadd.f32 %v6953_v31, %v388_v39  ;;  %6198 = vmatmul.mubr.bf16.gmra.mrb[12].mxu0 %v7095_v26  ;;  %v6799_v39 = vmov 839922192  }
  0x46   : > { %6230 = vmatpush3.bf16.msra.mxu0 %v6715_v32  ;;  %v519_v40 = vunpack.c.l.s4 %v6799_v39 }
  0x47   : > { %791 = vperm.xlu1 %6692, %v504_v53   ;;  %779 = vperm.xlu0 %6691, %v503_v54   ;;  %v459_v50 = vmax.f32 %v427_v43, 0.0  ;;  %v390_v53 = vmul.f32 %v5645_v45, %v6937_v28  ;;  %v391_v54 = vmul.f32 %v5646_v48, %v6937_v28  ;;  %v511_v43 = vld [vmem:[%s7876_s3 + $0x78] sm:$0xf]  ;;  %v522_v45 = vshrl.u32 %v521_v41, 7 }
  0x48   : > { %6231 = vmatprep.subr.bf16.mxu0 %v6717_v38  ;;  %v520_v44 = vunpack.c.0.s8 %v519_v40 }
  0x49   : > { %v7220_v57 = vpack.c.bf16 %v460_v52, %v459_v50  ;;  %v429_v58 = vadd.f32 %v6953_v31, %v390_v53  ;;  %v430_v59 = vadd.f32 %v6953_v31, %v391_v54 }
  0x4a   : > { %6232 = vmatpush3.bf16.msra.mxu0 %v6717_v38  ;;  %v7299_v50 = vsub.s32 %v520_v44, %v522_v45 }
  0x4b   : > { %815 = vperm.xlu1 %6692, %v506_v63   ;;  %803 = vperm.xlu0 %6691, %v505_v0   ;;  %1202 = vst [vmem:[#allocation2 + $0x100] sm:$0xff] %v7220_v57  ;;  %v461_v62 = vmax.f32 %v429_v58, 0.0  ;;  %v462_v63 = vmax.f32 %v430_v59, 0.0  ;;  %v1223_v0 = vld [vmem:[%s7877_s4 + $0x44] sm:$0xf] }
  0x4c   : > { %6265 = vmatprep.subr.bf16.mxu0 %v7252_v8 }
  0x4d   : > { %v7231_v1 = vpack.c.bf16 %v462_v63, %v461_v62 }
  0x4f   : > { %1372 = vperm.xlu1 %6692, %v1217_v12   ;;  %1360 = vperm.xlu0 %6691, %v1216_v15   ;;  %1203 = vst [vmem:[#allocation2 + $0x108] sm:$0xff] %v7231_v1  ;;  %v1231_v12 = vld [vmem:[%s7877_s4 + $0x64] sm:$0xf]  ;;  %v1230_v15 = vld [vmem:[%s7877_s4 + $0x60] sm:$0xf] }
  0x53   : > { %1396 = vperm.xlu1 %6692, %v1219_v27   ;;  %1384 = vperm.xlu0 %6691, %v1218_v29   ;;  %v392_v27 = vmul.f32 %v5649_v20, %v6937_v28  ;;  %v393_v29 = vmul.f32 %v5650_v21, %v6937_v28  ;;  %v1235_v28 = vld [vmem:[%s7877_s4 + $0x74] sm:$0xf] }
  0x55   : > { %v431_v32 = vadd.f32 %v6953_v31, %v392_v27  ;;  %v432_v33 = vadd.f32 %v6953_v31, %v393_v29  ;;  %v1234_v31 = vld [vmem:[%s7877_s4 + $0x70] sm:$0xf]  ;;  %v1163_v27 = vld [vmem:[#allocation2 + $0x8] sm:$0xff] }
  0x57   : > { %839 = vperm.xlu1 %6692, %v508_v34   ;;  %827 = vperm.xlu0 %6691, %v507_v37   ;;  %v1233_v34 = vld [vmem:[%s7877_s4 + $0x6c] sm:$0xf]  ;;  %v463_v36 = vmax.f32 %v431_v32, 0.0  ;;  %v464_v37 = vmax.f32 %v432_v33, 0.0 }
  0x59   : > { %v7284_v38 = vpack.c.bf16 %v464_v37, %v463_v36 }
  0x5b   : > { %863 = vperm.xlu1 %6692, %v510_v42   ;;  %851 = vperm.xlu0 %6691, %v509_v49   ;;  %1204 = vst [vmem:[#allocation2 + $0x110] sm:$0xff] %v7284_v38  ;;  %v512_v42 = vld [vmem:[%s7876_s3 + $0x7c] sm:$0xf] }
  0x5f   : > { %1420 = vperm.xlu1 %6692, %v1221_v56   ;;  %1408 = vperm.xlu0 %6691, %v1220_v60  }
  0x63   : > { %1444 = vperm.xlu1 %6692, %v1223_v0   ;;  %1432 = vperm.xlu0 %6691, %v1222_v2  }
  0x67   : > { %1468 = vperm.xlu1 %6692, %v1225_v3   ;;  %1456 = vperm.xlu0 %6691, %v1224_v4  }
  0x6b   : > { %1492 = vperm.xlu1 %6692, %v1227_v5   ;;  %1480 = vperm.xlu0 %6691, %v1226_v7  }
  0x6f   : > { %1516 = vperm.xlu1 %6692, %v1229_v9   ;;  %1504 = vperm.xlu0 %6691, %v1228_v11  }
  0x73   : > { %1540 = vperm.xlu1 %6692, %v1231_v12   ;;  %1528 = vperm.xlu0 %6691, %v1230_v15  }
  0x77   : > { %1612 = vperm.xlu1 %6692, %v1237_v22   ;;  %1600 = vperm.xlu0 %6691, %v1236_v24  }
  0x7b   : > { %1564 = vperm.xlu1 %6692, %v1233_v34   ;;  %1552 = vperm.xlu0 %6691, %v1232_v35  }
  0x7f   : > { %1588 = vperm.xlu1 %6692, %v1235_v28   ;;  %1576 = vperm.xlu0 %6691, %v1234_v31   ;;  %v6718_v28 = vld [vmem:[%s7878_s5 + $0x48] sm:$0xff]  }
  0x83   : > { %887 = vperm.xlu1 %6692, %v512_v42   ;;  %875 = vperm.xlu0 %6691, %v511_v43  }
  0x86   : > { %v540_v48 = vpop.permute.xlu1 %539  ;;  %v516_v49 = vpop.permute.xlu0 %515 }
  0x87   : > { %v548_v54 = vrot.slane %v540_v48, %v7299_v50  ;;  %v524_v56 = vrot.slane %v516_v49, %v7299_v50 }
  0x8a   : > { %v552_v52 = vpop.permute.xlu1 %551  ;;  %v528_v53 = vpop.permute.xlu0 %527 }
  0x8b   : > { %v560_v58 = vrot.slane %v552_v52, %v7299_v50  ;;  %v536_v59 = vrot.slane %v528_v53, %v7299_v50 }
  0x8d   : > { %v5288_v60 = vcombine.low %v548_v54, %v560_v58  ;;  %v5287_v62 = vcombine.low %v524_v56, %v536_v59 }
  0x8e   : > { %v576_v63 = vpop.permute.xlu1 %575  ;;  %v564_v0 = vpop.permute.xlu0 %563 }
  0x8f   : > { %v994_v2 = vmul.bf16 %v5288_v60, %v7005_v13  ;;  %v993_v3 = vmul.bf16 %v5287_v62, %v7007_v14  ;;  %v584_v4 = vrot.slane %v576_v63, %v7299_v50  ;;  %v572_v5 = vrot.slane %v564_v0, %v7299_v50  ;;  %v6742_v14 = vld [vmem:[%s7878_s5 + $0x1d0] sm:$0xff]  }
  0x91   : > { %v1024_v7 = vshrl.u32 %v994_v2, 16  ;;  %v1017_v9 = vshrl.u32 %v993_v3, 16  ;;  %v1027_v11 = vshll.u32 %v994_v2, 16  ;;  %v1020_v12 = vshll.u32 %v993_v3, 16  ;;  %v6720_v3 = vld [vmem:[%s7878_s5 + $0x58] sm:$0xff]  }
  0x92   : > { %v5289_v15 = vcombine.low %v572_v5, %v584_v4  ;;  %v600_v18 = vpop.permute.xlu1 %599  ;;  %v588_v20 = vpop.permute.xlu0 %587 }
  0x93   : > { %v1026_v21 = vrot.slane %v1024_v7, 7  ;;  %v1019_v22 = vrot.slane %v1017_v9, 7  ;;  %v608_v24 = vrot.slane %v600_v18, %v7299_v50  ;;  %v596_v13 = vrot.slane %v588_v20, %v7299_v50 }
  0x94   : > { %v995_v29 = vmul.bf16 %v5289_v15, %v7016_v19 }
  0x95   : > { %v1029_v32 = vor.u32 %v1027_v11, %v1026_v21  ;;  %v1022_v33 = vor.u32 %v1020_v12, %v1019_v22  ;;  %v5290_v34 = vcombine.low %v596_v13, %v608_v24 }
  0x96   : > { %v1032_v35 = vshrl.u32 %v995_v29, 16  ;;  %v624_v36 = vpop.permute.xlu1 %623  ;;  %v612_v37 = vpop.permute.xlu0 %611  ;;  %v1035_v42 = vshll.u32 %v995_v29, 16 }
  0x97   : > { %v1030_v31 = vsel %vm1011_vm1, %v1019_v22, %v1029_v32  ;;  %v1164_v39 = vsel %vm7312_vm7, %v1022_v33, %v1163_v27  ;;  %v996_v40 = vmul.bf16 %v5290_v34, %v7049_v46  ;;  %v632_v41 = vrot.slane %v624_v36, %v7299_v50  ;;  %v6719_v46 = vld [vmem:[%s7878_s5 + $0x50] sm:$0xff]  }
  0x98   : > { %1165 = vst [vmem:[#allocation2 + $0x8] sm:$0xff] %v1164_v39  ;;  %1166 = vst [vmem:[#allocation2 + $0x10] sm:$0xff] %v1030_v31  ;;  %v1034_v19 = vrot.slane %v1032_v35, 7  ;;  %v620_v43 = vrot.slane %v612_v37, %v7299_v50  ;;  %5994 = vmatmul.mubr.bf16.vlgmr.msra.gmra.mrb[0].mxu1 %v1164_v39 }
  0x99   : > { %v1040_v44 = vshrl.u32 %v996_v40, 16  ;;  %5997 = vmatprep.mubr.bf16.mxu1 %v1030_v31  ;;  %6026 = vmatpush3.bf16.msra.mxu1 %v7168_v16  ;;  %v1043_v54 = vshll.u32 %v996_v40, 16  ;;  %v6723_v31 = vld [vmem:[%s7878_s5 + $0x68] sm:$0xff]  }
  0x9a   : > { %v1037_v45 = vor.u32 %v1035_v42, %v1034_v19  ;;  %v5291_v48 = vcombine.low %v620_v43, %v632_v41  ;;  %v648_v49 = vpop.permute.xlu1 %647  ;;  %v636_v52 = vpop.permute.xlu0 %635  ;;  %6027 = vmatprep.subr.bf16.mxu1 %v6718_v28 }
  0x9b   : > { %v1042_v53 = vrot.slane %v1040_v44, 7  ;;  %v656_v56 = vrot.slane %v648_v49, %v7299_v50  ;;  %v644_v58 = vrot.slane %v636_v52, %v7299_v50  ;;  %v6725_v52 = vld [vmem:[%s7878_s5 + $0x70] sm:$0xff]  }
  0x9c   : > { %v1038_v59 = vsel %vm1011_vm1, %v1026_v21, %v1037_v45  ;;  %v997_v60 = vmul.bf16 %v5291_v48, %v7066_v61 }
  0x9d   : > { %1167 = vst [vmem:[#allocation2 + $0x18] sm:$0xff] %v1038_v59  ;;  %v1045_v16 = vor.u32 %v1043_v54, %v1042_v53  ;;  %v5292_v62 = vcombine.low %v644_v58, %v656_v56  ;;  %6028 = vmatpush3.bf16.msra.mxu1 %v6718_v28  ;;  %v6765_v56 = vld [vmem:[#allocation2 + $0x98] sm:$0xff] }
  0x9e   : > { %v1048_v63 = vshrl.u32 %v997_v60, 16  ;;  %v672_v0 = vpop.permute.xlu1 %671  ;;  %v660_v2 = vpop.permute.xlu0 %659  ;;  %6029 = vmatprep.subr.bf16.mxu1 %v6719_v46  ;;  %v1051_v11 = vshll.u32 %v997_v60, 16 }
  0x9f   : > { %v1046_v4 = vsel %vm1011_vm1, %v1034_v19, %v1045_v16  ;;  %v998_v5 = vmul.bf16 %v5292_v62, %v7078_v6  ;;  %v680_v7 = vrot.slane %v672_v0, %v7299_v50  ;;  %v668_v61 = vrot.slane %v660_v2, %v7299_v50  ;;  %v6721_v6 = vld [vmem:[%s7878_s5 + $0x60] sm:$0xff]   ;;  %v6727_v0 = vld [vmem:[%s7878_s5 + $0x78] sm:$0xff]  }
  0xa0   : > { %1168 = vst [vmem:[#allocation2 + $0x20] sm:$0xff] %v1046_v4  ;;  %v1050_v9 = vrot.slane %v1048_v63, 7  ;;  %5998 = vmatmul.mubr.bf16.gmra.mrb[4].mxu1 %v1038_v59 }
  0xa1   : > { %v1056_v12 = vshrl.u32 %v998_v5, 16  ;;  %v5293_v15 = vcombine.low %v668_v61, %v680_v7  ;;  %6001 = vmatprep.mubr.bf16.mxu1 %v1046_v4  ;;  %6030 = vmatpush3.bf16.msra.mxu1 %v6719_v46  ;;  %v1059_v20 = vshll.u32 %v998_v5, 16  ;;  %v1887_v4 = vld [vmem:[#allocation2 + $0x120] sm:$0x80] }
  0xa2   : > { %v1053_v18 = vor.u32 %v1051_v11, %v1050_v9  ;;  %v696_v21 = vpop.permute.xlu1 %695  ;;  %v684_v22 = vpop.permute.xlu0 %683  ;;  %6031 = vmatprep.subr.bf16.mxu1 %v6720_v3 }
  0xa3   : > { %v1058_v24 = vrot.slane %v1056_v12, 7  ;;  %v999_v13 = vmul.bf16 %v5293_v15, %v7080_v10  ;;  %v704_v27 = vrot.slane %v696_v21, %v7299_v50  ;;  %v692_v29 = vrot.slane %v684_v22, %v7299_v50 }
  0xa4   : > { %v1054_v32 = vsel %vm1011_vm1, %v1042_v53, %v1053_v18 }
  0xa5   : > { %1169 = vst [vmem:[#allocation2 + $0x28] sm:$0xff] %v1054_v32  ;;  %v1061_v33 = vor.u32 %v1059_v20, %v1058_v24  ;;  %v1064_v34 = vshrl.u32 %v999_v13, 16  ;;  %v5294_v35 = vcombine.low %v692_v29, %v704_v27  ;;  %6032 = vmatpush3.bf16.msra.mxu1 %v6720_v3  ;;  %v1067_v36 = vshll.u32 %v999_v13, 16 }
  0xa6   : > { %v1253_v37 = vpop.permute.xlu1 %1252  ;;  %v1241_v28 = vpop.permute.xlu0 %1240  ;;  %6033 = vmatprep.subr.bf16.mxu1 %v6721_v6 }
  0xa7   : > { %v1062_v10 = vsel %vm1011_vm1, %v1050_v9, %v1061_v33  ;;  %v1066_v39 = vrot.slane %v1064_v34, 7  ;;  %v1000_v40 = vmul.bf16 %v5294_v35, %v7095_v26  ;;  %v1261_v41 = vrot.slane %v1253_v37, %v7299_v50 }
  0xa8   : > { %1170 = vst [vmem:[#allocation2 + $0x30] sm:$0xff] %v1062_v10  ;;  %v1249_v19 = vrot.slane %v1241_v28, %v7299_v50  ;;  %6002 = vmatmul.mubr.bf16.gmra.mrb[8].mxu1 %v1054_v32 }
  0xa9   : > { %v1069_v42 = vor.u32 %v1067_v36, %v1066_v39  ;;  %v1072_v43 = vshrl.u32 %v1000_v40, 16  ;;  %6005 = vmatprep.mubr.bf16.mxu1 %v1062_v10  ;;  %6034 = vmatpush3.bf16.msra.mxu1 %v6721_v6  ;;  %v1075_v44 = vshll.u32 %v1000_v40, 16  ;;  %v6766_v6 = vld [vmem:[#allocation2 + $0xa0] sm:$0xff]  ;;  %v6767_v10 = vld [vmem:[#allocation2 + $0xa8] sm:$0xff] }
  0xaa   : > { %v5303_v45 = vcombine.low %v1249_v19, %v1261_v41  ;;  %v720_v48 = vpop.permute.xlu1 %719  ;;  %v708_v49 = vpop.permute.xlu0 %707  ;;  %6035 = vmatprep.subr.bf16.mxu1 %v6723_v31 }
  0xab   : > { %v1070_v26 = vsel %vm1011_vm1, %v1058_v24, %v1069_v42  ;;  %v1074_v46 = vrot.slane %v1072_v43, 7  ;;  %v728_v53 = vrot.slane %v720_v48, %v7299_v50  ;;  %v716_v54 = vrot.slane %v708_v49, %v7299_v50 }
  0xac   : > { %1171 = vst [vmem:[#allocation2 + $0x38] sm:$0xff] %v1070_v26  ;;  %v1718_v58 = vmul.bf16 %v6765_v56, %v5303_v45 }
  0xad   : > { %v1077_v59 = vor.u32 %v1075_v44, %v1074_v46  ;;  %v5295_v60 = vcombine.low %v716_v54, %v728_v53  ;;  %6036 = vmatpush3.bf16.msra.mxu1 %v6723_v31  ;;  %v6724_v54 = vld [vmem:[%s7878_s5 + $0x188] sm:$0xff]  }
  0xae   : > { %v1741_v16 = vshll.u32 %v1718_v58, 16  ;;  %v1277_v62 = vpop.permute.xlu1 %1276  ;;  %v1265_v63 = vpop.permute.xlu0 %1264  ;;  %6037 = vmatprep.subr.bf16.mxu1 %v6725_v52  ;;  %v1744_v29 = vshrl.u32 %v1718_v58, 16 }
  0xaf   : > { %v1078_v2 = vsel %vm1011_vm1, %v1066_v39, %v1077_v59  ;;  %v1001_v5 = vmul.bf16 %v5295_v60, %v7118_v47  ;;  %v1285_v7 = vrot.slane %v1277_v62, %v7299_v50  ;;  %v1273_v61 = vrot.slane %v1265_v63, %v7299_v50  ;;  %v7377_v47 = vld [vmem:[%s7878_s5 + $0x80] sm:$0xff]  }
  0xb0   : > { %1172 = vst [vmem:[#allocation2 + $0x40] sm:$0xff] %v1078_v2  ;;  %v1743_v9 = vrot.slane %v1741_v16, 1  ;;  %6006 = vmatmul.mubr.bf16.gmra.mrb[12].mxu1 %v1070_v26 }
  0xb1   : > { %v1080_v11 = vshrl.u32 %v1001_v5, 16  ;;  %v5304_v12 = vcombine.low %v1273_v61, %v1285_v7  ;;  %6009 = vmatprep.mubr.bf16.mxu1 %v1078_v2  ;;  %6038 = vmatpush3.bf16.msra.mxu1 %v6725_v52  ;;  %v1083_v18 = vshll.u32 %v1001_v5, 16 }
  0xb2   : > { %v1888_v15 = vsel %vm7365_vm10, %v1743_v9, %v1887_v4  ;;  %v1301_v20 = vpop.permute.xlu1 %1300  ;;  %v1289_v21 = vpop.permute.xlu0 %1288  ;;  %6039 = vmatprep.subr.bf16.mxu1 %v6727_v0  ;;  %v1746_v35 = vor.u32 %v1744_v29, %v1743_v9  ;;  %v6726_v4 = vld [vmem:[%s7878_s5 + $0x190] sm:$0xff]  }
  0xb3   : > { %1889 = vst [vmem:[#allocation2 + $0x120] sm:$0x80] %v1888_v15  ;;  %v7379_v22 = vrot.slane %v1080_v11, 7  ;;  %v1719_v24 = vmul.bf16 %v6766_v6, %v5304_v12  ;;  %v1309_v13 = vrot.slane %v1301_v20, %v7299_v50  ;;  %v1297_v27 = vrot.slane %v1289_v21, %v7299_v50  ;;  %v6768_v15 = vld [vmem:[#allocation2 + $0xb0] sm:$0xff] }
  0xb5   : > { %v1085_v32 = vor.u32 %v1083_v18, %v7379_v22  ;;  %v1748_v33 = vshll.u32 %v1719_v24, 16  ;;  %v5305_v34 = vcombine.low %v1297_v27, %v1309_v13  ;;  %6040 = vmatpush3.bf16.msra.mxu1 %v6727_v0  ;;  %v1752_v42 = vshrl.u32 %v1719_v24, 16  ;;  %v6728_v24 = vld [vmem:[%s7878_s5 + $0x198] sm:$0xff]  }
  0xb6   : > { %v744_v36 = vpop.permute.xlu1 %743  ;;  %v732_v37 = vpop.permute.xlu0 %731  ;;  %6073 = vmatprep.subr.bf16.mxu1 %v7377_v47 }
  0xb7   : > { %v1086_v28 = vsel %vm1011_vm1, %v1074_v46, %v1085_v32  ;;  %v1750_v31 = vrot.slane %v1748_v33, 1  ;;  %v1720_v39 = vmul.bf16 %v6767_v10, %v5305_v34  ;;  %v752_v40 = vrot.slane %v744_v36, %v7299_v50  ;;  %v6730_v10 = vld [vmem:[%s7878_s5 + $0x1a0] sm:$0xff]  }
  0xb8   : > { %1173 = vst [vmem:[#allocation2 + $0x48] sm:$0xff] %v1086_v28  ;;  %v740_v41 = vrot.slane %v732_v37, %v7299_v50  ;;  %6010 = vmatmul.mubr.bf16.gmra.mrb[16].mxu1 %v1086_v28  ;;  %v6769_v37 = vld [vmem:[#allocation2 + $0xb8] sm:$0xff] }
  0xb9   : > { %v1751_v19 = vsel %vm1735_vm4, %v1746_v35, %v1750_v31  ;;  %v1756_v43 = vshll.u32 %v1720_v39, 16  ;;  %v1754_v49 = vor.u32 %v1752_v42, %v1750_v31  ;;  %v1760_v21 = vshrl.u32 %v1720_v39, 16 }
  0xba   : > { %1890 = vst [vmem:[#allocation2 + $0x128] sm:$0xff] %v1751_v19  ;;  %v5296_v44 = vcombine.low %v740_v41, %v752_v40  ;;  %v768_v45 = vpop.permute.xlu1 %767  ;;  %v756_v48 = vpop.permute.xlu0 %755  ;;  %6233 = vmatprep.mubr.bf16.mxu0 %v1751_v19 }
  0xbb   : > { %v1758_v52 = vrot.slane %v1756_v43, 1  ;;  %v776_v26 = vrot.slane %v768_v45, %v7299_v50  ;;  %v764_v46 = vrot.slane %v756_v48, %v7299_v50 }
  0xbc   : > { %v1002_v53 = vmul.bf16 %v5296_v44, %v7124_v51 }
  0xbd   : > { %v1759_v56 = vsel %vm1735_vm4, %v1754_v49, %v1758_v52  ;;  %v5297_v58 = vcombine.low %v764_v46, %v776_v26  ;;  %v1762_v32 = vor.u32 %v1760_v21, %v1758_v52  ;;  %v6732_v26 = vld [vmem:[%s7878_s5 + $0x1a8] sm:$0xff]  }
  0xbe   : > { %1891 = vst [vmem:[#allocation2 + $0x130] sm:$0xff] %v1759_v56  ;;  %v1088_v59 = vshrl.u32 %v1002_v53, 16  ;;  %v1325_v60 = vpop.permute.xlu1 %1324  ;;  %v1313_v16 = vpop.permute.xlu0 %1312  ;;  %6234 = vmatmul.mubr.bf16.vlgmr.msra.gmra.mrb[0].mxu0 %v1759_v56  ;;  %v1091_v2 = vshll.u32 %v1002_v53, 16 }
  0xbf   : > { %v1003_v62 = vmul.bf16 %v5297_v58, %v7134_v55  ;;  %v1333_v63 = vrot.slane %v1325_v60, %v7299_v50  ;;  %v1321_v0 = vrot.slane %v1313_v16, %v7299_v50  ;;  %6266 = vmatpush3.bf16.msra.mxu0 %v7252_v8 }
  0xc0   : > { %v1090_v51 = vrot.slane %v1088_v59, 7  ;;  %6267 = vmatprep.subr.bf16.mxu0 %v6724_v54 }
  0xc1   : > { %v1096_v5 = vshrl.u32 %v1003_v62, 16  ;;  %v5306_v7 = vcombine.low %v1321_v0, %v1333_v63  ;;  %v1099_v9 = vshll.u32 %v1003_v62, 16  ;;  %v6734_v63 = vld [vmem:[%s7878_s5 + $0x1b0] sm:$0xff]  }
  0xc2   : > { %v1093_v61 = vor.u32 %v1091_v2, %v1090_v51  ;;  %v1349_v11 = vpop.permute.xlu1 %1348  ;;  %v1337_v12 = vpop.permute.xlu0 %1336 }
  0xc3   : > { %v7403_v55 = vrot.slane %v1096_v5, 7  ;;  %v1721_v18 = vmul.bf16 %v6768_v15, %v5306_v7  ;;  %v1357_v20 = vrot.slane %v1349_v11, %v7299_v50  ;;  %v1345_v8 = vrot.slane %v1337_v12, %v7299_v50  ;;  %6268 = vmatpush3.bf16.msra.mxu0 %v6724_v54 }
  0xc4   : > { %v1094_v6 = vsel %vm1011_vm1, %v7379_v22, %v1093_v61  ;;  %6269 = vmatprep.subr.bf16.mxu0 %v6726_v4 }
  0xc5   : > { %1174 = vst [vmem:[#allocation2 + $0x50] sm:$0xff] %v1094_v6  ;;  %v1101_v13 = vor.u32 %v1099_v9, %v7403_v55  ;;  %v1764_v27 = vshll.u32 %v1721_v18, 16  ;;  %v5307_v29 = vcombine.low %v1345_v8, %v1357_v20  ;;  %6013 = vmatprep.mubr.bf16.mxu1 %v1094_v6  ;;  %v1768_v40 = vshrl.u32 %v1721_v18, 16  ;;  %v6736_v20 = vld [vmem:[%s7878_s5 + $0x1b8] sm:$0xff]  }
  0xc6   : > { %v792_v33 = vpop.permute.xlu1 %791  ;;  %v780_v34 = vpop.permute.xlu0 %779 }
  0xc7   : > { %v1102_v35 = vsel %vm1011_vm1, %v1090_v51, %v1101_v13  ;;  %v1766_v36 = vrot.slane %v1764_v27, 1  ;;  %v1722_v28 = vmul.bf16 %v6769_v37, %v5307_v29  ;;  %v800_v22 = vrot.slane %v792_v33, %v7299_v50  ;;  %6270 = vmatpush3.bf16.msra.mxu0 %v6726_v4 }
  0xc8   : > { %1175 = vst [vmem:[#allocation2 + $0x58] sm:$0xff] %v1102_v35  ;;  %v788_v31 = vrot.slane %v780_v34, %v7299_v50  ;;  %6014 = vmatmul.mubr.bf16.gmra.mrb[20].mxu1 %v1102_v35  ;;  %6271 = vmatprep.subr.bf16.mxu0 %v6728_v24 }
  0xc9   : > { %v1767_v39 = vsel %vm1735_vm4, %v1762_v32, %v1766_v36  ;;  %v1772_v41 = vshll.u32 %v1722_v28, 16  ;;  %v1770_v44 = vor.u32 %v1768_v40, %v1766_v36  ;;  %v1776_v15 = vshrl.u32 %v1722_v28, 16  ;;  %v6771_v32 = vld [vmem:[#allocation2 + $0xc8] sm:$0xff]  ;;  %v7461_v36 = vld [vmem:[%s7878_s5 + $0x1c0] sm:$0xff]  }
  0xca   : > { %1892 = vst [vmem:[#allocation2 + $0x138] sm:$0xff] %v1767_v39  ;;  %v5298_v19 = vcombine.low %v788_v31, %v800_v22  ;;  %v816_v42 = vpop.permute.xlu1 %815  ;;  %v804_v43 = vpop.permute.xlu0 %803  ;;  %6237 = vmatprep.mubr.bf16.mxu0 %v1767_v39 }
  0xcb   : > { %v1774_v45 = vrot.slane %v1772_v41, 1  ;;  %v824_v48 = vrot.slane %v816_v42, %v7299_v50  ;;  %v812_v49 = vrot.slane %v804_v43, %v7299_v50  ;;  %6272 = vmatpush3.bf16.msra.mxu0 %v6728_v24 }
  0xcc   : > { %v1004_v52 = vmul.bf16 %v5298_v19, %v7170_v17  ;;  %6273 = vmatprep.subr.bf16.mxu0 %v6730_v10 }
  0xcd   : > { %v7427_v46 = vsel %vm1735_vm4, %v1770_v44, %v1774_v45  ;;  %v5299_v53 = vcombine.low %v812_v49, %v824_v48  ;;  %v1778_v24 = vor.u32 %v1776_v15, %v1774_v45 }
  0xce   : > { %1893 = vst [vmem:[#allocation2 + $0x140] sm:$0xff] %v7427_v46  ;;  %v1104_v54 = vshrl.u32 %v1004_v52, 16  ;;  %v1373_v56 = vpop.permute.xlu1 %1372  ;;  %v1361_v58 = vpop.permute.xlu0 %1360  ;;  %6238 = vmatmul.mubr.bf16.gmra.mrb[4].mxu0 %v7427_v46  ;;  %v1107_v62 = vshll.u32 %v1004_v52, 16 }
  0xcf   : > { %v1005_v59 = vmul.bf16 %v5299_v53, %v7185_v30  ;;  %v1381_v17 = vrot.slane %v1373_v56, %v7299_v50  ;;  %v1369_v60 = vrot.slane %v1361_v58, %v7299_v50  ;;  %6274 = vmatpush3.bf16.msra.mxu0 %v6730_v10  ;;  %v6770_v30 = vld [vmem:[#allocation2 + $0xc0] sm:$0xff] }
  0xd0   : > { %v1106_v16 = vrot.slane %v1104_v54, 7  ;;  %6275 = vmatprep.subr.bf16.mxu0 %v6732_v26 }
  0xd1   : > { %v1112_v0 = vshrl.u32 %v1005_v59, 16  ;;  %v5308_v51 = vcombine.low %v1369_v60, %v1381_v17  ;;  %v1115_v4 = vshll.u32 %v1005_v59, 16 }
  0xd2   : > { %v1109_v2 = vor.u32 %v1107_v62, %v1106_v16  ;;  %v1397_v5 = vpop.permute.xlu1 %1396  ;;  %v1385_v7 = vpop.permute.xlu0 %1384 }
  0xd3   : > { %v7437_v61 = vrot.slane %v1112_v0, 7  ;;  %v1723_v9 = vmul.bf16 %v6770_v30, %v5308_v51  ;;  %v1405_v11 = vrot.slane %v1397_v5, %v7299_v50  ;;  %v1393_v12 = vrot.slane %v1385_v7, %v7299_v50  ;;  %6276 = vmatpush3.bf16.msra.mxu0 %v6732_v26  ;;  %v6772_v0 = vld [vmem:[#allocation2 + $0xd0] sm:$0xff] }
  0xd4   : > { %v7443_v18 = vsel %vm1011_vm1, %v7403_v55, %v1109_v2  ;;  %6277 = vmatprep.subr.bf16.mxu0 %v6734_v63 }
  0xd5   : > { %1176 = vst [vmem:[#allocation2 + $0x60] sm:$0xff] %v7443_v18  ;;  %v1117_v8 = vor.u32 %v1115_v4, %v7437_v61  ;;  %v1780_v21 = vshll.u32 %v1723_v9, 16  ;;  %v5309_v6 = vcombine.low %v1393_v12, %v1405_v11  ;;  %6017 = vmatprep.mubr.bf16.mxu1 %v7443_v18  ;;  %v1784_v28 = vshrl.u32 %v1723_v9, 16 }
  0xd6   : > { %v840_v13 = vpop.permute.xlu1 %839  ;;  %v828_v27 = vpop.permute.xlu0 %827 }
  0xd7   : > { %v7452_v29 = vsel %vm1011_vm1, %v1106_v16, %v1117_v8  ;;  %v1782_v55 = vrot.slane %v1780_v21, 1  ;;  %v1724_v33 = vmul.bf16 %v6771_v32, %v5309_v6  ;;  %v848_v34 = vrot.slane %v840_v13, %v7299_v50  ;;  %6278 = vmatpush3.bf16.msra.mxu0 %v6734_v63  ;;  %v6773_v21 = vld [vmem:[#allocation2 + $0xd8] sm:$0xff]  ;;  %v7501_v32 = vld [vmem:[#allocation2] sm:$0xff] }
  0xd8   : > { %1177 = vst [vmem:[#allocation2 + $0x68] sm:$0xff] %v7452_v29  ;;  %v836_v35 = vrot.slane %v828_v27, %v7299_v50  ;;  %6018 = vmatmul.mubr.bf16.gmra.mrb[24].mxu1 %v7452_v29  ;;  %6279 = vmatprep.subr.bf16.mxu0 %v6736_v20 }
  0xd9   : > { %v7464_v37 = vsel %vm1735_vm4, %v1778_v24, %v1782_v55  ;;  %v1788_v22 = vshll.u32 %v1724_v33, 16  ;;  %v1786_v40 = vor.u32 %v1784_v28, %v1782_v55  ;;  %v1792_v4 = vshrl.u32 %v1724_v33, 16 }
  0xda   : > { %1894 = vst [vmem:[#allocation2 + $0x148] sm:$0xff] %v7464_v37  ;;  %v5300_v31 = vcombine.low %v836_v35, %v848_v34  ;;  %v864_v10 = vpop.permute.xlu1 %863  ;;  %v852_v39 = vpop.permute.xlu0 %851  ;;  %6241 = vmatprep.mubr.bf16.mxu0 %v7464_v37 }
  0xdb   : > { %v1790_v41 = vrot.slane %v1788_v22, 1  ;;  %v872_v19 = vrot.slane %v864_v10, %v7299_v50  ;;  %v860_v42 = vrot.slane %v852_v39, %v7299_v50  ;;  %6280 = vmatpush3.bf16.msra.mxu0 %v6736_v20  ;;  %v7508_v39 = vld [vmem:[#allocation2 + $0xe0] sm:$0xff] }
  0xdc   : > { %v1006_v43 = vmul.bf16 %v5300_v31, %v7220_v57  ;;  %6313 = vmatprep.subr.bf16.mxu0 %v7461_v36 }
  0xdd   : > { %v7473_v44 = vsel %vm1735_vm4, %v1786_v40, %v1790_v41  ;;  %v5301_v45 = vcombine.low %v860_v42, %v872_v19  ;;  %v1794_v11 = vor.u32 %v1792_v4, %v1790_v41  ;;  %v2186_v42 = vld [vmem:[#allocation2 + $0x98] sm:$0xff] }
  0xde   : > { %1895 = vst [vmem:[#allocation2 + $0x150] sm:$0xff] %v7473_v44  ;;  %v1120_v48 = vshrl.u32 %v1006_v43, 16  ;;  %v1421_v49 = vpop.permute.xlu1 %1420  ;;  %v1409_v52 = vpop.permute.xlu0 %1408  ;;  %6242 = vmatmul.mubr.bf16.gmra.mrb[8].mxu0 %v7473_v44  ;;  %v1123_v56 = vshll.u32 %v1006_v43, 16 }
  0xdf   : > { %v1007_v26 = vmul.bf16 %v5301_v45, %v7231_v1  ;;  %v1429_v53 = vrot.slane %v1421_v49, %v7299_v50  ;;  %v1417_v54 = vrot.slane %v1409_v52, %v7299_v50  ;;  %v7516_v52 = vld [vmem:[#allocation2 + $0xa0] sm:$0xff] }
  0xe0   : > { %v1122_v57 = vrot.slane %v1120_v48, 7 }
  0xe1   : > { %v1128_v58 = vshrl.u32 %v1007_v26, 16  ;;  %v5310_v59 = vcombine.low %v1417_v54, %v1429_v53  ;;  %v1131_v60 = vshll.u32 %v1007_v26, 16  ;;  %v6731_v26 = vld [vmem:[%s7878_s5 + $0x88] sm:$0xff]  }
  0xe2   : > { %v1125_v17 = vor.u32 %v1123_v56, %v1122_v57  ;;  %v1445_v16 = vpop.permute.xlu1 %1444  ;;  %v1433_v62 = vpop.permute.xlu0 %1432  ;;  %v7521_v53 = vld [vmem:[#allocation2 + $0xe8] sm:$0xff] }
  0xe3   : > { %v7480_v63 = vrot.slane %v1128_v58, 7  ;;  %v1725_v51 = vmul.bf16 %v6772_v0, %v5310_v59  ;;  %v1453_v2 = vrot.slane %v1445_v16, %v7299_v50  ;;  %v1441_v1 = vrot.slane %v1433_v62, %v7299_v50 }
  0xe4   : > { %v7486_v5 = vsel %vm1011_vm1, %v7437_v61, %v1125_v17 }
  0xe5   : > { %1178 = vst [vmem:[#allocation2 + $0x70] sm:$0xff] %v7486_v5  ;;  %v1133_v7 = vor.u32 %v1131_v60, %v7480_v63  ;;  %v1796_v30 = vshll.u32 %v1725_v51, 16  ;;  %v5311_v9 = vcombine.low %v1441_v1, %v1453_v2  ;;  %6021 = vmatprep.mubr.bf16.mxu1 %v7486_v5  ;;  %v1800_v27 = vshrl.u32 %v1725_v51, 16  ;;  %v6733_v1 = vld [vmem:[%s7878_s5 + $0x90] sm:$0xff]  }
  0xe6   : > { %v1469_v12 = vpop.permute.xlu1 %1468  ;;  %v1457_v15 = vpop.permute.xlu0 %1456 }
  0xe7   : > { %v7492_v20 = vsel %vm1011_vm1, %v1122_v57, %v1133_v7  ;;  %v1798_v8 = vrot.slane %v1796_v30, 1  ;;  %v1726_v6 = vmul.bf16 %v6773_v21, %v5311_v9  ;;  %v1477_v61 = vrot.slane %v1469_v12, %v7299_v50  ;;  %v7535_v7 = vld [vmem:[#allocation2 + $0xf0] sm:$0xff] }
  0xe8   : > { %1179 = vst [vmem:[#allocation2 + $0x78] sm:$0xff] %v7492_v20  ;;  %v1465_v24 = vrot.slane %v1457_v15, %v7299_v50  ;;  %6022 = vmatmul.mubr.bf16.gmra.mrb[28].mxu1 %v7492_v20 }
  0xe9   : > { %v7499_v13 = vsel %vm1735_vm4, %v1794_v11, %v1798_v8  ;;  %v1804_v55 = vshll.u32 %v1726_v6, 16  ;;  %6041 = vmatprep.mubr.bf16.mxu1 %v7501_v32  ;;  %v1802_v28 = vor.u32 %v1800_v27, %v1798_v8  ;;  %v1808_v43 = vshrl.u32 %v1726_v6, 16  ;;  %v7544_v8 = vld [vmem:[#allocation2 + $0xa8] sm:$0xff]  ;;  %v6735_v27 = vld [vmem:[%s7878_s5 + $0x98] sm:$0xff]  }
  0xea   : > { %1896 = vst [vmem:[#allocation2 + $0x158] sm:$0xff] %v7499_v13  ;;  %v5312_v33 = vcombine.low %v1465_v24, %v1477_v61  ;;  %v1493_v34 = vpop.permute.xlu1 %1492  ;;  %v1481_v35 = vpop.permute.xlu0 %1480  ;;  %6245 = vmatprep.mubr.bf16.mxu0 %v7499_v13  ;;  %v7548_v24 = vld [vmem:[#allocation2 + $0xb0] sm:$0xff] }
  0xeb   : > { %v1806_v22 = vrot.slane %v1804_v55, 1  ;;  %v1501_v31 = vrot.slane %v1493_v34, %v7299_v50  ;;  %v1489_v10 = vrot.slane %v1481_v35, %v7299_v50 }
  0xec   : > { %v1727_v40 = vmul.bf16 %v7508_v39, %v5312_v33 }
  0xed   : > { %v7512_v41 = vsel %vm1735_vm4, %v1802_v28, %v1806_v22  ;;  %v5313_v19 = vcombine.low %v1489_v10, %v1501_v31  ;;  %v1810_v58 = vor.u32 %v1808_v43, %v1806_v22  ;;  %v7555_v28 = vld [vmem:[#allocation2 + $0xf8] sm:$0xff] }
  0xee   : > { %1897 = vst [vmem:[#allocation2 + $0x160] sm:$0xff] %v7512_v41  ;;  %v1812_v45 = vshll.u32 %v1727_v40, 16  ;;  %v1517_v48 = vpop.permute.xlu1 %1516  ;;  %v1505_v49 = vpop.permute.xlu0 %1504  ;;  %6246 = vmatmul.mubr.bf16.gmra.mrb[12].mxu0 %v7512_v41  ;;  %v1816_v17 = vshrl.u32 %v1727_v40, 16 }
  0xef   : > { %v1728_v54 = vmul.bf16 %v7521_v53, %v5313_v19  ;;  %v1525_v57 = vrot.slane %v1517_v48, %v7299_v50  ;;  %v1513_v56 = vrot.slane %v1505_v49, %v7299_v50 }
  0xf0   : > { %v1814_v59 = vrot.slane %v1812_v45, 1  ;;  %6042 = vmatmul.mubr.bf16.vlgmr.msra.gmra.mrb[0].mxu1 %v2186_v42  ;;  %v6737_v45 = vld [vmem:[%s7878_s5 + $0xa0] sm:$0xff]  }
  0xf1   : > { %v1820_v60 = vshll.u32 %v1728_v54, 16  ;;  %v5314_v16 = vcombine.low %v1513_v56, %v1525_v57  ;;  %6045 = vmatprep.mubr.bf16.mxu1 %v7516_v52  ;;  %6074 = vmatpush3.bf16.msra.mxu1 %v7377_v47  ;;  %v1824_v12 = vshrl.u32 %v1728_v54, 16 }
  0xf2   : > { %v7529_v62 = vsel %vm1735_vm4, %v1810_v58, %v1814_v59  ;;  %v1818_v0 = vor.u32 %v1816_v17, %v1814_v59  ;;  %v1541_v51 = vpop.permute.xlu1 %1540  ;;  %v1529_v2 = vpop.permute.xlu0 %1528  ;;  %6075 = vmatprep.subr.bf16.mxu1 %v6731_v26  ;;  %v7570_v59 = vld [vmem:[#allocation2 + $0xb8] sm:$0xff] }
  0xf3   : > { %1898 = vst [vmem:[#allocation2 + $0x168] sm:$0xff] %v7529_v62  ;;  %v1822_v4 = vrot.slane %v1820_v60, 1  ;;  %v1729_v30 = vmul.bf16 %v7535_v7, %v5314_v16  ;;  %v1549_v47 = vrot.slane %v1541_v51, %v7299_v50  ;;  %v1537_v9 = vrot.slane %v1529_v2, %v7299_v50  ;;  %6249 = vmatprep.mubr.bf16.mxu0 %v7529_v62  ;;  %v7575_v51 = vld [vmem:[#allocation2 + $0xc0] sm:$0xff]  ;;  %v6739_v2 = vld [vmem:[%s7878_s5 + $0xa8] sm:$0xff]  }
  0xf5   : > { %v7542_v11 = vsel %vm1735_vm4, %v1818_v0, %v1822_v4  ;;  %v1828_v15 = vshll.u32 %v1729_v30, 16  ;;  %6076 = vmatpush3.bf16.msra.mxu1 %v6731_v26  ;;  %v5315_v21 = vcombine.low %v1537_v9, %v1549_v47  ;;  %v1826_v55 = vor.u32 %v1824_v12, %v1822_v4  ;;  %v7580_v4 = vld [vmem:[#allocation2 + $0x100] sm:$0xff] }
  0xf6   : > { %1899 = vst [vmem:[#allocation2 + $0x170] sm:$0xff] %v7542_v11  ;;  %v1613_v6 = vpop.permute.xlu1 %1612  ;;  %v1601_v61 = vpop.permute.xlu0 %1600  ;;  %6250 = vmatmul.mubr.bf16.gmra.mrb[16].mxu0 %v7542_v11  ;;  %6077 = vmatprep.subr.bf16.mxu1 %v6733_v1  ;;  %v1832_v40 = vshrl.u32 %v1729_v30, 16 }
  0xf7   : > { %v1830_v33 = vrot.slane %v1828_v15, 1  ;;  %v1621_v34 = vrot.slane %v1613_v6, %v7299_v50  ;;  %v1609_v35 = vrot.slane %v1601_v61, %v7299_v50  ;;  %v1730_v22 = vmul.bf16 %v7555_v28, %v5315_v21  ;;  %v1905_v15 = vld [vmem:[#allocation2 + $0x1a0] sm:$0xff] }
  0xf8   : > { %6046 = vmatmul.mubr.bf16.gmra.mrb[4].mxu1 %v7544_v8 }
  0xf9   : > { %v7560_v31 = vsel %vm1735_vm4, %v1826_v55, %v1830_v33  ;;  %v5318_v10 = vcombine.low %v1609_v35, %v1621_v34  ;;  %6049 = vmatprep.mubr.bf16.mxu1 %v7548_v24  ;;  %6078 = vmatpush3.bf16.msra.mxu1 %v6733_v1  ;;  %v1836_v19 = vshll.u32 %v1730_v22, 16  ;;  %v1834_v54 = vor.u32 %v1832_v40, %v1830_v33  ;;  %v6741_v34 = vld [vmem:[%s7878_s5 + $0xb0] sm:$0xff]  }
  0xfa   : > { %v1565_v42 = vpop.permute.xlu1 %1564  ;;  %v1553_v43 = vpop.permute.xlu0 %1552  ;;  %6253 = vmatprep.mubr.bf16.mxu0 %v7560_v31  ;;  %6079 = vmatprep.subr.bf16.mxu1 %v6735_v27  ;;  %v1840_v12 = vshrl.u32 %v1730_v22, 16 }
  0xfb   : > { %v1733_v48 = vmul.bf16 %v5318_v10, %v7284_v38  ;;  %v1573_v49 = vrot.slane %v1565_v42, %v7299_v50  ;;  %v1561_v26 = vrot.slane %v1553_v43, %v7299_v50  ;;  %v1838_v57 = vrot.slane %v1836_v19, 1  ;;  %v7593_v10 = vld [vmem:[#allocation2 + $0x108] sm:$0xff] }
  0xfd   : > { %v1860_v56 = vshll.u32 %v1733_v48, 16  ;;  %v5316_v58 = vcombine.low %v1561_v26, %v1573_v49  ;;  %6080 = vmatpush3.bf16.msra.mxu1 %v6735_v27  ;;  %v7573_v17 = vsel %vm1735_vm4, %v1834_v54, %v1838_v57  ;;  %v1864_v60 = vshrl.u32 %v1733_v48, 16  ;;  %v7601_v49 = vld [vmem:[#allocation2 + $0xc8] sm:$0xff]  ;;  %v7604_v26 = vld [vmem:[#allocation2 + $0xd0] sm:$0xff]  ;;  %v6743_v54 = vld [vmem:[%s7878_s5 + $0xb8] sm:$0xff]  }
  0xfe   : > { %v1589_v16 = vpop.permute.xlu1 %1588  ;;  %v1577_v0 = vpop.permute.xlu0 %1576  ;;  %6081 = vmatprep.subr.bf16.mxu1 %v6737_v45  ;;  %6254 = vmatmul.mubr.bf16.gmra.mrb[20].mxu0 %v7573_v17  ;;  %v1842_v27 = vor.u32 %v1840_v12, %v1838_v57 }
  0xff   : > { %v1862_v1 = vrot.slane %v1860_v56, 1  ;;  %v1731_v30 = vmul.bf16 %v7580_v4, %v5316_v58  ;;  %v1597_v47 = vrot.slane %v1589_v16, %v7299_v50  ;;  %v1585_v9 = vrot.slane %v1577_v0, %v7299_v50 }
 0x100   : > { %6050 = vmatmul.mubr.bf16.gmra.mrb[8].mxu1 %v7570_v59 }
 0x101   : > { %v1866_v21 = vor.u32 %v1864_v60, %v1862_v1  ;;  %v1844_v6 = vshll.u32 %v1731_v30, 16  ;;  %v5317_v61 = vcombine.low %v1585_v9, %v1597_v47  ;;  %6053 = vmatprep.mubr.bf16.mxu1 %v7575_v51  ;;  %6082 = vmatpush3.bf16.msra.mxu1 %v6737_v45  ;;  %v1848_v45 = vshrl.u32 %v1731_v30, 16  ;;  %v1181_v47 = vld [vmem:[#allocation2 + $0x88] sm:$0x1] }
 0x102   : > { %v888_v55 = vpop.permute.xlu1 %887  ;;  %v876_v33 = vpop.permute.xlu0 %875  ;;  %6083 = vmatprep.subr.bf16.mxu1 %v6739_v2 }
 0x103   : > { %v1906_v35 = vsel %vm7023_vm5, %v1866_v21, %v1905_v15  ;;  %v1846_v22 = vrot.slane %v1844_v6, 1  ;;  %v1732_v40 = vmul.bf16 %v7593_v10, %v5317_v61  ;;  %v896_v19 = vrot.slane %v888_v55, %v7299_v50  ;;  %v7627_v21 = vld [vmem:[#allocation2 + $0xd8] sm:$0xff] }
 0x104   : > { %1907 = vst [vmem:[#allocation2 + $0x1a0] sm:$0xff] %v1906_v35  ;;  %v884_v42 = vrot.slane %v876_v33, %v7299_v50  ;;  %v7657_v33 = vld [vmem:[#allocation2 + $0x20] sm:$0xff]  ;;  %v7682_v35 = vld [vmem:[#allocation2 + $0x38] sm:$0xff] }
 0x105   : > { %v7599_v43 = vsel %vm1735_vm4, %v1842_v27, %v1846_v22  ;;  %v1852_v48 = vshll.u32 %v1732_v40, 16  ;;  %6084 = vmatpush3.bf16.msra.mxu1 %v6739_v2  ;;  %v1850_v57 = vor.u32 %v1848_v45, %v1846_v22  ;;  %v1856_v56 = vshrl.u32 %v1732_v40, 16  ;;  %v7619_v2 = vld [vmem:[%s7878_s5 + $0xc0] sm:$0xff]   ;;  %v7641_v27 = vld [vmem:[#allocation2 + $0x10] sm:$0xff]  ;;  %v2524_v40 = vld [vmem:[#allocation2 + $0x128] sm:$0xff] }
 0x106   : > { %v5302_v25 = vcombine.low %v884_v42, %v896_v19  ;;  %6257 = vmatprep.mubr.bf16.mxu0 %v7599_v43  ;;  %6085 = vmatprep.subr.bf16.mxu1 %v6741_v34  ;;  %v7685_v22 = vld [vmem:[#allocation2 + $0x40] sm:$0xff]  ;;  %v6750_v19 = vld [vmem:[%s7878_s5 + $0x1f0] sm:$0xff]  }
 0x107   : > { %v1854_v50 = vrot.slane %v1852_v48, 1  ;;  %v7694_v42 = vld [vmem:[#allocation2 + $0x130] sm:$0xff]  ;;  %v7701_v48 = vld [vmem:[#allocation2 + $0x48] sm:$0xff] }
 0x108   : > { %v1008_v58 = vmul.bf16 %v5302_v25, %v7284_v38  ;;  %6054 = vmatmul.mubr.bf16.gmra.mrb[12].mxu1 %v7601_v49  ;;  %v6749_v45 = vld [vmem:[%s7878_s5 + $0xd0] sm:$0xff]   ;;  %v6752_v25 = vld [vmem:[%s7878_s5 + $0x1f8] sm:$0xff]  }
 0x109   : > { %v7612_v60 = vsel %vm1735_vm4, %v1850_v57, %v1854_v50  ;;  %v1858_v16 = vor.u32 %v1856_v56, %v1854_v50  ;;  %6057 = vmatprep.mubr.bf16.mxu1 %v7604_v26  ;;  %6086 = vmatpush3.bf16.msra.mxu1 %v6741_v34  ;;  %v6748_v34 = vld [vmem:[%s7878_s5 + $0x1e8] sm:$0xff]   ;;  %v6751_v57 = vld [vmem:[%s7878_s5 + $0xd8] sm:$0xff]   ;;  %v6754_v56 = vld [vmem:[%s7878_s5 + $0x200] sm:$0xff]  }
 0x10a   : > { %v1136_v0 = vshrl.u32 %v1008_v58, 16  ;;  %6258 = vmatmul.mubr.bf16.gmra.mrb[24].mxu0 %v7612_v60  ;;  %6087 = vmatprep.subr.bf16.mxu1 %v6743_v54  ;;  %v1139_v15 = vshll.u32 %v1008_v58, 16  ;;  %v7713_v50 = vld [vmem:[#allocation2 + $0x138] sm:$0xff]  ;;  %v6753_v58 = vld [vmem:[%s7878_s5 + $0xe0] sm:$0xff]  }
 0x10b   : > { %v1908_v30 = vld [vmem:[#allocation2 + $0x1a0] sm:$0x80]  ;;  %v7622_v38 = vsel %vm1735_vm4, %v1858_v16, %v1862_v1  ;;  %v7723_v16 = vld [vmem:[#allocation2 + $0x58] sm:$0xff] }
 0x10c   : > { %v1909_v9 = vsel %vm7365_vm10, 0, %v1908_v30  ;;  %v1138_v12 = vrot.slane %v1136_v0, 7  ;;  %6261 = vmatprep.mubr.bf16.mxu0 %v7622_v38  ;;  %v6757_v0 = vld [vmem:[%s7878_s5 + $0xf0] sm:$0xff]   ;;  %v6786_v30 = vld [vmem:[%s7878_s5 + $0x128] sm:$0xff]  }
 0x10d   : > { %1910 = vst [vmem:[#allocation2 + $0x1a0] sm:$0x80] %v1909_v9  ;;  %6088 = vmatpush3.bf16.msra.mxu1 %v6743_v54  ;;  %v7707_v54 = vld [vmem:[#allocation2 + $0x50] sm:$0xff] }
 0x10e   : > { %v1141_v6 = vor.u32 %v1139_v15, %v1138_v12  ;;  %v1182_v61 = vsel %vm6918_vm2, %v1138_v12, %v1181_v47  ;;  %6121 = vmatprep.subr.bf16.mxu1 %v7619_v2  ;;  %v4225_v47 = vld [vmem:[#allocation2 + $0x100] sm:$0xff]  ;;  %v6787_v9 = vld [vmem:[%s7878_s5 + $0x130] sm:$0xff]   ;;  %v4226_v12 = vld [vmem:[#allocation2 + $0x108] sm:$0xff] }
 0x10f   : > { %1183 = vst [vmem:[#allocation2 + $0x88] sm:$0x1] %v1182_v61  ;;  %v6788_v15 = vld [vmem:[%s7878_s5 + $0x138] sm:$0xff]   ;;  %v2872_v61 = vld [vmem:[#allocation2 + $0x60] sm:$0xff] }
 0x110   : > { %v7634_v1 = vsel %vm1011_vm1, %v7480_v63, %v1141_v6  ;;  %6058 = vmatmul.mubr.bf16.gmra.mrb[16].mxu1 %v7627_v21  ;;  %v6740_v63 = vld [vmem:[%s7878_s5 + $0x1c8] sm:$0xff]   ;;  %v6789_v6 = vld [vmem:[#allocation2 + $0x110] sm:$0xff] }
 0x111   : > { %6061 = vmatprep.mubr.bf16.mxu1 %v7508_v39  ;;  %v7654_v39 = vld [vmem:[#allocation2 + $0x18] sm:$0xff] }
 0x114   : > { %v7638_v3 = vld [vmem:[#allocation2 + $0x1a0] sm:$0xff] }
 0x115   : > { %6262 = vmatmul.mubr.bf16.gmra.mrb[28].mxu0 %v7638_v3 }
 0x116   : > { %v1184_v55 = vld [vmem:[#allocation2 + $0x88] sm:$0xff]  ;;  %6281 = vmatprep.mubr.bf16.mxu0 %v7641_v27 }
 0x117   : > { %v7646_v23 = vsel %vm7312_vm7, 0, %v1184_v55  ;;  %v4553_v55 = vld [vmem:[#allocation2 + $0x140] sm:$0xff] }
 0x118   : > { %1186 = vst [vmem:[#allocation2 + $0x88] sm:$0xff] %v7646_v23  ;;  %6062 = vmatmul.mubr.bf16.gmra.mrb[20].mxu1 %v7521_v53  ;;  %v6744_v53 = vld [vmem:[%s7878_s5 + $0x1d8] sm:$0xff]  }
 0x119   : > { %6065 = vmatprep.mubr.bf16.mxu1 %v7535_v7  ;;  %v7669_v7 = vld [vmem:[#allocation2 + $0x28] sm:$0xff] }
 0x11d   : > { %6282 = vmatmul.mubr.bf16.vlgmr.msra.gmra.mrb[0].mxu0 %v7654_v39 }
 0x11e   : > { %6314 = vmatpush3.bf16.msra.mxu0 %v7461_v36  ;;  %6285 = vmatprep.mubr.bf16.mxu0 %v7657_v33  ;;  %v7672_v36 = vld [vmem:[#allocation2 + $0x30] sm:$0xff] }
 0x11f   : > { %6315 = vmatprep.subr.bf16.mxu0 %v6740_v63 }
 0x120   : > { %6066 = vmatmul.mubr.bf16.gmra.mrb[24].mxu1 %v7555_v28  ;;  %v6746_v28 = vld [vmem:[%s7878_s5 + $0x1e0] sm:$0xff]  }
 0x121   : > { %6069 = vmatprep.mubr.bf16.mxu1 %v7580_v4  ;;  %v2523_v4 = vld [vmem:[#allocation2 + $0x120] sm:$0xff] }
 0x122   : > { %6316 = vmatpush3.bf16.msra.mxu0 %v6740_v63  ;;  %v2875_v63 = vld [vmem:[#allocation2 + $0x78] sm:$0xff] }
 0x123   : > { %6317 = vmatprep.subr.bf16.mxu0 %v6742_v14 }
 0x125   : > { %6286 = vmatmul.mubr.bf16.gmra.mrb[4].mxu0 %v7669_v7 }
 0x126   : > { %6289 = vmatprep.mubr.bf16.mxu0 %v7672_v36  ;;  %6318 = vmatpush3.bf16.msra.mxu0 %v6742_v14  ;;  %v4556_v14 = vld [vmem:[#allocation2 + $0x158] sm:$0xff] }
 0x127   : > { %6319 = vmatprep.subr.bf16.mxu0 %v6744_v53 }
 0x128   : > { %6070 = vmatmul.mubr.bf16.gmra.mrb[28].mxu1 %v7593_v10  ;;  %v6747_v10 = vld [vmem:[%s7878_s5 + $0xc8] sm:$0xff]  }
 0x129   : > { %6089 = vmatprep.mubr.bf16.mxu1 %v2523_v4 }
 0x12a   : > { %6320 = vmatpush3.bf16.msra.mxu0 %v6744_v53  ;;  %v4557_v53 = vld [vmem:[#allocation2 + $0x160] sm:$0xff] }
 0x12b   : > { %6321 = vmatprep.subr.bf16.mxu0 %v6746_v28 }
 0x12d   : > { %6290 = vmatmul.mubr.bf16.gmra.mrb[8].mxu0 %v7682_v35 }
 0x12e   : > { %6293 = vmatprep.mubr.bf16.mxu0 %v7685_v22  ;;  %6322 = vmatpush3.bf16.msra.mxu0 %v6746_v28 }
 0x12f   : > { %6323 = vmatprep.subr.bf16.mxu0 %v6748_v34 }
 0x130   : > { %6090 = vmatmul.mubr.bf16.vlgmr.msra.gmra.mrb[0].mxu1 %v2524_v40 }
 0x131   : > { %6093 = vmatprep.mubr.bf16.mxu1 %v7694_v42  ;;  %6122 = vmatpush3.bf16.msra.mxu1 %v7619_v2  ;;  %v4224_v2 = vld [vmem:[#allocation2 + $0xf8] sm:$0xff] }
 0x132   : > { %6123 = vmatprep.subr.bf16.mxu1 %v6747_v10  ;;  %6324 = vmatpush3.bf16.msra.mxu0 %v6748_v34 }
 0x133   : > { %6325 = vmatprep.subr.bf16.mxu0 %v6750_v19 }
 0x135   : > { %6294 = vmatmul.mubr.bf16.gmra.mrb[12].mxu0 %v7701_v48  ;;  %6124 = vmatpush3.bf16.msra.mxu1 %v6747_v10 }
 0x136   : > { %6297 = vmatprep.mubr.bf16.mxu0 %v7707_v54  ;;  %6125 = vmatprep.subr.bf16.mxu1 %v6749_v45 }
 0x137   : > { %6326 = vmatpush3.bf16.msra.mxu0 %v6750_v19 }
 0x138   : > { %6094 = vmatmul.mubr.bf16.gmra.mrb[4].mxu1 %v7713_v50  ;;  %6327 = vmatprep.subr.bf16.mxu0 %v6752_v25 }
 0x139   : > { %6097 = vmatprep.mubr.bf16.mxu1 %v7427_v46  ;;  %6126 = vmatpush3.bf16.msra.mxu1 %v6749_v45  ;;  %v6755_v46 = vld [vmem:[%s7878_s5 + $0xe8] sm:$0xff]  }
 0x13a   : > { %6127 = vmatprep.subr.bf16.mxu1 %v6751_v57 }
 0x13b   : > { %6328 = vmatpush3.bf16.msra.mxu0 %v6752_v25 }
 0x13c   : > { %6361 = vmatprep.subr.bf16.mxu0 %v6754_v56 }
 0x13d   : > { %6298 = vmatmul.mubr.bf16.gmra.mrb[16].mxu0 %v7723_v16  ;;  %6128 = vmatpush3.bf16.msra.mxu1 %v6751_v57 }
 0x13e   : > { %6301 = vmatprep.mubr.bf16.mxu0 %v7443_v18  ;;  %6129 = vmatprep.subr.bf16.mxu1 %v6753_v58  ;;  %v6759_v18 = vld [vmem:[%s7878_s5 + $0xf8] sm:$0xff]  }
 0x140   : > { %6098 = vmatmul.mubr.bf16.gmra.mrb[8].mxu1 %v7464_v37  ;;  %v6756_v37 = vld [vmem:[%s7878_s5 + $0x208] sm:$0xff]  }
 0x141   : > { %6101 = vmatprep.mubr.bf16.mxu1 %v7473_v44  ;;  %6130 = vmatpush3.bf16.msra.mxu1 %v6753_v58  ;;  %v6758_v44 = vld [vmem:[%s7878_s5 + $0x210] sm:$0xff]  }
 0x142   : > { %6131 = vmatprep.subr.bf16.mxu1 %v6755_v46 }
 0x145   : > { %6302 = vmatmul.mubr.bf16.gmra.mrb[20].mxu0 %v7452_v29  ;;  %6132 = vmatpush3.bf16.msra.mxu1 %v6755_v46  ;;  %v6781_v29 = vld [vmem:[%s7878_s5 + $0x100] sm:$0xff]  }
 0x146   : > { %6305 = vmatprep.mubr.bf16.mxu0 %v7486_v5  ;;  %6133 = vmatprep.subr.bf16.mxu1 %v6757_v0  ;;  %v6760_v5 = vld [vmem:[%s7878_s5 + $0x218] sm:$0xff]  }
 0x148   : > { %6102 = vmatmul.mubr.bf16.gmra.mrb[12].mxu1 %v7499_v13  ;;  %v2861_v13 = vld [vmem:[#allocation2 + $0x8] sm:$0xff] }
 0x149   : > { %6105 = vmatprep.mubr.bf16.mxu1 %v7512_v41  ;;  %6134 = vmatpush3.bf16.msra.mxu1 %v6757_v0  ;;  %v6762_v41 = vld [vmem:[%s7878_s5 + $0x228] sm:$0xff]  }
 0x14a   : > { %6135 = vmatprep.subr.bf16.mxu1 %v6759_v18 }
 0x14d   : > { %6306 = vmatmul.mubr.bf16.gmra.mrb[24].mxu0 %v7492_v20  ;;  %6136 = vmatpush3.bf16.msra.mxu1 %v6759_v18  ;;  %v6761_v20 = vld [vmem:[%s7878_s5 + $0x220] sm:$0xff]  }
 0x14e   : > { %6309 = vmatprep.mubr.bf16.mxu0 %v7634_v1  ;;  %6409 = vmatprep.subr.bf16.mxu1 %v6781_v29 }
 0x150   : > { %6106 = vmatmul.mubr.bf16.gmra.mrb[16].mxu1 %v7529_v62  ;;  %v6782_v62 = vld [vmem:[%s7878_s5 + $0x108] sm:$0xff]  }
 0x151   : > { %6109 = vmatprep.mubr.bf16.mxu1 %v7542_v11  ;;  %v7785_v11 = vld [vmem:[#allocation2 + $0xe0] sm:$0xff] }
 0x155   : > { %6310 = vmatmul.mubr.bf16.gmra.mrb[28].mxu0 %v7646_v23  ;;  %v2874_v23 = vld [vmem:[#allocation2 + $0x70] sm:$0xff] }
 0x156   : > { %6329 = vmatprep.mubr.bf16.mxu0 %v7516_v52  ;;  %v6763_v52 = vld [vmem:[%s7878_s5 + $0x230] sm:$0xff]  }
 0x158   : > { %6110 = vmatmul.mubr.bf16.gmra.mrb[20].mxu1 %v7560_v31 }
 0x159   : > { %6113 = vmatprep.mubr.bf16.mxu1 %v7573_v17 }
 0x15d   : > { %6330 = vmatmul.mubr.bf16.vlgmr.msra.gmra.mrb[0].mxu0 %v7544_v8  ;;  %v6764_v8 = vld [vmem:[%s7878_s5 + $0x238] sm:$0xff]  }
 0x15e   : > { %6362 = vmatpush3.bf16.msra.mxu0 %v6754_v56  ;;  %6333 = vmatprep.mubr.bf16.mxu0 %v7548_v24  ;;  %v6783_v24 = vld [vmem:[%s7878_s5 + $0x110] sm:$0xff]  }
 0x15f   : > { %6363 = vmatprep.subr.bf16.mxu0 %v6756_v37 }
 0x160   : > { %6114 = vmatmul.mubr.bf16.gmra.mrb[24].mxu1 %v7599_v43 }
 0x161   : > { %6117 = vmatprep.mubr.bf16.mxu1 %v7612_v60 }
 0x162   : > { %6364 = vmatpush3.bf16.msra.mxu0 %v6756_v37 }
 0x163   : > { %6365 = vmatprep.subr.bf16.mxu0 %v6758_v44 }
 0x165   : > { %6334 = vmatmul.mubr.bf16.gmra.mrb[4].mxu0 %v7570_v59  ;;  %v4222_v59 = vld [vmem:[#allocation2 + $0xe8] sm:$0xff] }
 0x166   : > { %6337 = vmatprep.mubr.bf16.mxu0 %v7575_v51  ;;  %6366 = vmatpush3.bf16.msra.mxu0 %v6758_v44  ;;  %v6784_v51 = vld [vmem:[%s7878_s5 + $0x118] sm:$0xff]  }
 0x167   : > { %6367 = vmatprep.subr.bf16.mxu0 %v6760_v5 }
 0x168   : > { %6118 = vmatmul.mubr.bf16.gmra.mrb[28].mxu1 %v7622_v38 }
 0x169   : > { %6137 = vmatprep.mubr.bf16.mxu1 %v2861_v13 }
 0x16a   : > { %6368 = vmatpush3.bf16.msra.mxu0 %v6760_v5 }
 0x16b   : > { %6369 = vmatprep.subr.bf16.mxu0 %v6761_v20 }
 0x16d   : > { %6338 = vmatmul.mubr.bf16.gmra.mrb[8].mxu0 %v7601_v49  ;;  %v4223_v49 = vld [vmem:[#allocation2 + $0xf0] sm:$0xff] }
 0x16e   : > { %6341 = vmatprep.mubr.bf16.mxu0 %v7604_v26  ;;  %6370 = vmatpush3.bf16.msra.mxu0 %v6761_v20  ;;  %v6785_v26 = vld [vmem:[%s7878_s5 + $0x120] sm:$0xff]  }
 0x16f   : > { %6371 = vmatprep.subr.bf16.mxu0 %v6762_v41 }
 0x170   : > { %6138 = vmatmul.mubr.bf16.vlgmr.msra.gmra.mrb[0].mxu1 %v7641_v27  ;;  %v2873_v27 = vld [vmem:[#allocation2 + $0x68] sm:$0xff] }
 0x171   : > { %6141 = vmatprep.mubr.bf16.mxu1 %v7654_v39  ;;  %6417 = vmatpush3.bf16.msra.mxu1 %v6781_v29  ;;  %v4554_v39 = vld [vmem:[#allocation2 + $0x148] sm:$0xff] }
 0x172   : > { %6410 = vmatprep.subr.bf16.mxu1 %v6782_v62  ;;  %6372 = vmatpush3.bf16.msra.mxu0 %v6762_v41 }
 0x173   : > { %6373 = vmatprep.subr.bf16.mxu0 %v6763_v52 }
 0x175   : > { %6342 = vmatmul.mubr.bf16.gmra.mrb[12].mxu0 %v7627_v21  ;;  %6418 = vmatpush3.bf16.msra.mxu1 %v6782_v62 }
 0x176   : > { %6345 = vmatprep.mubr.bf16.mxu0 %v7785_v11  ;;  %6411 = vmatprep.subr.bf16.mxu1 %v6783_v24 }
 0x177   : > { %6374 = vmatpush3.bf16.msra.mxu0 %v6763_v52 }
 0x178   : > { %6142 = vmatmul.mubr.bf16.gmra.mrb[4].mxu1 %v7657_v33  ;;  %6375 = vmatprep.subr.bf16.mxu0 %v6764_v8  ;;  %v4555_v33 = vld [vmem:[#allocation2 + $0x150] sm:$0xff] }
 0x179   : > { %6145 = vmatprep.mubr.bf16.mxu1 %v7669_v7  ;;  %6419 = vmatpush3.bf16.msra.mxu1 %v6783_v24  ;;  %v4558_v7 = vld [vmem:[#allocation2 + $0x168] sm:$0xff] }
 0x17a   : > { %6412 = vmatprep.subr.bf16.mxu1 %v6784_v51 }
 0x17b   : > { %6376 = vmatpush3.bf16.msra.mxu0 %v6764_v8 }
 0x17d   : > { %6346 = vmatmul.mubr.bf16.gmra.mrb[16].mxu0 %v4222_v59  ;;  %6420 = vmatpush3.bf16.msra.mxu1 %v6784_v51 }
 0x17e   : > { %6349 = vmatprep.mubr.bf16.mxu0 %v4223_v49  ;;  %6413 = vmatprep.subr.bf16.mxu1 %v6785_v26 }
 0x180   : > { %6146 = vmatmul.mubr.bf16.gmra.mrb[8].mxu1 %v7672_v36  ;;  %v4559_v36 = vld [vmem:[#allocation2 + $0x170] sm:$0xff] }
 0x181   : > { %6149 = vmatprep.mubr.bf16.mxu1 %v7682_v35  ;;  %6421 = vmatpush3.bf16.msra.mxu1 %v6785_v26 }
 0x182   : > { %6414 = vmatprep.subr.bf16.mxu1 %v6786_v30 }
 0x185   : > { %6350 = vmatmul.mubr.bf16.gmra.mrb[20].mxu0 %v4224_v2  ;;  %6422 = vmatpush3.bf16.msra.mxu1 %v6786_v30 }
 0x186   : > { %6353 = vmatprep.mubr.bf16.mxu0 %v4225_v47  ;;  %6415 = vmatprep.subr.bf16.mxu1 %v6787_v9 }
 0x188   : > { %6150 = vmatmul.mubr.bf16.gmra.mrb[12].mxu1 %v7685_v22 }
 0x189   : > { %6153 = vmatprep.mubr.bf16.mxu1 %v7701_v48  ;;  %6423 = vmatpush3.bf16.msra.mxu1 %v6787_v9 }
 0x18a   : > { %6416 = vmatprep.subr.bf16.mxu1 %v6788_v15 }
 0x18d   : > { %6354 = vmatmul.mubr.bf16.gmra.mrb[24].mxu0 %v4226_v12  ;;  %6424 = vmatpush3.bf16.msra.mxu1 %v6788_v15 }
 0x18e   : > { %6357 = vmatprep.mubr.bf16.mxu0 %v6789_v6 }
 0x190   : > { %6154 = vmatmul.mubr.bf16.gmra.mrb[16].mxu1 %v7707_v54 }
 0x191   : > { %6157 = vmatprep.mubr.bf16.mxu1 %v7723_v16 }
 0x195   : > { %6358 = vmatmul.mubr.bf16.gmra.mrb[28].mxu0 %v7501_v32 }
 0x196   : > { %6377 = vmatprep.mubr.bf16.mxu0 %v7694_v42 }
 0x198   : > { %6158 = vmatmul.mubr.bf16.gmra.mrb[20].mxu1 %v2872_v61 }
 0x199   : > { %6161 = vmatprep.mubr.bf16.mxu1 %v2873_v27 }
 0x19d   : > { %6378 = vmatmul.mubr.bf16.vlgmr.msra.gmra.mrb[0].mxu0 %v7713_v50 }
 0x19e   : > { %6381 = vmatprep.mubr.bf16.mxu0 %v4553_v55 }
 0x1a0   : > { %6162 = vmatmul.mubr.bf16.gmra.mrb[24].mxu1 %v2874_v23 }
 0x1a1   : > { %6165 = vmatprep.mubr.bf16.mxu1 %v2875_v63 }
 0x1a5   : > { %6382 = vmatmul.mubr.bf16.gmra.mrb[4].mxu0 %v4554_v39 }
 0x1a6   : > { %6385 = vmatprep.mubr.bf16.mxu0 %v4555_v33 }
 0x1a8   : > { %6166 = vmatmul.mubr.bf16.gmra.mrb[28].mxu1 %v7634_v1 }
 0x1a9   : > { %6201 = vmatprep.mubr.bf16.mxu1 %v7627_v21 }
 0x1ad   : > { %6386 = vmatmul.mubr.bf16.gmra.mrb[8].mxu0 %v4556_v14 }
 0x1ae   : > { %6389 = vmatprep.mubr.bf16.mxu0 %v4557_v53 }
 0x1b0   : > { %6202 = vmatmul.mubr.bf16.vlgmr.msra.gmra.mrb[16].mxu1 %v7785_v11 }
 0x1b1   : > { %6205 = vmatprep.mubr.bf16.mxu1 %v4222_v59 }
 0x1b5   : > { %6390 = vmatmul.mubr.bf16.gmra.mrb[12].mxu0 %v4558_v7 }
 0x1b6   : > { %6393 = vmatprep.mubr.bf16.mxu0 %v4559_v36 }
 0x1b8   : > { %6206 = vmatmul.mubr.bf16.gmra.mrb[20].mxu1 %v4223_v49 }
 0x1b9   : > { %6209 = vmatprep.mubr.bf16.mxu1 %v4224_v2 }
 0x1bd   : > { %6394 = vmatmul.mubr.bf16.gmra.mrb[16].mxu0 %v7560_v31 }
 0x1be   : > { %6397 = vmatprep.mubr.bf16.mxu0 %v7573_v17 }
 0x1c0   : > { %6210 = vmatmul.mubr.bf16.gmra.mrb[24].mxu1 %v4225_v47 }
 0x1c1   : > { %6213 = vmatprep.mubr.bf16.mxu1 %v4226_v12 }
 0x1c5   : > { %6398 = vmatmul.mubr.bf16.gmra.mrb[20].mxu0 %v7599_v43 }
 0x1c6   : > { %6401 = vmatprep.mubr.bf16.mxu0 %v7612_v60 }
 0x1c8   : > { %6214 = vmatmul.mubr.bf16.gmra.mrb[28].mxu1 %v6789_v6 }
 0x1cd   : > { %6402 = vmatmul.mubr.bf16.gmra.mrb[24].mxu0 %v7622_v38 }
 0x1ce   : > { %6405 = vmatprep.mubr.bf16.mxu0 %v7638_v3 }
 0x1d5   : > { %6406 = vmatmul.mubr.bf16.gmra.mrb[28].mxu0 %v7501_v32 }
 0x243   : > { %v6139_v21 = vpop.f32.mrb[0].mxu1 }
 0x244   : > { %v2976_v1 = vpop.f32.mrb[1].mxu1 }
 0x245   : > { %v6140_v28 = vpop.f32.mrb[2].mxu1 }
 0x246   : > { %v2979_v4 = vpop.f32.mrb[3].mxu1 }
 0x24b   : > { %v6143_v31 = vpop.f32.mrb[4].mxu1 }
 0x24c   : > { %v2992_v34 = vpop.f32.mrb[5].mxu1 }
 0x24d   : > { %v6144_v17 = vpop.f32.mrb[6].mxu1 }
 0x24e   : > { %v2995_v35 = vpop.f32.mrb[7].mxu1 }
 0x253   : > { %v6147_v22 = vpop.f32.mrb[8].mxu1 }
 0x254   : > { %v3008_v43 = vpop.f32.mrb[9].mxu1 }
 0x255   : > { %v6148_v10 = vpop.f32.mrb[10].mxu1 }
 0x256   : > { %v3011_v60 = vpop.f32.mrb[11].mxu1 }
 0x25b   : > { %v7831_v40 = vpop.f32.mrb[12].mxu1 }
 0x25c   : > { %v7833_v38 = vpop.f32.mrb[13].mxu1 }
 0x25d   : > { %v7835_v3 = vpop.f32.mrb[14].mxu1 }
 0x25e   : > { %v7837_v32 = vpop.f32.mrb[15].mxu1 }
 0x270   : > { %v6379_v19 = vpop.f32.mrb[0].mxu0 }
 0x271   : > { %v6425_v42 = vadd.f32 %v6379_v19, %v6139_v21  ;;  %v4666_v45 = vpop.f32.mrb[1].mxu0 }
 0x272   : > { %v6426_v48 = vadd.f32 %v4666_v45, %v2976_v1  ;;  %v6380_v25 = vpop.f32.mrb[2].mxu0 }
 0x273   : > { %v6427_v54 = vadd.f32 %v6380_v25, %v6140_v28  ;;  %v4669_v57 = vpop.f32.mrb[3].mxu0  ;;  %v5121_v18 = vmul.f32 %v6425_v42, %v6425_v42 }
 0x274   : > { %v6428_v50 = vadd.f32 %v4669_v57, %v2979_v4  ;;  %v5119_v58 = vmul.f32 %v6426_v48, %v6426_v48 }
 0x275   : > { %v5659_v56 = vpack.c.bf16 %v6427_v54, %v6425_v42  ;;  %v5122_v13 = vmul.f32 %v6427_v54, %v6427_v54 }
 0x276   : > { %v5654_v16 = vpack.c.bf16 %v6428_v50, %v6426_v48  ;;  %v5081_v46 = vadd.f32 %v6428_v50, %v6426_v48  ;;  %v5120_v0 = vmul.f32 %v6428_v50, %v6428_v50 }
 0x277   : > { %5746 = vst [vmem:[%s7844_s26 + $0x8] sm:$0xff] %v5659_v56  }
 0x278   : > { %5655 = vst [vmem:[%s7844_s26] sm:$0xff] %v5654_v16   ;;  %v5082_v29 = vadd.f32 %v6425_v42, %v5081_v46  ;;  %v5151_v37 = vadd.f32 %v5120_v0, %v5119_v58  ;;  %v6383_v44 = vpop.f32.mrb[4].mxu0 }
 0x279   : > { %v6429_v5 = vadd.f32 %v6383_v44, %v6143_v31  ;;  %v4682_v20 = vpop.f32.mrb[5].mxu0 }
 0x27a   : > { %v5152_v41 = vadd.f32 %v5151_v37, %v5121_v18  ;;  %v6430_v52 = vadd.f32 %v4682_v20, %v2992_v34  ;;  %v5083_v62 = vadd.f32 %v6427_v54, %v5082_v29  ;;  %v6384_v11 = vpop.f32.mrb[6].mxu0 }
 0x27b   : > { %v6431_v8 = vadd.f32 %v6384_v11, %v6144_v17  ;;  %v4685_v24 = vpop.f32.mrb[7].mxu0  ;;  %v5125_v15 = vmul.f32 %v6429_v5, %v6429_v5 }
 0x27c   : > { %v5084_v59 = vadd.f32 %v6430_v52, %v5083_v62  ;;  %v5123_v51 = vmul.f32 %v6430_v52, %v6430_v52  ;;  %v5153_v49 = vadd.f32 %v5152_v41, %v5122_v13  ;;  %v6432_v26 = vadd.f32 %v4685_v24, %v2995_v35 }
 0x27d   : > { %v5669_v2 = vpack.c.bf16 %v6431_v8, %v6429_v5  ;;  %v5126_v63 = vmul.f32 %v6431_v8, %v6431_v8 }
 0x27e   : > { %v5154_v30 = vadd.f32 %v5153_v49, %v5123_v51  ;;  %v5664_v47 = vpack.c.bf16 %v6432_v26, %v6430_v52  ;;  %v5085_v9 = vadd.f32 %v6432_v26, %v5084_v59  ;;  %v5124_v12 = vmul.f32 %v6432_v26, %v6432_v26 }
 0x27f   : > { %5748 = vst [vmem:[%s7844_s26 + $0x18] sm:$0xff] %v5669_v2  }
 0x280   : > { %5747 = vst [vmem:[%s7844_s26 + $0x10] sm:$0xff] %v5664_v47   ;;  %v5086_v6 = vadd.f32 %v6429_v5, %v5085_v9  ;;  %v5155_v61 = vadd.f32 %v5154_v30, %v5124_v12  ;;  %v6387_v27 = vpop.f32.mrb[8].mxu0 }
 0x281   : > { %v6433_v55 = vadd.f32 %v6387_v27, %v6147_v22  ;;  %v4698_v23 = vpop.f32.mrb[9].mxu0 }
 0x282   : > { %v5156_v39 = vadd.f32 %v5155_v61, %v5125_v15  ;;  %v6434_v33 = vadd.f32 %v4698_v23, %v3008_v43  ;;  %v5087_v14 = vadd.f32 %v6431_v8, %v5086_v6  ;;  %v6388_v53 = vpop.f32.mrb[10].mxu0 }
 0x283   : > { %v6435_v7 = vadd.f32 %v6388_v53, %v6148_v10  ;;  %v4701_v36 = vpop.f32.mrb[11].mxu0  ;;  %v6203_v21 = vpop.f32.mrb[16].mxu1  ;;  %v5129_v43 = vmul.f32 %v6433_v55, %v6433_v55 }
 0x284   : > { %v5088_v1 = vadd.f32 %v6434_v33, %v5087_v14  ;;  %v5127_v28 = vmul.f32 %v6434_v33, %v6434_v33  ;;  %v5157_v4 = vadd.f32 %v5156_v39, %v5126_v63  ;;  %v6436_v31 = vadd.f32 %v4701_v36, %v3011_v60  ;;  %v3378_v34 = vpop.f32.mrb[17].mxu1 }
 0x285   : > { %v5679_v17 = vpack.c.bf16 %v6435_v7, %v6433_v55  ;;  %v6204_v35 = vpop.f32.mrb[18].mxu1  ;;  %v5130_v56 = vmul.f32 %v6435_v7, %v6435_v7 }
 0x286   : > { %v5158_v19 = vadd.f32 %v5157_v4, %v5127_v28  ;;  %v5674_v22 = vpack.c.bf16 %v6436_v31, %v6434_v33  ;;  %v5089_v42 = vadd.f32 %v6436_v31, %v5088_v1  ;;  %v5128_v45 = vmul.f32 %v6436_v31, %v6436_v31  ;;  %v3381_v48 = vpop.f32.mrb[19].mxu1 }
 0x287   : > { %5750 = vst [vmem:[%s7844_s26 + $0x28] sm:$0xff] %v5679_v17  }
 0x288   : > { %5749 = vst [vmem:[%s7844_s26 + $0x20] sm:$0xff] %v5674_v22   ;;  %v5090_v25 = vadd.f32 %v6433_v55, %v5089_v42  ;;  %v5159_v10 = vadd.f32 %v5158_v19, %v5128_v45  ;;  %v6391_v54 = vpop.f32.mrb[12].mxu0 }
 0x289   : > { %v6437_v57 = vadd.f32 %v6391_v54, %v7831_v40  ;;  %v4714_v50 = vpop.f32.mrb[13].mxu0 }
 0x28a   : > { %v5160_v58 = vadd.f32 %v5159_v10, %v5129_v43  ;;  %v6438_v60 = vadd.f32 %v4714_v50, %v7833_v38  ;;  %v5091_v16 = vadd.f32 %v6435_v7, %v5090_v25  ;;  %v6392_v46 = vpop.f32.mrb[14].mxu0 }
 0x28b   : > { %v6439_v0 = vadd.f32 %v6392_v46, %v7835_v3  ;;  %v4717_v18 = vpop.f32.mrb[15].mxu0  ;;  %v6207_v29 = vpop.f32.mrb[20].mxu1  ;;  %v5133_v24 = vmul.f32 %v6437_v57, %v6437_v57 }
 0x28c   : > { %v5092_v37 = vadd.f32 %v6438_v60, %v5091_v16  ;;  %v5131_v44 = vmul.f32 %v6438_v60, %v6438_v60  ;;  %v5161_v5 = vadd.f32 %v5160_v58, %v5130_v56  ;;  %v6440_v20 = vadd.f32 %v4717_v18, %v7837_v32  ;;  %v3394_v13 = vpop.f32.mrb[21].mxu1 }
 0x28d   : > { %v5689_v40 = vpack.c.bf16 %v6439_v0, %v6437_v57  ;;  %v6208_v41 = vpop.f32.mrb[22].mxu1  ;;  %v5134_v2 = vmul.f32 %v6439_v0, %v6439_v0 }
 0x28e   : > { %v5162_v52 = vadd.f32 %v5161_v5, %v5131_v44  ;;  %v5684_v62 = vpack.c.bf16 %v6440_v20, %v6438_v60  ;;  %v5093_v11 = vadd.f32 %v6440_v20, %v5092_v37  ;;  %v5132_v38 = vmul.f32 %v6440_v20, %v6440_v20  ;;  %v3397_v8 = vpop.f32.mrb[23].mxu1 }
 0x28f   : > { %5752 = vst [vmem:[%s7844_s26 + $0x38] sm:$0xff] %v5689_v40  }
 0x290   : > { %5751 = vst [vmem:[%s7844_s26 + $0x30] sm:$0xff] %v5684_v62   ;;  %v5094_v3 = vadd.f32 %v6437_v57, %v5093_v11  ;;  %v5163_v59 = vadd.f32 %v5162_v52, %v5132_v38  ;;  %v6395_v51 = vpop.f32.mrb[16].mxu0 }
 0x291   : > { %v6441_v49 = vadd.f32 %v6395_v51, %v6203_v21  ;;  %v4730_v26 = vpop.f32.mrb[17].mxu0 }
 0x292   : > { %v5164_v30 = vadd.f32 %v5163_v59, %v5133_v24  ;;  %v6442_v47 = vadd.f32 %v4730_v26, %v3378_v34  ;;  %v5095_v32 = vadd.f32 %v6439_v0, %v5094_v3  ;;  %v6396_v9 = vpop.f32.mrb[18].mxu0 }
 0x293   : > { %v6443_v12 = vadd.f32 %v6396_v9, %v6204_v35  ;;  %v4733_v15 = vpop.f32.mrb[19].mxu0  ;;  %v6211_v6 = vpop.f32.mrb[24].mxu1  ;;  %v5137_v1 = vmul.f32 %v6441_v49, %v6441_v49 }
 0x294   : > { %v5096_v61 = vadd.f32 %v6442_v47, %v5095_v32  ;;  %v5135_v27 = vmul.f32 %v6442_v47, %v6442_v47  ;;  %v5165_v55 = vadd.f32 %v5164_v30, %v5134_v2  ;;  %v6444_v23 = vadd.f32 %v4733_v15, %v3381_v48  ;;  %v3410_v63 = vpop.f32.mrb[25].mxu1 }
 0x295   : > { %v5699_v39 = vpack.c.bf16 %v6443_v12, %v6441_v49  ;;  %v6212_v33 = vpop.f32.mrb[26].mxu1  ;;  %v5138_v35 = vmul.f32 %v6443_v12, %v6443_v12 }
 0x296   : > { %v5166_v14 = vadd.f32 %v5165_v55, %v5135_v27  ;;  %v5694_v53 = vpack.c.bf16 %v6444_v23, %v6442_v47  ;;  %v5097_v7 = vadd.f32 %v6444_v23, %v5096_v61  ;;  %v5136_v36 = vmul.f32 %v6444_v23, %v6444_v23  ;;  %v3413_v21 = vpop.f32.mrb[27].mxu1 }
 0x297   : > { %5754 = vst [vmem:[%s7844_s26 + $0x48] sm:$0xff] %v5699_v39  }
 0x298   : > { %5753 = vst [vmem:[%s7844_s26 + $0x40] sm:$0xff] %v5694_v53   ;;  %v5098_v28 = vadd.f32 %v6441_v49, %v5097_v7  ;;  %v5167_v4 = vadd.f32 %v5166_v14, %v5136_v36  ;;  %v6399_v31 = vpop.f32.mrb[20].mxu0 }
 0x299   : > { %v6445_v34 = vadd.f32 %v6399_v31, %v6207_v29  ;;  %v4746_v17 = vpop.f32.mrb[21].mxu0 }
 0x29a   : > { %v5168_v19 = vadd.f32 %v5167_v4, %v5137_v1  ;;  %v6446_v22 = vadd.f32 %v4746_v17, %v3394_v13  ;;  %v5099_v42 = vadd.f32 %v6443_v12, %v5098_v28  ;;  %v6400_v45 = vpop.f32.mrb[22].mxu0 }
 0x29b   : > { %v6447_v48 = vadd.f32 %v6400_v45, %v6208_v41  ;;  %v4749_v43 = vpop.f32.mrb[23].mxu0  ;;  %v6215_v25 = vpop.f32.mrb[28].mxu1  ;;  %v5141_v37 = vmul.f32 %v6445_v34, %v6445_v34 }
 0x29c   : > { %v5100_v10 = vadd.f32 %v6446_v22, %v5099_v42  ;;  %v5139_v54 = vmul.f32 %v6446_v22, %v6446_v22  ;;  %v5169_v57 = vadd.f32 %v5168_v19, %v5138_v35  ;;  %v6448_v50 = vadd.f32 %v4749_v43, %v3397_v8  ;;  %v3426_v56 = vpop.f32.mrb[29].mxu1 }
 0x29d   : > { %v5709_v58 = vpack.c.bf16 %v6447_v48, %v6445_v34  ;;  %v6216_v60 = vpop.f32.mrb[30].mxu1  ;;  %v5142_v41 = vmul.f32 %v6447_v48, %v6447_v48 }
 0x29e   : > { %v5170_v16 = vadd.f32 %v5169_v57, %v5139_v54  ;;  %v5704_v46 = vpack.c.bf16 %v6448_v50, %v6446_v22  ;;  %v5101_v0 = vadd.f32 %v6448_v50, %v5100_v10  ;;  %v5140_v18 = vmul.f32 %v6448_v50, %v6448_v50  ;;  %v3429_v29 = vpop.f32.mrb[31].mxu1 }
 0x29f   : > { %5756 = vst [vmem:[%s7844_s26 + $0x58] sm:$0xff] %v5709_v58  }
 0x2a0   : > { %5755 = vst [vmem:[%s7844_s26 + $0x50] sm:$0xff] %v5704_v46   ;;  %v5102_v44 = vadd.f32 %v6445_v34, %v5101_v0  ;;  %v5171_v5 = vadd.f32 %v5170_v16, %v5140_v18  ;;  %v6403_v20 = vpop.f32.mrb[24].mxu0 }
 0x2a1   : > { %v6449_v13 = vadd.f32 %v6403_v20, %v6211_v6  ;;  %v4762_v40 = vpop.f32.mrb[25].mxu0 }
 0x2a2   : > { %v5172_v52 = vadd.f32 %v5171_v5, %v5141_v37  ;;  %v6450_v62 = vadd.f32 %v4762_v40, %v3410_v63  ;;  %v5103_v11 = vadd.f32 %v6447_v48, %v5102_v44  ;;  %v6404_v38 = vpop.f32.mrb[26].mxu0 }
 0x2a3   : > { %v6451_v8 = vadd.f32 %v6404_v38, %v6212_v33  ;;  %v4765_v24 = vpop.f32.mrb[27].mxu0  ;;  %v5145_v9 = vmul.f32 %v6449_v13, %v6449_v13 }
 0x2a4   : > { %v5104_v3 = vadd.f32 %v6450_v62, %v5103_v11  ;;  %v5143_v59 = vmul.f32 %v6450_v62, %v6450_v62  ;;  %v5173_v51 = vadd.f32 %v5172_v52, %v5142_v41  ;;  %v6452_v49 = vadd.f32 %v4765_v24, %v3413_v21 }
 0x2a5   : > { %v5719_v26 = vpack.c.bf16 %v6451_v8, %v6449_v13  ;;  %v5146_v55 = vmul.f32 %v6451_v8, %v6451_v8 }
 0x2a6   : > { %v5174_v2 = vadd.f32 %v5173_v51, %v5143_v59  ;;  %v5714_v30 = vpack.c.bf16 %v6452_v49, %v6450_v62  ;;  %v5105_v47 = vadd.f32 %v6452_v49, %v5104_v3  ;;  %v5144_v32 = vmul.f32 %v6452_v49, %v6452_v49 }
 0x2a7   : > { %5758 = vst [vmem:[%s7844_s26 + $0x68] sm:$0xff] %v5719_v26  }
 0x2a8   : > { %5757 = vst [vmem:[%s7844_s26 + $0x60] sm:$0xff] %v5714_v30   ;;  %v5106_v12 = vadd.f32 %v6449_v13, %v5105_v47  ;;  %v5175_v15 = vadd.f32 %v5174_v2, %v5144_v32  ;;  %v6407_v6 = vpop.f32.mrb[28].mxu0 }
 0x2a9   : > { %v6453_v61 = vadd.f32 %v6407_v6, %v6215_v25  ;;  %v4778_v27 = vpop.f32.mrb[29].mxu0 }
 0x2aa   : > { %v5176_v23 = vadd.f32 %v5175_v15, %v5145_v9  ;;  %v6454_v63 = vadd.f32 %v4778_v27, %v3426_v56  ;;  %v5107_v39 = vadd.f32 %v6451_v8, %v5106_v12  ;;  %v6408_v33 = vpop.f32.mrb[30].mxu0 }
 0x2ab   : > { %v6455_v14 = vadd.f32 %v6408_v33, %v6216_v60  ;;  %v4781_v53 = vpop.f32.mrb[31].mxu0  ;;  %v5149_v35 = vmul.f32 %v6453_v61, %v6453_v61 }
 0x2ac   : > { %v5108_v7 = vadd.f32 %v6454_v63, %v5107_v39  ;;  %v5147_v36 = vmul.f32 %v6454_v63, %v6454_v63  ;;  %v5177_v21 = vadd.f32 %v5176_v23, %v5146_v55  ;;  %v6456_v1 = vadd.f32 %v4781_v53, %v3429_v29 }
 0x2ad   : > { %v5729_v28 = vpack.c.bf16 %v6455_v14, %v6453_v61  ;;  %v5150_v42 = vmul.f32 %v6455_v14, %v6455_v14 }
 0x2ae   : > { %v5178_v4 = vadd.f32 %v5177_v21, %v5147_v36  ;;  %v5724_v31 = vpack.c.bf16 %v6456_v1, %v6454_v63  ;;  %v5109_v34 = vadd.f32 %v6456_v1, %v5108_v7  ;;  %v5148_v17 = vmul.f32 %v6456_v1, %v6456_v1 }
 0x2af   : > { %5760 = vst [vmem:[%s7844_s26 + $0x78] sm:$0xff] %v5729_v28  }
 0x2b0   : > { %5759 = vst [vmem:[%s7844_s26 + $0x70] sm:$0xff] %v5724_v31   ;;  %v5110_v19 = vadd.f32 %v6453_v61, %v5109_v34  ;;  %v5179_v22 = vadd.f32 %v5178_v4, %v5148_v17 }
 0x2b2   : > { %v5111_v45 = vadd.f32 %v6455_v14, %v5110_v19  ;;  %v5180_v48 = vadd.f32 %v5179_v22, %v5149_v35 }
 0x2b4   : > { %v5112_v43 = vrot.slane %v5111_v45, 4  ;;  %v5181_v25 = vadd.f32 %v5180_v48, %v5150_v42 }
 0x2b6   : > { %v5113_v10 = vadd.f32 %v5112_v43, %v5111_v45  ;;  %v5182_v54 = vrot.slane %v5181_v25, 4 }
 0x2b8   : > { %v5114_v57 = vrot.slane %v5113_v10, 2  ;;  %v5183_v50 = vadd.f32 %v5182_v54, %v5181_v25 }
 0x2ba   : > { %v5115_v56 = vadd.f32 %v5114_v57, %v5113_v10  ;;  %v5184_v58 = vrot.slane %v5183_v50, 2 }
 0x2bc   : > { %v5116_v60 = vrot.slane %v5115_v56, 1  ;;  %v5185_v16 = vadd.f32 %v5184_v58, %v5183_v50 }
 0x2be   : > { %v5117_v46 = vadd.f32 %v5116_v60, %v5115_v56  ;;  %v5186_v0 = vrot.slane %v5185_v16, 1 }
 0x2c0   : > { %5118 = vst [vmem:[%s289_s29] sm:$0x1] %v5117_v46  ;;  %v5187_v18 = vadd.f32 %v5186_v0, %v5185_v16 }
 0x2c2   : > { %5188 = vst [vmem:[%s289_s29 + $0x1] sm:$0x1] %v5187_v18 }
 0x2c3 PF: > { %s18_s24 = sadd.s32 1, %s6796_s24  }
 0x2c4   : > { %p15_p4 = scmp.ge.s32.totalorder %s18_s24, 4  }
 0x2c6   :  { %17 = sbr.rel (!%p15_p4) target bundleno = 1 (0x1), region = 96 }

</bundles_post_ra>
